<compile_context>
chip_gen: v6e
topology: v6e:2x2x1
jax: 0.10.0
libtpu: 0.0.40
codegen_flags: <defaults>
</compile_context>

<pallas_src>
import functools

import jax
import jax.numpy as jnp
from jax.experimental import pallas as pl
from jax.experimental.pallas import tpu as pltpu

HIDDEN = 256
N_LAYERS = 4  # DI-engine MLP(layer_num=4): D->256, 256->256, 256->256, 256->1


def _round_up(x, m):
    return ((x + m - 1) // m) * m


def _cdiv(a, b):
    return -(-a // b)


def twinq_kernel(x_ref, w1t_ref, wh_ref, w4r_ref, c_ref, out_ref):
    # Activations are transposed: features on sublanes, batch tile on lanes.
    # First layer of BOTH towers fused: (2H, D) @ (D, tile) -> (2H, tile), fp32 (tiny K).
    h = jnp.dot(w1t_ref[...], x_ref[...], preferred_element_type=jnp.float32)
    h = jnp.maximum(h + c_ref[:, 0:1], 0.0)          # fused first-layer bias + ReLU (fp32 VPU)

    def tower(t):
        r = t * HIDDEN
        hh = h[r:r + HIDDEN, :]                       # this tower's hidden state (256, tile)
        # Hidden layers: bf16 MXU operands, fp32 accumulation, fp32 bias/ReLU on the VPU.
        hh = jnp.dot(wh_ref[2 * t], hh.astype(jnp.bfloat16),
                     preferred_element_type=jnp.float32)
        hh = jnp.maximum(hh + c_ref[r:r + HIDDEN, 1:2], 0.0)
        hh = jnp.dot(wh_ref[2 * t + 1], hh.astype(jnp.bfloat16),
                     preferred_element_type=jnp.float32)
        hh = jnp.maximum(hh + c_ref[r:r + HIDDEN, 2:3], 0.0)
        # Final 256 -> 1 layer: (1, 256) fp32 row against (256, tile) fp32 -> (1, tile),
        # i.e. naturally lane-dense over the batch; cost is negligible (K=256, M=1).
        q = jnp.dot(w4r_ref[t:t + 1, :], hh, preferred_element_type=jnp.float32)
        return q + c_ref[t:t + 1, 3:4]                # + b4 scalar

    out_ref[...] = jnp.minimum(tower(0), tower(1))    # (1, tile), dense lane store


def pack_twinq_params(params_q1, params_q2):
    """One-time parameter packing. Call OUTSIDE the per-step forward (review item:
    no per-call weight concat/transpose/cast traffic).

    Returns (w1t, wh, w4r, consts):
      w1t    (2H, D)     fp32  both towers' first-layer weights, fused on the output axis
                               and transposed (kernel computes h^T = W1^T x^T).
      wh     (4, H, H)   bf16  [W2_q1^T, W3_q1^T, W2_q2^T, W3_q2^T] as MXU operands.
      w4r    (2, H)      fp32  final-layer weight rows [w4_q1, w4_q2].
      consts (2H, 4)     fp32  column table: b1_fused | b2 | b3 | b4 scalars (rows 0,1).
    """
    (w1_1, b1_1), (w2_1, b2_1), (w3_1, b3_1), (w4_1, b4_1) = params_q1
    (w1_2, b1_2), (w2_2, b2_2), (w3_2, b3_2), (w4_2, b4_2) = params_q2

    f32 = lambda a: jnp.asarray(a, jnp.float32)
    stack2 = lambda a, b: jnp.concatenate([f32(a).reshape(-1), f32(b).reshape(-1)])

    # Fused + transposed first layer: (D, 512) -> (512, D), kept fp32 (accuracy, tiny K).
    w1t = jnp.concatenate([f32(w1_1), f32(w1_2)], axis=1).T

    # Hidden weights, transposed and packed for the MXU (bf16 operands, fp32 accumulate).
    wh = jnp.stack([f32(w2_1).T, f32(w3_1).T, f32(w2_2).T, f32(w3_2).T]).astype(jnp.bfloat16)

    # Final-layer weight rows, fp32.
    w4r = jnp.stack([f32(w4_1).reshape(-1), f32(w4_2).reshape(-1)])

    # All biases in one fp32 column table (rows 0:256 = tower 1, 256:512 = tower 2).
    consts = jnp.zeros((2 * HIDDEN, 4), jnp.float32)
    consts = consts.at[:, 0].set(stack2(b1_1, b1_2))
    consts = consts.at[:, 1].set(stack2(b2_1, b2_2))
    consts = consts.at[:, 2].set(stack2(b3_1, b3_2))
    consts = consts.at[0, 3].set(f32(b4_1).reshape(()))
    consts = consts.at[1, 3].set(f32(b4_2).reshape(()))
    return w1t, wh, w4r, consts


@functools.partial(jax.jit, static_argnames=("tile_b",))
def twinq_forward(action, condition, packed, *, tile_b=1024):
    """action: (B, action_dim), condition: (B, state_dim), packed from pack_twinq_params.
    Returns (B, 1) float32 = min(q1, q2)."""
    w1t, wh, w4r, consts = packed
    B = action.shape[0]
    D = action.shape[1] + condition.shape[1]

    # Batch tile: lane-aligned (x128), as large as tile_b, but capped near ceil(B/2) so
    # bigger batches always produce >= 2 parallel grid tiles (v7x megacore; neutral on
    # single-TC v5e/v6e). Per-step overhead ~0.35us, so big tiles dominate for large B.
    tile = min(int(tile_b), _round_up(B, 128))
    if B > 2 * 128:
        tile = min(tile, _round_up(_cdiv(B, 2), 128))
    tile = max(128, _round_up(tile, 128))
    b_pad = _round_up(B, tile)

    # Pack [action | condition] and put the batch on the lane axis (D is tiny, so this
    # concat+transpose is a negligible wrapper op); every kernel access is then lane-dense.
    xt = jnp.concatenate([action.astype(jnp.float32),
                          condition.astype(jnp.float32)], axis=1).T      # (D, B)
    if b_pad != B:
        xt = jnp.pad(xt, ((0, 0), (0, b_pad - B)))

    grid = (b_pad // tile,)
    out = pl.pallas_call(
        twinq_kernel,
        out_shape=jax.ShapeDtypeStruct((1, b_pad), jnp.float32),
        grid=grid,
        in_specs=[
            pl.BlockSpec((D, tile), lambda i: (0, i)),        # per-tile activations
            pl.BlockSpec(w1t.shape, lambda i: (0, 0)),        # constants: single DMA,
            pl.BlockSpec(wh.shape, lambda i: (0, 0, 0)),      # VMEM-resident across tiles
            pl.BlockSpec(w4r.shape, lambda i: (0, 0)),
            pl.BlockSpec(consts.shape, lambda i: (0, 0)),
        ],
        out_specs=pl.BlockSpec((1, tile), lambda i: (0, i)),  # lane-dense output blocks
        compiler_params=pltpu.CompilerParams(
            dimension_semantics=("parallel",),                # batch tiles across v7x TCs
        ),
    )(xt, w1t, wh, w4r, consts)
    # Padded (garbage) batch columns are sliced off here; nothing reduces over them.
    return out[0, :B].reshape(B, 1)


def init_mlp_params(key, in_dim, hidden, out_dim, n_layers):
    """Deterministic PyTorch-Linear-style uniform init: U(-1/sqrt(fan_in), 1/sqrt(fan_in))."""
    dims = [in_dim] + [hidden] * (n_layers - 1) + [out_dim]
    params = []
    for i in range(n_layers):
        fan_in, fan_out = dims[i], dims[i + 1]
        key, kw, kb = jax.random.split(key, 3)
        bound = 1.0 / jnp.sqrt(jnp.float32(fan_in))
        w = jax.random.uniform(kw, (fan_in, fan_out), jnp.float32, -bound, bound)
        b = jax.random.uniform(kb, (1, fan_out), jnp.float32, -bound, bound)
        params.append((w, b))
    return params, key


def twinq_reference(action, condition, params_q1, params_q2):
    """Pure-JAX fp32 reference matching the PyTorch module."""
    x = jnp.concatenate([action, condition], axis=-1).astype(jnp.float32)

    def mlp(p):
        h = x
        for i, (w, b) in enumerate(p):
            h = h @ w + b
            if i < len(p) - 1:
                h = jnp.maximum(h, 0.0)
        return h

    return jnp.minimum(mlp(params_q1), mlp(params_q2))


if __name__ == "__main__":
    key = jax.random.PRNGKey(0)

    action_dim = 6
    state_dim = 10
    D = action_dim + state_dim

    params_q1, key = init_mlp_params(key, D, HIDDEN, 1, N_LAYERS)
    params_q2, key = init_mlp_params(key, D, HIDDEN, 1, N_LAYERS)

    # One-time weight packing (done outside the jitted per-step forward).
    packed = jax.block_until_ready(pack_twinq_params(params_q1, params_q2))

    # Small batch (single tile).
    batch = 8
    key, ka, kc = jax.random.split(key, 3)
    action = jax.random.normal(ka, (batch, action_dim), jnp.float32)
    condition = jax.random.normal(kc, (batch, state_dim), jnp.float32)

    out = jax.block_until_ready(twinq_forward(action, condition, packed))
    ref = twinq_reference(action, condition, params_q1, params_q2)
    assert out.shape == (batch, 1)
    # bf16 MXU operands in the hidden layers (fp32 accumulation) vs. pure-fp32 reference.
    assert jnp.allclose(out, ref, atol=5e-2, rtol=5e-2), "mismatch vs pure-JAX reference (B=8)"

    # Larger ragged batch: exercises multi-tile grid + tail padding.
    batch2 = 300
    key, ka2, kc2 = jax.random.split(key, 3)
    action2 = jax.random.normal(ka2, (batch2, action_dim), jnp.float32)
    condition2 = jax.random.normal(kc2, (batch2, state_dim), jnp.float32)

    out2 = jax.block_until_ready(twinq_forward(action2, condition2, packed))
    ref2 = twinq_reference(action2, condition2, params_q1, params_q2)
    assert out2.shape == (batch2, 1)
    assert jnp.allclose(out2, ref2, atol=5e-2, rtol=5e-2), "mismatch vs pure-JAX reference (B=300)"

    print("KERNEL_OK")
</pallas_src>

<mosaic_0001>
module attributes {stable_mosaic.version = 11 : i64} {
  func.func @twinq_kernel(%arg0: i32, %arg1: memref<16x128xf32, #tpu.memory_space<vmem>>, %arg2: memref<512x16xf32, #tpu.memory_space<vmem>>, %arg3: memref<4x256x256xbf16, #tpu.memory_space<vmem>>, %arg4: memref<2x256xf32, #tpu.memory_space<vmem>>, %arg5: memref<512x4xf32, #tpu.memory_space<vmem>>, %arg6: memref<1x128xf32, #tpu.memory_space<vmem>>) attributes {dimension_semantics = [#tpu.dimension_semantics<parallel>], iteration_bounds = array<i64: 1>, scalar_prefetch = 0 : i64, scratch_operands = 0 : i64, tpu.core_type = #tpu.core_type<tc>, window_params = [{transform_indices = @transform_0, window_bounds = array<i64: 16, 128>}, {pipeline_mode = #tpu.pipeline_mode<synchronous>, transform_indices = @transform_1, window_bounds = array<i64: 512, 16>}, {pipeline_mode = #tpu.pipeline_mode<synchronous>, transform_indices = @transform_2, window_bounds = array<i64: 4, 256, 256>}, {pipeline_mode = #tpu.pipeline_mode<synchronous>, transform_indices = @transform_3, window_bounds = array<i64: 2, 256>}, {pipeline_mode = #tpu.pipeline_mode<synchronous>, transform_indices = @transform_4, window_bounds = array<i64: 512, 4>}, {transform_indices = @transform_5, window_bounds = array<i64: 1, 128>}]} {
    %c0 = arith.constant 0 : index
    %c0_0 = arith.constant 0 : index
    %0 = vector.load %arg2[%c0, %c0_0] : memref<512x16xf32, #tpu.memory_space<vmem>>, vector<512x16xf32>
    %c0_1 = arith.constant 0 : index
    %c0_2 = arith.constant 0 : index
    %1 = vector.load %arg1[%c0_1, %c0_2] : memref<16x128xf32, #tpu.memory_space<vmem>>, vector<16x128xf32>
    %cst = arith.constant dense<0.000000e+00> : vector<512x128xf32>
    %2 = tpu.matmul %0, %1, %cst {dimension_numbers = #tpu.dot_dimension_numbers<[1], [0], [0], [1], [0, 0, 1, 1], [], []>} : vector<512x16xf32>, vector<16x128xf32>, vector<512x128xf32> -> vector<512x128xf32>
    %c0_3 = arith.constant 0 : index
    %c0_4 = arith.constant 0 : index
    %3 = vector.load %arg5[%c0_3, %c0_4] : memref<512x4xf32, #tpu.memory_space<vmem>>, vector<512x1xf32>
    %4 = vector.broadcast %3 : vector<512x1xf32> to vector<512x128xf32>
    %5 = arith.addf %2, %4 : vector<512x128xf32>
    %cst_5 = arith.constant 0.000000e+00 : f32
    %6 = vector.broadcast %cst_5 : f32 to vector<512x128xf32>
    %7 = arith.maximumf %5, %6 : vector<512x128xf32>
    %8 = vector.extract_strided_slice %7 {offsets = [0, 0], sizes = [256, 128], strides = [1, 1]} : vector<512x128xf32> to vector<256x128xf32>
    %c0_6 = arith.constant 0 : index
    %c0_7 = arith.constant 0 : index
    %c0_8 = arith.constant 0 : index
    %9 = vector.load %arg3[%c0_6, %c0_7, %c0_8] : memref<4x256x256xbf16, #tpu.memory_space<vmem>>, vector<1x256x256xbf16>
    %10 = vector.shape_cast %9 : vector<1x256x256xbf16> to vector<256x256xbf16>
    %11 = arith.truncf %8 : vector<256x128xf32> to vector<256x128xbf16>
    %cst_9 = arith.constant dense<0.000000e+00> : vector<256x128xf32>
    %12 = tpu.matmul %10, %11, %cst_9 {dimension_numbers = #tpu.dot_dimension_numbers<[1], [0], [0], [1], [0, 0, 1, 1], [], []>} : vector<256x256xbf16>, vector<256x128xbf16>, vector<256x128xf32> -> vector<256x128xf32>
    %c0_10 = arith.constant 0 : index
    %c1 = arith.constant 1 : index
    %13 = vector.load %arg5[%c0_10, %c1] : memref<512x4xf32, #tpu.memory_space<vmem>>, vector<256x1xf32>
    %14 = vector.broadcast %13 : vector<256x1xf32> to vector<256x128xf32>
    %15 = arith.addf %12, %14 : vector<256x128xf32>
    %cst_11 = arith.constant 0.000000e+00 : f32
    %16 = vector.broadcast %cst_11 : f32 to vector<256x128xf32>
    %17 = arith.maximumf %15, %16 : vector<256x128xf32>
    %c1_12 = arith.constant 1 : index
    %c0_13 = arith.constant 0 : index
    %c0_14 = arith.constant 0 : index
    %18 = vector.load %arg3[%c1_12, %c0_13, %c0_14] : memref<4x256x256xbf16, #tpu.memory_space<vmem>>, vector<1x256x256xbf16>
    %19 = vector.shape_cast %18 : vector<1x256x256xbf16> to vector<256x256xbf16>
    %20 = arith.truncf %17 : vector<256x128xf32> to vector<256x128xbf16>
    %cst_15 = arith.constant dense<0.000000e+00> : vector<256x128xf32>
    %21 = tpu.matmul %19, %20, %cst_15 {dimension_numbers = #tpu.dot_dimension_numbers<[1], [0], [0], [1], [0, 0, 1, 1], [], []>} : vector<256x256xbf16>, vector<256x128xbf16>, vector<256x128xf32> -> vector<256x128xf32>
    %c0_16 = arith.constant 0 : index
    %c2 = arith.constant 2 : index
    %22 = vector.load %arg5[%c0_16, %c2] : memref<512x4xf32, #tpu.memory_space<vmem>>, vector<256x1xf32>
    %23 = vector.broadcast %22 : vector<256x1xf32> to vector<256x128xf32>
    %24 = arith.addf %21, %23 : vector<256x128xf32>
    %cst_17 = arith.constant 0.000000e+00 : f32
    %25 = vector.broadcast %cst_17 : f32 to vector<256x128xf32>
    %26 = arith.maximumf %24, %25 : vector<256x128xf32>
    %c0_18 = arith.constant 0 : index
    %c0_19 = arith.constant 0 : index
    %27 = vector.load %arg4[%c0_18, %c0_19] : memref<2x256xf32, #tpu.memory_space<vmem>>, vector<1x256xf32>
    %cst_20 = arith.constant dense<0.000000e+00> : vector<1x128xf32>
    %28 = tpu.matmul %27, %26, %cst_20 {dimension_numbers = #tpu.dot_dimension_numbers<[1], [0], [0], [1], [0, 0, 1, 1], [], []>} : vector<1x256xf32>, vector<256x128xf32>, vector<1x128xf32> -> vector<1x128xf32>
    %c0_21 = arith.constant 0 : index
    %c3 = arith.constant 3 : index
    %29 = vector.load %arg5[%c0_21, %c3] : memref<512x4xf32, #tpu.memory_space<vmem>>, vector<1x1xf32>
    %30 = vector.broadcast %29 : vector<1x1xf32> to vector<1x128xf32>
    %31 = arith.addf %28, %30 : vector<1x128xf32>
    %32 = vector.extract_strided_slice %7 {offsets = [256, 0], sizes = [256, 128], strides = [1, 1]} : vector<512x128xf32> to vector<256x128xf32>
    %c2_22 = arith.constant 2 : index
    %c0_23 = arith.constant 0 : index
    %c0_24 = arith.constant 0 : index
    %33 = vector.load %arg3[%c2_22, %c0_23, %c0_24] : memref<4x256x256xbf16, #tpu.memory_space<vmem>>, vector<1x256x256xbf16>
    %34 = vector.shape_cast %33 : vector<1x256x256xbf16> to vector<256x256xbf16>
    %35 = arith.truncf %32 : vector<256x128xf32> to vector<256x128xbf16>
    %cst_25 = arith.constant dense<0.000000e+00> : vector<256x128xf32>
    %36 = tpu.matmul %34, %35, %cst_25 {dimension_numbers = #tpu.dot_dimension_numbers<[1], [0], [0], [1], [0, 0, 1, 1], [], []>} : vector<256x256xbf16>, vector<256x128xbf16>, vector<256x128xf32> -> vector<256x128xf32>
    %c256 = arith.constant 256 : index
    %c1_26 = arith.constant 1 : index
    %37 = vector.load %arg5[%c256, %c1_26] : memref<512x4xf32, #tpu.memory_space<vmem>>, vector<256x1xf32>
    %38 = vector.broadcast %37 : vector<256x1xf32> to vector<256x128xf32>
    %39 = arith.addf %36, %38 : vector<256x128xf32>
    %cst_27 = arith.constant 0.000000e+00 : f32
    %40 = vector.broadcast %cst_27 : f32 to vector<256x128xf32>
    %41 = arith.maximumf %39, %40 : vector<256x128xf32>
    %c3_28 = arith.constant 3 : index
    %c0_29 = arith.constant 0 : index
    %c0_30 = arith.constant 0 : index
    %42 = vector.load %arg3[%c3_28, %c0_29, %c0_30] : memref<4x256x256xbf16, #tpu.memory_space<vmem>>, vector<1x256x256xbf16>
    %43 = vector.shape_cast %42 : vector<1x256x256xbf16> to vector<256x256xbf16>
    %44 = arith.truncf %41 : vector<256x128xf32> to vector<256x128xbf16>
    %cst_31 = arith.constant dense<0.000000e+00> : vector<256x128xf32>
    %45 = tpu.matmul %43, %44, %cst_31 {dimension_numbers = #tpu.dot_dimension_numbers<[1], [0], [0], [1], [0, 0, 1, 1], [], []>} : vector<256x256xbf16>, vector<256x128xbf16>, vector<256x128xf32> -> vector<256x128xf32>
    %c256_32 = arith.constant 256 : index
    %c2_33 = arith.constant 2 : index
    %46 = vector.load %arg5[%c256_32, %c2_33] : memref<512x4xf32, #tpu.memory_space<vmem>>, vector<256x1xf32>
    %47 = vector.broadcast %46 : vector<256x1xf32> to vector<256x128xf32>
    %48 = arith.addf %45, %47 : vector<256x128xf32>
    %cst_34 = arith.constant 0.000000e+00 : f32
    %49 = vector.broadcast %cst_34 : f32 to vector<256x128xf32>
    %50 = arith.maximumf %48, %49 : vector<256x128xf32>
    %c1_35 = arith.constant 1 : index
    %c0_36 = arith.constant 0 : index
    %51 = vector.load %arg4[%c1_35, %c0_36] : memref<2x256xf32, #tpu.memory_space<vmem>>, vector<1x256xf32>
    %cst_37 = arith.constant dense<0.000000e+00> : vector<1x128xf32>
    %52 = tpu.matmul %51, %50, %cst_37 {dimension_numbers = #tpu.dot_dimension_numbers<[1], [0], [0], [1], [0, 0, 1, 1], [], []>} : vector<1x256xf32>, vector<256x128xf32>, vector<1x128xf32> -> vector<1x128xf32>
    %c1_38 = arith.constant 1 : index
    %c3_39 = arith.constant 3 : index
    %53 = vector.load %arg5[%c1_38, %c3_39] : memref<512x4xf32, #tpu.memory_space<vmem>>, vector<1x1xf32>
    %54 = vector.broadcast %53 : vector<1x1xf32> to vector<1x128xf32>
    %55 = arith.addf %52, %54 : vector<1x128xf32>
    %56 = arith.minimumf %31, %55 : vector<1x128xf32>
    %c0_40 = arith.constant 0 : index
    %c0_41 = arith.constant 0 : index
    %57 = vector.load %arg6[%c0_40, %c0_41] : memref<1x128xf32, #tpu.memory_space<vmem>>, vector<1x128xf32>
    tpu.vector_store %arg6[%c0_40, %c0_41], %56 {strides = array<i32>} : memref<1x128xf32, #tpu.memory_space<vmem>>, vector<1x128xf32>,
    return
  }
  func.func @transform_0(%arg0: i32) -> (i32, i32) {
    %c0_i32 = arith.constant 0 : i32
    %c0_i32_0 = arith.constant 0 : i32
    return %c0_i32, %arg0 : i32, i32
  }
  func.func @transform_1(%arg0: i32) -> (i32, i32) {
    %c0_i32 = arith.constant 0 : i32
    %c0_i32_0 = arith.constant 0 : i32
    %c0_i32_1 = arith.constant 0 : i32
    return %c0_i32, %c0_i32_0 : i32, i32
  }
  func.func @transform_2(%arg0: i32) -> (i32, i32, i32) {
    %c0_i32 = arith.constant 0 : i32
    %c0_i32_0 = arith.constant 0 : i32
    %c0_i32_1 = arith.constant 0 : i32
    %c0_i32_2 = arith.constant 0 : i32
    return %c0_i32, %c0_i32_0, %c0_i32_1 : i32, i32, i32
  }
  func.func @transform_3(%arg0: i32) -> (i32, i32) {
    %c0_i32 = arith.constant 0 : i32
    %c0_i32_0 = arith.constant 0 : i32
    %c0_i32_1 = arith.constant 0 : i32
    return %c0_i32, %c0_i32_0 : i32, i32
  }
  func.func @transform_4(%arg0: i32) -> (i32, i32) {
    %c0_i32 = arith.constant 0 : i32
    %c0_i32_0 = arith.constant 0 : i32
    %c0_i32_1 = arith.constant 0 : i32
    return %c0_i32, %c0_i32_0 : i32, i32
  }
  func.func @transform_5(%arg0: i32) -> (i32, i32) {
    %c0_i32 = arith.constant 0 : i32
    %c0_i32_0 = arith.constant 0 : i32
    return %c0_i32, %arg0 : i32, i32
  }
}

</mosaic_0001>

<bundles_post_ra>
// kernel: twinq_forward.1
= control target key start
LH: loop header
LB: loop body
LE: loop exit
PB: predicated region body
PF: predicated region fallthrough
CT: control target
= control target key end

     0   :  { %vm471_vm0 = vcmask 130048   ;;  %v4698_v3 = vmov 0   ;;  %s6827_s0 = inlined_call_operand.vmem [shape: f32[16,128], index: 0, kind: input, shape index: {}]   ;;  %s6828_s1 = inlined_call_operand.vmem [shape: f32[512,16], index: 1, kind: input, shape index: {}]   ;;  %s6829_s4 = inlined_call_operand.vmem [shape: f32[512,4], index: 4, kind: input, shape index: {}]   ;;  %s6830_s2 = inlined_call_operand.vmem [shape: bf16[4,256,256], index: 2, kind: input, shape index: {}]   ;;  %s6831_s3 = inlined_call_operand.vmem [shape: f32[2,256], index: 3, kind: input, shape index: {}]   ;;  %s6832_s5 = inlined_call_operand.vmem [shape: f32[1,128], index: 5, kind: output, shape index: {}]  }
   0x1   :  { %v86_v0 = vld [vmem:[%s6827_s0 + $0x8] sm:$0xff]  ;;  %v85_v1 = vld [vmem:[%s6827_s0] sm:$0xff]  ;;  %4461 = vset.pattern.permute.xlu1 %v4698_v3  ;;  %4460 = vset.pattern.permute.xlu0 %v4698_v3  ;;  %v4750_v5 = vld [vmem:[%s6829_s4 + $0x70] sm:$0xff] }
   0x2   :  { %v21_v2 = vld [vmem:[%s6828_s1] sm:$0xff]  ;;  %4352 = vmatprep.subr.mxu0 %v86_v0  ;;  %v22_v4 = vld [vmem:[%s6828_s1 + $0x8] sm:$0xff]  ;;  %4452 = vmatprep.subr.mxu1 %v86_v0  ;;  %v23_v6 = vld [vmem:[%s6828_s1 + $0x10] sm:$0xff] }
   0x3   :  { %4356 = vmatprep.mubr.msk.f32.mxu0 %vm471_vm0, %v21_v2  ;;  %4353 = vmatpush3.msra.mxu0 %v86_v0  ;;  %v4759_v7 = vld [vmem:[%s6829_s4 + $0xf0] sm:$0xff]  ;;  %v4765_v8 = vld [vmem:[%s6829_s4 + $0x78] sm:$0xff]  ;;  %v25_v11 = vld [vmem:[%s6828_s1 + $0x20] sm:$0xff] }
   0x4   :  { %4354 = vmatprep.subr.mxu0 %v85_v1  ;;  %223 = vperm.xlu1 %4461, %v4750_v5   ;;  %v4771_v9 = vld [vmem:[%s6829_s4 + $0xf8] sm:$0xff]  ;;  %v4785_v12 = vld [vmem:[%s6829_s4 + $0xe8] sm:$0xff]  ;;  %v4791_v13 = vld [vmem:[%s6829_s4 + $0xe0] sm:$0xff] }
   0x5   :  { %4355 = vmatpush3.msra.mxu0 %v85_v1  ;;  %303 = vperm.xlu0 %4460, %v4759_v7   ;;  %v24_v10 = vld [vmem:[%s6828_s1 + $0x18] sm:$0xff]  ;;  %v26_v14 = vld [vmem:[%s6828_s1 + $0x28] sm:$0xff]  ;;  %v27_v15 = vld [vmem:[%s6828_s1 + $0x30] sm:$0xff] }
   0x6   :  { %4357 = vmatmul.mubr.msk.f32.vlgmr.msra.gmra.mxu0 %vm471_vm0, %v22_v4  ;;  %4454 = vmatpush3.msra.mxu1 %v86_v0  ;;  %v4805_v16 = vld [vmem:[%s6829_s4 + $0x68] sm:$0xff]  ;;  %v4811_v17 = vld [vmem:[%s6829_s4 + $0x60] sm:$0xff]  ;;  %v28_v18 = vld [vmem:[%s6828_s1 + $0x38] sm:$0xff]  ;;  %v6835_v4 = vmov 1  }
   0x7   :  { %4359 = vmatprep.mubr.msk.f32.mxu0 %vm471_vm0, %v23_v6  ;;  %4453 = vmatprep.subr.mxu1 %v85_v1  ;;  %v29_v19 = vld [vmem:[%s6828_s1 + $0x40] sm:$0xff]  ;;  %v4825_v20 = vld [vmem:[%s6829_s4 + $0xd8] sm:$0xff]  ;;  %v4831_v21 = vld [vmem:[%s6829_s4 + $0xd0] sm:$0xff] }
   0x8   :  { %228 = vperm.xlu1 %4461, %v4765_v8   ;;  %4455 = vmatpush3.msra.mxu1 %v85_v1  ;;  %v30_v22 = vld [vmem:[%s6828_s1 + $0x48] sm:$0xff]  ;;  %v31_v23 = vld [vmem:[%s6828_s1 + $0x50] sm:$0xff]  ;;  %v4845_v24 = vld [vmem:[%s6829_s4 + $0x58] sm:$0xff] }
   0x9   :  { %308 = vperm.xlu0 %4460, %v4771_v9   ;;  %v4851_v25 = vld [vmem:[%s6829_s4 + $0x50] sm:$0xff]  ;;  %v32_v26 = vld [vmem:[%s6828_s1 + $0x58] sm:$0xff]  ;;  %v33_v27 = vld [vmem:[%s6828_s1 + $0x60] sm:$0xff] }
   0xa   :  { %4360 = vmatmul.mubr.msk.f32.gmra.mxu0 %vm471_vm0, %v24_v10  ;;  %v4865_v28 = vld [vmem:[%s6829_s4 + $0xc8] sm:$0xff]  ;;  %v4871_v29 = vld [vmem:[%s6829_s4 + $0xc0] sm:$0xff]  ;;  %v35_v31 = vld [vmem:[%s6828_s1 + $0x70] sm:$0xff] }
   0xb   :  { %4362 = vmatprep.mubr.msk.f32.mxu0 %vm471_vm0, %v25_v11  ;;  %v34_v30 = vld [vmem:[%s6828_s1 + $0x68] sm:$0xff]  ;;  %v4891_v33 = vld [vmem:[%s6829_s4 + $0x40] sm:$0xff]  ;;  %v36_v34 = vld [vmem:[%s6828_s1 + $0x78] sm:$0xff] }
   0xc   :  { %298 = vperm.xlu1 %4461, %v4785_v12   ;;  %v4885_v32 = vld [vmem:[%s6829_s4 + $0x48] sm:$0xff]  ;;  %v37_v35 = vld [vmem:[%s6828_s1 + $0x80] sm:$0xff]  ;;  %v4905_v36 = vld [vmem:[%s6829_s4 + $0xb8] sm:$0xff] }
   0xd   :  { %293 = vperm.xlu0 %4460, %v4791_v13   ;;  %v4911_v37 = vld [vmem:[%s6829_s4 + $0xb0] sm:$0xff]  ;;  %v38_v38 = vld [vmem:[%s6828_s1 + $0x88] sm:$0xff]  ;;  %v4925_v40 = vld [vmem:[%s6829_s4 + $0x38] sm:$0xff] }
   0xe   :  { %4363 = vmatmul.mubr.msk.f32.gmra.mxu0 %vm471_vm0, %v26_v14  ;;  %v39_v39 = vld [vmem:[%s6828_s1 + $0x90] sm:$0xff]  ;;  %v40_v42 = vld [vmem:[%s6828_s1 + $0x98] sm:$0xff]  ;;  %v41_v43 = vld [vmem:[%s6828_s1 + $0xa0] sm:$0xff] }
   0xf   :  { %4365 = vmatprep.mubr.msk.f32.mxu0 %vm471_vm0, %v27_v15  ;;  %v4931_v41 = vld [vmem:[%s6829_s4 + $0x30] sm:$0xff]  ;;  %v4945_v44 = vld [vmem:[%s6829_s4 + $0xa8] sm:$0xff]  ;;  %v4951_v45 = vld [vmem:[%s6829_s4 + $0xa0] sm:$0xff] }
  0x10   :  { %218 = vperm.xlu1 %4461, %v4805_v16   ;;  %v42_v46 = vld [vmem:[%s6828_s1 + $0xa8] sm:$0xff]  ;;  %v43_v47 = vld [vmem:[%s6828_s1 + $0xb0] sm:$0xff]  ;;  %v4971_v49 = vld [vmem:[%s6829_s4 + $0x20] sm:$0xff] }
  0x11   :  { %213 = vperm.xlu0 %4460, %v4811_v17   ;;  %v4965_v48 = vld [vmem:[%s6829_s4 + $0x28] sm:$0xff]  ;;  %v44_v50 = vld [vmem:[%s6828_s1 + $0xb8] sm:$0xff]  ;;  %v45_v51 = vld [vmem:[%s6828_s1 + $0xc0] sm:$0xff] }
  0x12   :  { %4366 = vmatmul.mubr.msk.f32.gmra.mxu0 %vm471_vm0, %v28_v18  ;;  %v4985_v52 = vld [vmem:[%s6829_s4 + $0x98] sm:$0xff]  ;;  %v4991_v53 = vld [vmem:[%s6829_s4 + $0x90] sm:$0xff]  ;;  %v46_v54 = vld [vmem:[%s6828_s1 + $0xc8] sm:$0xff] }
  0x13   :  { %4368 = vmatprep.mubr.msk.f32.mxu0 %vm471_vm0, %v29_v19  ;;  %v47_v55 = vld [vmem:[%s6828_s1 + $0xd0] sm:$0xff]  ;;  %v5005_v56 = vld [vmem:[%s6829_s4 + $0x18] sm:$0xff]  ;;  %v49_v59 = vld [vmem:[%s6828_s1 + $0xe0] sm:$0xff] }
  0x14   :  { %288 = vperm.xlu1 %4461, %v4825_v20   ;;  %v5011_v57 = vld [vmem:[%s6829_s4 + $0x10] sm:$0xff]  ;;  %v48_v58 = vld [vmem:[%s6828_s1 + $0xd8] sm:$0xff]  ;;  %v5025_v60 = vld [vmem:[%s6829_s4 + $0x88] sm:$0xff] }
  0x15   :  { %283 = vperm.xlu0 %4460, %v4831_v21   ;;  %v5031_v61 = vld [vmem:[%s6829_s4 + $0x80] sm:$0xff]  ;;  %v50_v62 = vld [vmem:[%s6828_s1 + $0xe8] sm:$0xff]  ;;  %v51_v63 = vld [vmem:[%s6828_s1 + $0xf0] sm:$0xff] }
  0x16   :  { %4369 = vmatmul.mubr.msk.f32.gmra.mxu0 %vm471_vm0, %v30_v22  ;;  %v5045_v0 = vld [vmem:[%s6829_s4 + $0x8] sm:$0xff]  ;;  %v5051_v1 = vld [vmem:[%s6829_s4] sm:$0xff]  ;;  %v52_v2 = vld [vmem:[%s6828_s1 + $0xf8] sm:$0xff] }
  0x17   :  { %4371 = vmatprep.mubr.msk.f32.mxu0 %vm471_vm0, %v31_v23  ;;  %v63_v6 = vld [vmem:[%s6828_s1 + $0x150] sm:$0xff]  ;;  %v64_v10 = vld [vmem:[%s6828_s1 + $0x158] sm:$0xff]  ;;  %v65_v14 = vld [vmem:[%s6828_s1 + $0x160] sm:$0xff] }
  0x18   :  { %208 = vperm.xlu1 %4461, %v4845_v24   ;;  %4419 = vmatprep.mubr.msk.f32.mxu1 %vm471_vm0, %v63_v6  ;;  %v66_v18 = vld [vmem:[%s6828_s1 + $0x168] sm:$0xff]  ;;  %v67_v22 = vld [vmem:[%s6828_s1 + $0x170] sm:$0xff] }
  0x19   :  { %203 = vperm.xlu0 %4460, %v4851_v25   ;;  %4420 = vmatmul.mubr.msk.f32.vlgmr.msra.gmra.mxu1 %vm471_vm0, %v64_v10 }
  0x1a   :  { %4372 = vmatmul.mubr.msk.f32.gmra.mxu0 %vm471_vm0, %v32_v26  ;;  %4422 = vmatprep.mubr.msk.f32.mxu1 %vm471_vm0, %v65_v14  ;;  %v68_v26 = vld [vmem:[%s6828_s1 + $0x178] sm:$0xff] }
  0x1b   :  { %4374 = vmatprep.mubr.msk.f32.mxu0 %vm471_vm0, %v33_v27  ;;  %v6833_v27 = vmov 2  }
  0x1c   :  { %278 = vperm.xlu1 %4461, %v4865_v28  }
  0x1d   :  { %273 = vperm.xlu0 %4460, %v4871_v29   ;;  %4423 = vmatmul.mubr.msk.f32.gmra.mxu1 %vm471_vm0, %v66_v18 }
  0x1e   :  { %4375 = vmatmul.mubr.msk.f32.gmra.mxu0 %vm471_vm0, %v34_v30  ;;  %4425 = vmatprep.mubr.msk.f32.mxu1 %vm471_vm0, %v67_v22 }
  0x1f   :  { %4377 = vmatprep.mubr.msk.f32.mxu0 %vm471_vm0, %v35_v31  ;;  %v69_v31 = vld [vmem:[%s6828_s1 + $0x180] sm:$0xff] }
  0x20   :  { %198 = vperm.xlu1 %4461, %v4885_v32  }
  0x21   :  { %193 = vperm.xlu0 %4460, %v4891_v33   ;;  %4426 = vmatmul.mubr.msk.f32.gmra.mxu1 %vm471_vm0, %v68_v26 }
  0x22   :  { %4378 = vmatmul.mubr.msk.f32.gmra.mxu0 %vm471_vm0, %v36_v34  ;;  %4428 = vmatprep.mubr.msk.f32.mxu1 %vm471_vm0, %v69_v31 }
  0x23   :  { %4380 = vmatprep.mubr.msk.f32.mxu0 %vm471_vm0, %v37_v35  ;;  %v70_v35 = vld [vmem:[%s6828_s1 + $0x188] sm:$0xff] }
  0x24   :  { %268 = vperm.xlu1 %4461, %v4905_v36  }
  0x25   :  { %263 = vperm.xlu0 %4460, %v4911_v37   ;;  %4429 = vmatmul.mubr.msk.f32.gmra.mxu1 %vm471_vm0, %v70_v35 }
  0x26   :  { %4381 = vmatmul.mubr.msk.f32.gmra.mxu0 %vm471_vm0, %v38_v38 }
  0x27   :  { %4383 = vmatprep.mubr.msk.f32.mxu0 %vm471_vm0, %v39_v39  ;;  %v72_v39 = vld [vmem:[%s6828_s1 + $0x198] sm:$0xff] }
  0x28   :  { %188 = vperm.xlu1 %4461, %v4925_v40  }
  0x29   :  { %183 = vperm.xlu0 %4460, %v4931_v41  }
  0x2a   :  { %4384 = vmatmul.mubr.msk.f32.gmra.mxu0 %vm471_vm0, %v40_v42 }
  0x2b   :  { %4386 = vmatprep.mubr.msk.f32.mxu0 %vm471_vm0, %v41_v43  ;;  %v74_v43 = vld [vmem:[%s6828_s1 + $0x1a8] sm:$0xff] }
  0x2c   :  { %258 = vperm.xlu1 %4461, %v4945_v44  }
  0x2d   :  { %253 = vperm.xlu0 %4460, %v4951_v45  }
  0x2e   :  { %4387 = vmatmul.mubr.msk.f32.gmra.mxu0 %vm471_vm0, %v42_v46  ;;  %v75_v46 = vld [vmem:[%s6828_s1 + $0x1b0] sm:$0xff] }
  0x2f   :  { %4389 = vmatprep.mubr.msk.f32.mxu0 %vm471_vm0, %v43_v47  ;;  %v76_v47 = vld [vmem:[%s6828_s1 + $0x1b8] sm:$0xff] }
  0x30   :  { %178 = vperm.xlu1 %4461, %v4965_v48  }
  0x31   :  { %173 = vperm.xlu0 %4460, %v4971_v49  }
  0x32   :  { %4390 = vmatmul.mubr.msk.f32.gmra.mxu0 %vm471_vm0, %v44_v50  ;;  %v77_v50 = vld [vmem:[%s6828_s1 + $0x1c0] sm:$0xff] }
  0x33   :  { %4392 = vmatprep.mubr.msk.f32.mxu0 %vm471_vm0, %v45_v51  ;;  %v78_v51 = vld [vmem:[%s6828_s1 + $0x1c8] sm:$0xff] }
  0x34   :  { %248 = vperm.xlu1 %4461, %v4985_v52  }
  0x35   :  { %243 = vperm.xlu0 %4460, %v4991_v53  }
  0x36   :  { %4393 = vmatmul.mubr.msk.f32.gmra.mxu0 %vm471_vm0, %v46_v54  ;;  %v79_v54 = vld [vmem:[%s6828_s1 + $0x1d0] sm:$0xff] }
  0x37   :  { %4395 = vmatprep.mubr.msk.f32.mxu0 %vm471_vm0, %v47_v55  ;;  %v80_v55 = vld [vmem:[%s6828_s1 + $0x1d8] sm:$0xff] }
  0x38   :  { %168 = vperm.xlu1 %4461, %v5005_v56  }
  0x39   :  { %163 = vperm.xlu0 %4460, %v5011_v57  }
  0x3a   :  { %4396 = vmatmul.mubr.msk.f32.gmra.mxu0 %vm471_vm0, %v48_v58  ;;  %v81_v58 = vld [vmem:[%s6828_s1 + $0x1e0] sm:$0xff] }
  0x3b   :  { %4398 = vmatprep.mubr.msk.f32.mxu0 %vm471_vm0, %v49_v59  ;;  %v82_v59 = vld [vmem:[%s6828_s1 + $0x1e8] sm:$0xff] }
  0x3c   :  { %238 = vperm.xlu1 %4461, %v5025_v60  }
  0x3d   :  { %233 = vperm.xlu0 %4460, %v5031_v61  }
  0x3e   :  { %4399 = vmatmul.mubr.msk.f32.gmra.mxu0 %vm471_vm0, %v50_v62  ;;  %v83_v62 = vld [vmem:[%s6828_s1 + $0x1f0] sm:$0xff] }
  0x3f   :  { %4401 = vmatprep.mubr.msk.f32.mxu0 %vm471_vm0, %v51_v63  ;;  %v84_v63 = vld [vmem:[%s6828_s1 + $0x1f8] sm:$0xff] }
  0x40   :  { %158 = vperm.xlu1 %4461, %v5045_v0  }
  0x41   :  { %153 = vperm.xlu0 %4460, %v5051_v1  }
  0x42   :  { %4402 = vmatmul.mubr.msk.f32.gmra.mxu0 %vm471_vm0, %v52_v2 }
  0x44   :  { %4463 = vset.pattern.permute.xlu1 %v6835_v4 }
  0x45   :  { %1350 = vperm.xlu1 %4463, %v4771_v9   ;;  %4462 = vset.pattern.permute.xlu0 %v6835_v4 }
  0x46   :  { %1345 = vperm.xlu0 %4462, %v4759_v7  }
  0x49   :  { %1265 = vperm.xlu1 %4463, %v4750_v5  }
  0x4a   :  { %1270 = vperm.xlu0 %4462, %v4765_v8  }
  0x4d   :  { %1335 = vperm.xlu1 %4463, %v4791_v13  }
  0x4e   :  { %1340 = vperm.xlu0 %4462, %v4785_v12  }
  0x51   :  { %1255 = vperm.xlu1 %4463, %v4811_v17  }
  0x52   :  { %1260 = vperm.xlu0 %4462, %v4805_v16  }
  0x55   :  { %1325 = vperm.xlu1 %4463, %v4831_v21  }
  0x56   :  { %1330 = vperm.xlu0 %4462, %v4825_v20  }
  0x59   :  { %1245 = vperm.xlu1 %4463, %v4851_v25  }
  0x5a   :  { %1250 = vperm.xlu0 %4462, %v4845_v24  }
  0x5d   :  { %1315 = vperm.xlu1 %4463, %v4871_v29  }
  0x5e   :  { %1320 = vperm.xlu0 %4462, %v4865_v28  }
  0x61   :  { %1235 = vperm.xlu1 %4463, %v4891_v33  }
  0x62   :  { %1240 = vperm.xlu0 %4462, %v4885_v32  }
  0x65   :  { %1305 = vperm.xlu1 %4463, %v4911_v37  }
  0x66   :  { %1310 = vperm.xlu0 %4462, %v4905_v36  }
  0x69   :  { %1225 = vperm.xlu1 %4463, %v4931_v41  }
  0x6a   :  { %1230 = vperm.xlu0 %4462, %v4925_v40  }
  0x6d   :  { %1295 = vperm.xlu1 %4463, %v4951_v45  }
  0x6e   :  { %1300 = vperm.xlu0 %4462, %v4945_v44  }
  0x71   :  { %1215 = vperm.xlu1 %4463, %v4971_v49  }
  0x72   :  { %1220 = vperm.xlu0 %4462, %v4965_v48  }
  0x75   :  { %1285 = vperm.xlu1 %4463, %v4991_v53  }
  0x76   :  { %1290 = vperm.xlu0 %4462, %v4985_v52  }
  0x79   :  { %1205 = vperm.xlu1 %4463, %v5011_v57  }
  0x7a   :  { %1210 = vperm.xlu0 %4462, %v5005_v56  }
  0x7d   :  { %1275 = vperm.xlu1 %4463, %v5031_v61  }
  0x7e   :  { %1280 = vperm.xlu0 %4462, %v5025_v60  }
  0x7f   :  { %v5100_v11 = vpop.permute.xlu1 %223 }
  0x80   :  { %v5105_v15 = vpop.permute.xlu0 %303 }
  0x81   :  { %1195 = vperm.xlu1 %4463, %v5051_v1  }
  0x82   :  { %1200 = vperm.xlu0 %4462, %v5045_v0  }
  0x83   :  { %v5114_v19 = vpop.permute.xlu1 %228 }
  0x84   :  { %v5119_v23 = vpop.permute.xlu0 %308 }
  0x85   :  { %4464 = vset.pattern.permute.xlu1 %v6833_v27 }
  0x86   :  { %1880 = vperm.xlu1 %4464, %v4771_v9   ;;  %4465 = vset.pattern.permute.xlu0 %v6833_v27 }
  0x87   :  { %v5129_v30 = vpop.permute.xlu1 %298  ;;  %1816 = vperm.xlu0 %4465, %v4765_v8   ;;  %v71_v8 = vld [vmem:[%s6828_s1 + $0x190] sm:$0xff] }
  0x88   :  { %v5135_v34 = vpop.permute.xlu0 %293  ;;  %4431 = vmatprep.mubr.msk.f32.mxu1 %vm471_vm0, %v71_v8 }
  0x89   :  { %4432 = vmatmul.mubr.msk.f32.gmra.mxu1 %vm471_vm0, %v72_v39 }
  0x8a   :  { %1876 = vperm.xlu1 %4464, %v4759_v7   ;;  %v73_v7 = vld [vmem:[%s6828_s1 + $0x1a0] sm:$0xff] }
  0x8b   :  { %v5143_v9 = vpop.permute.xlu1 %218  ;;  %1872 = vperm.xlu0 %4465, %v4785_v12   ;;  %4434 = vmatprep.mubr.msk.f32.mxu1 %vm471_vm0, %v73_v7 }
  0x8c   :  { %v5149_v38 = vpop.permute.xlu0 %213 }
  0x8d   :  { %4435 = vmatmul.mubr.msk.f32.gmra.mxu1 %vm471_vm0, %v74_v43  ;;  %v134_v43 = vld [vmem:[%s6829_s4 + $0x178] sm:$0xff] }
  0x8e   :  { %1812 = vperm.xlu1 %4464, %v4750_v5   ;;  %4437 = vmatprep.mubr.msk.f32.mxu1 %vm471_vm0, %v75_v46  ;;  %v146_v46 = vld [vmem:[%s6829_s4 + $0x1d8] sm:$0xff] }
  0x8f   :  { %v5161_v12 = vpop.permute.xlu1 %288  ;;  %1868 = vperm.xlu0 %4465, %v4791_v13  }
  0x90   :  { %v5164_v42 = vpop.permute.xlu0 %283 }
  0x91   :  { %4438 = vmatmul.mubr.msk.f32.gmra.mxu1 %vm471_vm0, %v76_v47 }
  0x92   :  { %1808 = vperm.xlu1 %4464, %v4805_v16   ;;  %4440 = vmatprep.mubr.msk.f32.mxu1 %vm471_vm0, %v77_v50 }
  0x93   :  { %v5175_v5 = vpop.permute.xlu1 %208  ;;  %1864 = vperm.xlu0 %4465, %v4825_v20  }
  0x94   :  { %v5178_v13 = vpop.permute.xlu0 %203 }
  0x95   :  { %4441 = vmatmul.mubr.msk.f32.gmra.mxu1 %vm471_vm0, %v78_v51 }
  0x96   :  { %1804 = vperm.xlu1 %4464, %v4811_v17   ;;  %4443 = vmatprep.mubr.msk.f32.mxu1 %vm471_vm0, %v79_v54 }
  0x97   :  { %v5189_v16 = vpop.permute.xlu1 %278  ;;  %1860 = vperm.xlu0 %4465, %v4831_v21  }
  0x98   :  { %v5192_v20 = vpop.permute.xlu0 %273 }
  0x99   :  { %4444 = vmatmul.mubr.msk.f32.gmra.mxu1 %vm471_vm0, %v80_v55 }
  0x9a   :  { %1800 = vperm.xlu1 %4464, %v4845_v24   ;;  %4446 = vmatprep.mubr.msk.f32.mxu1 %vm471_vm0, %v81_v58 }
  0x9b   :  { %v5203_v17 = vpop.permute.xlu1 %198  ;;  %1856 = vperm.xlu0 %4465, %v4865_v28  }
  0x9c   :  { %v5206_v21 = vpop.permute.xlu0 %193 }
  0x9d   :  { %4447 = vmatmul.mubr.msk.f32.gmra.mxu1 %vm471_vm0, %v82_v59 }
  0x9e   :  { %1796 = vperm.xlu1 %4464, %v4851_v25   ;;  %4449 = vmatprep.mubr.msk.f32.mxu1 %vm471_vm0, %v83_v62  ;;  %v147_v62 = vld [vmem:[%s6829_s4 + $0x1e0] sm:$0xff] }
  0x9f   :  { %v5217_v24 = vpop.permute.xlu1 %268  ;;  %1852 = vperm.xlu0 %4465, %v4871_v29  }
  0xa0   :  { %v5220_v28 = vpop.permute.xlu0 %263 }
  0xa1   :  { %4450 = vmatmul.mubr.msk.f32.gmra.mxu1 %vm471_vm0, %v84_v63 }
  0xa2   :  { %1792 = vperm.xlu1 %4464, %v4885_v32  }
  0xa3   :  { %v5231_v25 = vpop.permute.xlu1 %188  ;;  %1848 = vperm.xlu0 %4465, %v4905_v36   ;;  %v4478_v36 = vld [vmem:[%s6830_s2 + $0x4] ss:$8 sps:$4 sm:$0xff]  }
  0xa4   :  { %v5234_v29 = vpop.permute.xlu0 %183  ;;  %1545 = vmatprep.mubr.bf16.mxu1 %v4478_v36 }
  0xa6   :  { %1788 = vperm.xlu1 %4464, %v4891_v33  }
  0xa7   :  { %v5241_v2 = vpop.permute.xlu1 %258  ;;  %1844 = vperm.xlu0 %4465, %v4911_v37  }
  0xa8   :  { %v5244_v32 = vpop.permute.xlu0 %253 }
  0xaa   :  { %1784 = vperm.xlu1 %4464, %v4925_v40  }
  0xab   :  { %v5250_v6 = vpop.permute.xlu1 %178  ;;  %1840 = vperm.xlu0 %4465, %v4945_v44  }
  0xac   :  { %v5253_v10 = vpop.permute.xlu0 %173 }
  0xae   :  { %1780 = vperm.xlu1 %4464, %v4931_v41  }
  0xaf   :  { %v5256_v33 = vpop.permute.xlu1 %248  ;;  %1836 = vperm.xlu0 %4465, %v4951_v45  }
  0xb0   :  { %v5259_v37 = vpop.permute.xlu0 %243 }
  0xb2   :  { %1776 = vperm.xlu1 %4464, %v4965_v48   ;;  %v149_v48 = vld [vmem:[%s6829_s4 + $0x1f0] sm:$0xff] }
  0xb3   :  { %v169_v14 = vpop.permute.xlu1 %168  ;;  %1832 = vperm.xlu0 %4465, %v4985_v52  }
  0xb4   :  { %v164_v40 = vpop.permute.xlu0 %163 }
  0xb6   :  { %1772 = vperm.xlu1 %4464, %v4971_v49  }
  0xb7   :  { %v5264_v44 = vpop.permute.xlu1 %238  ;;  %1828 = vperm.xlu0 %4465, %v4991_v53   ;;  %v150_v53 = vld [vmem:[%s6829_s4 + $0x1f8] sm:$0xff] }
  0xb8   :  { %v5267_v18 = vpop.permute.xlu0 %233 }
  0xba   :  { %1768 = vperm.xlu1 %4464, %v5005_v56  }
  0xbb   :  { %1824 = vperm.xlu0 %4465, %v5025_v60   ;;  %v5271_v41 = vpop.permute.xlu1 %158 }
  0xbc   :  { %v5273_v45 = vpop.permute.xlu0 %153 }
  0xbe   :  { %1764 = vperm.xlu1 %4464, %v5011_v57   ;;  %v133_v57 = vld [vmem:[%s6829_s4 + $0x170] sm:$0xff] }
  0xbf   :  { %1756 = vperm.xlu0 %4465, %v5051_v1  }
  0xc0   :  { %v5280_v49 = vpop.permute.xlu1 %1350 }
  0xc1   :  { %6853 = vst [vmem:[#allocation2_spill] sm:$0xff] %v5280_v49  ;;  %v5282_v52 = vpop.permute.xlu0 %1345  ;;  %v124_v49 = vld [vmem:[%s6829_s4 + $0x128] sm:$0xff] }
  0xc2   :  { %6854 = vst [vmem:[#allocation3_spill] sm:$0xff] %v5282_v52  ;;  %1760 = vperm.xlu1 %4464, %v5045_v0   ;;  %v131_v0 = vld [vmem:[%s6829_s4 + $0x160] sm:$0xff] }
  0xc3   :  { %4469 = vset.pattern.permute.xlu0 %v4698_v3  ;;  %v5430_v52 = vld [vmem:[%s6829_s4 + $0x140] sm:$0xff] }
  0xc4   :  { %v5289_v56 = vpop.permute.xlu1 %1265  ;;  %463 = vperm.xlu0 %4469, %v149_v48   ;;  %6880 = vst [vmem:[#allocation29_spill] sm:$0xff] %v5430_v52 }
  0xc5   :  { %6855 = vst [vmem:[#allocation4_spill] sm:$0xff] %v5289_v56  ;;  %v5294_v60 = vpop.permute.xlu0 %1270 }
  0xc6   :  { %6856 = vst [vmem:[#allocation5_spill] sm:$0xff] %v5294_v60  ;;  %v5296_v1 = vpop.f32.mrf.mxu0  ;;  %4466 = vset.pattern.permute.xlu1 %v4698_v3 }
  0xc7   :  { %6857 = vst [vmem:[#allocation6_spill] sm:$0xff] %v5296_v1  ;;  %468 = vperm.xlu1 %4466, %v150_v53  }
  0xc8   :  { %v5302_v22 = vpop.f32.mrf.mxu0  ;;  %v5304_v26 = vpop.permute.xlu1 %1335  ;;  %383 = vperm.xlu0 %4469, %v133_v57   ;;  %v144_v57 = vld [vmem:[%s6829_s4 + $0x1c8] sm:$0xff] }
  0xc9   :  { %6858 = vst [vmem:[#allocation7_spill] sm:$0xff] %v5304_v26  ;;  %v5306_v31 = vpop.permute.xlu0 %1340 }
  0xca   :  { %6859 = vst [vmem:[#allocation8_spill] sm:$0xff] %v5306_v31  ;;  %v4361_v35 = vpop.f32.mrf.mxu0 }
  0xcb   :  { %v746_v8 = vadd.f32 %v4361_v35, %v169_v14  ;;  %4467 = vset.pattern.permute.xlu1 %v6833_v27  ;;  %v5398_v27 = vld [vmem:[%s6829_s4 + $0x150] sm:$0xff] }
  0xcc   :  { %v740_v39 = vpop.f32.mrf.mxu0  ;;  %1820 = vperm.xlu1 %4467, %v5031_v61   ;;  %v5310_v7 = vpop.permute.xlu1 %1255  ;;  %373 = vperm.xlu0 %4469, %v131_v0   ;;  %v130_v61 = vld [vmem:[%s6829_s4 + $0x158] sm:$0xff]  ;;  %6874 = vst [vmem:[#allocation23_spill] sm:$0xff] %v5398_v27 }
  0xcd   :  { %6860 = vst [vmem:[#allocation9_spill] sm:$0xff] %v5310_v7  ;;  %v741_v47 = vadd.f32 %v740_v39, %v164_v40  ;;  %v5318_v50 = vpop.permute.xlu0 %1260  ;;  %v1052_v54 = vmax.f32 %v746_v8, 0.0 }
  0xce   :  { %6861 = vst [vmem:[#allocation10_spill] sm:$0xff] %v5318_v50  ;;  %v5320_v51 = vpop.f32.mrf.mxu0  ;;  %v5464_v50 = vld [vmem:[%s6829_s4 + $0x130] sm:$0xff] }
  0xcf   :  { %v1051_v55 = vmax.f32 %v741_v47, 0.0  ;;  %6886 = vst [vmem:[#allocation35_spill] sm:$0xff] %v5464_v50 }
  0xd0   :  { %v5325_v58 = vpop.f32.mrf.mxu0  ;;  %4468 = vset.pattern.permute.xlu1 %v4698_v3  ;;  %v5328_v59 = vpop.permute.xlu1 %1325  ;;  %448 = vperm.xlu0 %4469, %v146_v46   ;;  %v148_v3 = vld [vmem:[%s6829_s4 + $0x1e8] sm:$0xff] }
  0xd1   :  { %6862 = vst [vmem:[#allocation11_spill] sm:$0xff] %v5328_v59  ;;  %v5333_v63 = vpack.c.bf16 %v1052_v54, %v1051_v55  ;;  %388 = vperm.xlu1 %4468, %v134_v43   ;;  %v5335_v36 = vpop.permute.xlu0 %1330  ;;  %v128_v43 = vld [vmem:[%s6829_s4 + $0x148] sm:$0xff] }
  0xd2   :  { %6864 = vst [vmem:[#allocation13_spill] sm:$0xff] %v5335_v36  ;;  %v4367_v14 = vpop.f32.mrf.mxu0  ;;  %v132_v54 = vld [vmem:[%s6829_s4 + $0x168] sm:$0xff] }
  0xd3   :  { %6863 = vst [vmem:[#allocation12_spill] sm:$0xff] %v5333_v63  ;;  %v766_v40 = vadd.f32 %v4367_v14, %v5231_v25 }
  0xd4   :  { %v760_v48 = vpop.f32.mrf.mxu0  ;;  %v5338_v53 = vpop.permute.xlu1 %1245  ;;  %368 = vperm.xlu0 %4469, %v130_v61  }
  0xd5   :  { %6865 = vst [vmem:[#allocation14_spill] sm:$0xff] %v5338_v53  ;;  %v761_v0 = vadd.f32 %v760_v48, %v5234_v29  ;;  %453 = vperm.xlu1 %4468, %v147_v62   ;;  %v5347_v35 = vpop.permute.xlu0 %1250  ;;  %v1056_v25 = vmax.f32 %v766_v40, 0.0  ;;  %v142_v40 = vld [vmem:[%s6829_s4 + $0x1b8] sm:$0xff] }
  0xd6   :  { %6866 = vst [vmem:[#allocation15_spill] sm:$0xff] %v5347_v35  ;;  %v5349_v8 = vpop.f32.mrf.mxu0 }
  0xd7   :  { %v1055_v39 = vmax.f32 %v761_v0, 0.0 }
  0xd8   :  { %v5354_v46 = vpop.f32.mrf.mxu0  ;;  %v5356_v47 = vpop.permute.xlu1 %1315  ;;  %438 = vperm.xlu0 %4469, %v144_v57  }
  0xd9   :  { %6867 = vst [vmem:[#allocation16_spill] sm:$0xff] %v5356_v47  ;;  %v5361_v29 = vpack.c.bf16 %v1056_v25, %v1055_v39  ;;  %458 = vperm.xlu1 %4468, %v148_v3   ;;  %v5363_v55 = vpop.permute.xlu0 %1320  ;;  %v5381_v3 = vld [vmem:[%s6829_s4 + $0x1d0] sm:$0xff] }
  0xda   :  { %6868 = vst [vmem:[#allocation17_spill] sm:$0xff] %v5363_v55  ;;  %v5365_v61 = vpop.f32.mrf.mxu0  ;;  %6871 = vst [vmem:[#allocation20_spill] sm:$0xff] %v5381_v3  ;;  %v5413_v55 = vld [vmem:[%s6829_s4 + $0x1c0] sm:$0xff] }
  0xdb   :  { %6877 = vst [vmem:[#allocation26_spill] sm:$0xff] %v5413_v55 }
  0xdc   :  { %v5367_v62 = vpop.f32.mrf.mxu0  ;;  %v5369_v14 = vpop.permute.xlu1 %1235  ;;  %358 = vperm.xlu0 %4469, %v128_v43   ;;  %v126_v43 = vld [vmem:[%s6829_s4 + $0x138] sm:$0xff] }
  0xdd   :  { %6869 = vst [vmem:[#allocation18_spill] sm:$0xff] %v5369_v14  ;;  %378 = vperm.xlu1 %4468, %v132_v54   ;;  %v5374_v48 = vpop.permute.xlu0 %1240  ;;  %v5489_v14 = vld [vmem:[%s6829_s4 + $0x120] sm:$0xff] }
  0xde   :  { %6870 = vst [vmem:[#allocation19_spill] sm:$0xff] %v5374_v48  ;;  %v5376_v57 = vpop.f32.mrf.mxu0  ;;  %6892 = vst [vmem:[#allocation41_spill] sm:$0xff] %v5489_v14 }
  0xe0   :  { %v5383_v0 = vpop.f32.mrf.mxu0  ;;  %v5385_v25 = vpop.permute.xlu1 %1305  ;;  %428 = vperm.xlu0 %4469, %v142_v40  }
  0xe1   :  { %6872 = vst [vmem:[#allocation21_spill] sm:$0xff] %v5385_v25  ;;  %443 = vperm.xlu1 %4468, %v5381_v3   ;;  %v5388_v39 = vpop.permute.xlu0 %1310  ;;  %v140_v25 = vld [vmem:[%s6829_s4 + $0x1a8] sm:$0xff]  ;;  %v791_v1 = vadd.f32 %v5383_v0, %v5149_v38 }
  0xe2   :  { %6873 = vst [vmem:[#allocation22_spill] sm:$0xff] %v5388_v39  ;;  %v5393_v54 = vpop.f32.mrf.mxu0 }
  0xe3   :  { %v806_v63 = vadd.f32 %v5393_v54, %v5114_v19 }
  0xe4   :  { %v800_v4 = vpop.f32.mrf.mxu0  ;;  %v5400_v47 = vpop.permute.xlu1 %1225  ;;  %348 = vperm.xlu0 %4469, %v126_v43  }
  0xe5   :  { %6875 = vst [vmem:[#allocation24_spill] sm:$0xff] %v5400_v47  ;;  %363 = vperm.xlu1 %4468, %v5398_v27   ;;  %v5403_v40 = vpop.permute.xlu0 %1230  ;;  %v1064_v54 = vmax.f32 %v806_v63, 0.0 }
  0xe6   :  { %6876 = vst [vmem:[#allocation25_spill] sm:$0xff] %v5403_v40  ;;  %v5408_v39 = vpop.f32.mrf.mxu0 }
  0xe8   :  { %v5415_v59 = vpop.f32.mrf.mxu0  ;;  %v5417_v36 = vpop.permute.xlu1 %1295  ;;  %418 = vperm.xlu0 %4469, %v140_v25  }
  0xe9   :  { %6878 = vst [vmem:[#allocation27_spill] sm:$0xff] %v5417_v36  ;;  %433 = vperm.xlu1 %4468, %v5413_v55   ;;  %v5420_v43 = vpop.permute.xlu0 %1300  ;;  %v138_v36 = vld [vmem:[%s6829_s4 + $0x198] sm:$0xff]  ;;  %v5447_v55 = vld [vmem:[%s6829_s4 + $0x1b0] sm:$0xff] }
  0xea   :  { %6879 = vst [vmem:[#allocation28_spill] sm:$0xff] %v5420_v43  ;;  %v5425_v26 = vpop.f32.mrf.mxu0  ;;  %6883 = vst [vmem:[#allocation32_spill] sm:$0xff] %v5447_v55 }
  0xec   :  { %v5432_v31 = vpop.f32.mrf.mxu0  ;;  %v5434_v27 = vpop.permute.xlu1 %1215  ;;  %338 = vperm.xlu0 %4469, %v124_v49  }
  0xed   :  { %6881 = vst [vmem:[#allocation30_spill] sm:$0xff] %v5434_v27  ;;  %353 = vperm.xlu1 %4468, %v5430_v52   ;;  %v5437_v25 = vpop.permute.xlu0 %1220  ;;  %v122_v52 = vld [vmem:[%s6829_s4 + $0x118] sm:$0xff] }
  0xee   :  { %6882 = vst [vmem:[#allocation31_spill] sm:$0xff] %v5437_v25  ;;  %v5442_v43 = vpop.f32.mrf.mxu0 }
  0xf0   :  { %v5449_v3 = vpop.f32.mrf.mxu0  ;;  %v5451_v60 = vpop.permute.xlu1 %1285  ;;  %408 = vperm.xlu0 %4469, %v138_v36  }
  0xf1   :  { %6884 = vst [vmem:[#allocation33_spill] sm:$0xff] %v5451_v60  ;;  %423 = vperm.xlu1 %4468, %v5447_v55   ;;  %v5454_v49 = vpop.permute.xlu0 %1290  ;;  %v136_v55 = vld [vmem:[%s6829_s4 + $0x188] sm:$0xff]  ;;  %v5479_v60 = vld [vmem:[%s6829_s4 + $0x1a0] sm:$0xff] }
  0xf2   :  { %6885 = vst [vmem:[#allocation34_spill] sm:$0xff] %v5454_v49  ;;  %v5459_v56 = vpop.f32.mrf.mxu0  ;;  %6889 = vst [vmem:[#allocation38_spill] sm:$0xff] %v5479_v60 }
  0xf4   :  { %v5466_v7 = vpop.f32.mrf.mxu0  ;;  %v5468_v35 = vpop.permute.xlu1 %1205  ;;  %328 = vperm.xlu0 %4469, %v122_v52  }
  0xf5   :  { %6887 = vst [vmem:[#allocation36_spill] sm:$0xff] %v5468_v35  ;;  %343 = vperm.xlu1 %4468, %v5464_v50   ;;  %v5471_v36 = vpop.permute.xlu0 %1210 }
  0xf6   :  { %6888 = vst [vmem:[#allocation37_spill] sm:$0xff] %v5471_v36  ;;  %v4394_v49 = vpop.f32.mrf.mxu0 }
  0xf7   :  { %v856_v63 = vadd.f32 %v4394_v49, %v5189_v16  ;;  %v846_v49 = vadd.f32 %v5459_v56, %v5217_v24  ;;  %v751_v56 = vadd.f32 %v5325_v58, %v5253_v10 }
  0xf8   :  { %v850_v53 = vpop.f32.mrf.mxu0  ;;  %v5481_v48 = vpop.permute.xlu1 %1275  ;;  %398 = vperm.xlu0 %4469, %v136_v55   ;;  %v5499_v55 = vld [vmem:[%s6829_s4 + $0x190] sm:$0xff] }
  0xf9   :  { %6890 = vst [vmem:[#allocation39_spill] sm:$0xff] %v5481_v48  ;;  %413 = vperm.xlu1 %4468, %v5479_v60   ;;  %v5484_v52 = vpop.permute.xlu0 %1280  ;;  %6895 = vst [vmem:[#allocation44_spill] sm:$0xff] %v5499_v55  ;;  %v801_v48 = vadd.f32 %v800_v4, %v5100_v11  ;;  %v1053_v10 = vmax.f32 %v751_v56, 0.0  ;;  %v4487_v56 = vld [vmem:[%s6830_s2 + $0x30] ss:$8 sps:$4 sm:$0xff]  }
  0xfa   :  { %6891 = vst [vmem:[#allocation40_spill] sm:$0xff] %v5484_v52  ;;  %v4397_v50 = vpop.f32.mrf.mxu0 }
  0xfc   :  { %v860_v40 = vpop.f32.mrf.mxu0  ;;  %v5491_v47 = vpop.permute.xlu1 %1195 }
  0xfd   :  { %6893 = vst [vmem:[#allocation42_spill] sm:$0xff] %v5491_v47  ;;  %333 = vperm.xlu1 %4468, %v5489_v14   ;;  %v5494_v25 = vpop.permute.xlu0 %1200  ;;  %v5508_v14 = vld [vmem:[%s6829_s4 + $0x110] sm:$0xff]  ;;  %v861_v19 = vadd.f32 %v860_v40, %v5164_v42 }
  0xfe   :  { %6894 = vst [vmem:[#allocation43_spill] sm:$0xff] %v5494_v25  ;;  %v4400_v27 = vpop.f32.mrf.mxu0 }
 0x100   :  { %v870_v60 = vpop.f32.mrf.mxu0 }
 0x101   :  { %403 = vperm.xlu1 %4468, %v5499_v55   ;;  %v5502_v52 = vpop.permute.xlu1 %1880  ;;  %v871_v25 = vadd.f32 %v870_v60, %v5135_v34  ;;  %v796_v60 = vadd.f32 %v5376_v57, %v5143_v9 }
 0x102   :  { %6896 = vst [vmem:[#allocation45_spill] sm:$0xff] %v5502_v52  ;;  %v4403_v36 = vpop.f32.mrf.mxu0  ;;  %v5510_v35 = vpop.permute.xlu0 %1816  ;;  %v876_v52 = vadd.f32 %v4400_v27, %v5129_v30 }
 0x103   :  { %6897 = vst [vmem:[#allocation46_spill] sm:$0xff] %v5510_v35  ;;  %v886_v47 = vadd.f32 %v4403_v36, %v5119_v23  ;;  %v1063_v35 = vmax.f32 %v801_v48, 0.0  ;;  %v5526_v23 = vld [vmem:[%s6829_s4 + $0x180] sm:$0xff]  ;;  %v1077_v27 = vmax.f32 %v871_v25, 0.0  ;;  %v866_v36 = vadd.f32 %v4397_v50, %v5161_v12 }
 0x104   :  { %v880_v55 = vpop.f32.mrf.mxu0  ;;  %v1078_v38 = vmax.f32 %v876_v52, 0.0  ;;  %v1075_v25 = vmax.f32 %v861_v19, 0.0  ;;  %v786_v12 = vadd.f32 %v5365_v61, %v5175_v5  ;;  %v1062_v50 = vmax.f32 %v796_v60, 0.0 }
 0x105   :  { %v881_v4 = vadd.f32 %v880_v55, %v5105_v15  ;;  %323 = vperm.xlu1 %4468, %v5508_v14   ;;  %v5519_v11 = vpop.permute.xlu1 %1876  ;;  %v1080_v30 = vmax.f32 %v886_v47, 0.0  ;;  %v781_v55 = vadd.f32 %v5367_v62, %v5178_v13  ;;  %v1152_v42 = vpack.c.bf16 %v1064_v54, %v1063_v35 }
 0x106   :  { %v5528_v34 = vpop.permute.xlu0 %1872  ;;  %v851_v47 = vadd.f32 %v850_v53, %v5192_v20  ;;  %v1159_v9 = vpack.c.bf16 %v1078_v38, %v1077_v27  ;;  %v1076_v57 = vmax.f32 %v866_v36, 0.0  ;;  %v771_v13 = vadd.f32 %v5354_v46, %v5206_v21 }
 0x107   :  { %6898 = vst [vmem:[#allocation47_spill] sm:$0xff] %v5528_v34  ;;  %v1079_v15 = vmax.f32 %v881_v4, 0.0  ;;  %v1061_v34 = vmax.f32 %v791_v1, 0.0  ;;  %v1059_v1 = vmax.f32 %v781_v55, 0.0  ;;  %v841_v53 = vadd.f32 %v5466_v7, %v5220_v28 }
 0x108   :  { %v1073_v62 = vmax.f32 %v851_v47, 0.0  ;;  %v1158_v5 = vpack.c.bf16 %v1076_v57, %v1075_v25  ;;  %v776_v61 = vadd.f32 %v5349_v8, %v5203_v17  ;;  %v1060_v16 = vmax.f32 %v786_v12, 0.0  ;;  %v6913_v57 = vld [vmem:[#allocation12_spill] sm:$0xff] }
 0x109   :  { %v1160_v48 = vpack.c.bf16 %v1080_v30, %v1079_v15  ;;  %393 = vperm.xlu1 %4468, %v5526_v23   ;;  %v5535_v0 = vpop.permute.xlu1 %1812  ;;  %v1151_v35 = vpack.c.bf16 %v1062_v50, %v1061_v34  ;;  %v1074_v4 = vmax.f32 %v856_v63, 0.0  ;;  %v1057_v46 = vmax.f32 %v771_v13, 0.0 }
 0x10a   :  { %v5539_v40 = vpop.permute.xlu0 %1868  ;;  %v1150_v34 = vpack.c.bf16 %v1060_v16, %v1059_v1  ;;  %v831_v28 = vadd.f32 %v5449_v3, %v5244_v32  ;;  %v1071_v7 = vmax.f32 %v841_v53, 0.0  ;;  %v1058_v30 = vmax.f32 %v776_v61, 0.0  ;;  %v4479_v1 = vld [vmem:[%s6830_s2 + $0x14] ss:$8 sps:$4 sm:$0xff]   ;;  %v4481_v61 = vld [vmem:[%s6830_s2 + $0x10] ss:$8 sps:$4 sm:$0xff]  }
 0x10b   :  { %6899 = vst [vmem:[#allocation48_spill] sm:$0xff] %v5539_v40  ;;  %3834 = vmatprep.subr.bf16.mxu1 %v1160_v48  ;;  %v1157_v27 = vpack.c.bf16 %v1074_v4, %v1073_v62  ;;  %v836_v17 = vadd.f32 %v5442_v43, %v5241_v2  ;;  %v1072_v8 = vmax.f32 %v846_v49, 0.0  ;;  %v821_v32 = vadd.f32 %v5432_v31, %v5259_v37  ;;  %v4482_v16 = vld [vmem:[%s6830_s2 + $0x24] ss:$8 sps:$4 sm:$0xff]  }
 0x10c   :  { %3835 = vmatpush3.bf16.msra.mxu1 %v1152_v42  ;;  %v1149_v15 = vpack.c.bf16 %v1058_v30, %v1057_v46  ;;  %v1069_v3 = vmax.f32 %v831_v28, 0.0  ;;  %v756_v36 = vadd.f32 %v5320_v51, %v5250_v6  ;;  %v826_v2 = vadd.f32 %v5425_v26, %v5256_v33  ;;  %v4484_v28 = vld [vmem:[%s6830_s2 + $0x20] ss:$8 sps:$4 sm:$0xff]  }
 0x10d   :  { %3836 = vmatprep.subr.bf16.mxu1 %v1159_v9  ;;  %v5545_v52 = vpop.permute.xlu1 %1808  ;;  %v1156_v54 = vpack.c.bf16 %v1072_v8, %v1071_v7  ;;  %v1070_v43 = vmax.f32 %v836_v17, 0.0  ;;  %v811_v48 = vadd.f32 %v5415_v59, %v5267_v18  ;;  %v1067_v37 = vmax.f32 %v821_v32, 0.0  ;;  %v6910_v59 = vld [vmem:[#allocation6_spill] sm:$0xff]  ;;  %v4485_v7 = vld [vmem:[%s6830_s2 + $0x34] ss:$8 sps:$4 sm:$0xff]   ;;  %v4421_v8 = vpop.f32.mrf.mxu1  ;;  %v6987_v40 = vld [vmem:[#allocation3_spill] sm:$0xff] }
 0x10e   :  { %6900 = vst [vmem:[#allocation49_spill] sm:$0xff] %v5545_v52  ;;  %v5549_v20 = vpop.permute.xlu0 %1864  ;;  %v1054_v55 = vmax.f32 %v756_v36, 0.0  ;;  %v816_v6 = vadd.f32 %v5408_v39, %v5264_v44  ;;  %v1068_v51 = vmax.f32 %v826_v2, 0.0  ;;  %v731_v26 = vadd.f32 %v5302_v22, %v5273_v45 }
 0x10f   :  { %6901 = vst [vmem:[#allocation50_spill] sm:$0xff] %v5549_v20  ;;  %v1155_v31 = vpack.c.bf16 %v1070_v43, %v1069_v3  ;;  %v1065_v25 = vmax.f32 %v811_v48, 0.0  ;;  %v736_v9 = vadd.f32 %v6910_v59, %v5271_v41  ;;  %v4476_v41 = vld [vmem:[%s6830_s2] ss:$8 sps:$4 sm:$0xff]   ;;  %v940_v32 = vpop.f32.mrf.mxu1  ;;  %v4488_v3 = vld [vmem:[%s6830_s2 + $0x44] ss:$8 sps:$4 sm:$0xff]  }
 0x110   :  { %3837 = vmatpush3.bf16.msra.mxu1 %v1151_v35  ;;  %v1147_v42 = vpack.c.bf16 %v1054_v55, %v1053_v10  ;;  %v1154_v18 = vpack.c.bf16 %v1068_v51, %v1067_v37  ;;  %v1049_v44 = vmax.f32 %v731_v26, 0.0  ;;  %v4490_v48 = vld [vmem:[%s6830_s2 + $0x40] ss:$8 sps:$4 sm:$0xff]   ;;  %v4491_v55 = vld [vmem:[%s6830_s2 + $0x54] ss:$8 sps:$4 sm:$0xff]  }
 0x111   :  { %3838 = vmatprep.subr.bf16.mxu1 %v1158_v5  ;;  %v5557_v21 = vpop.permute.xlu1 %1804  ;;  %v1050_v63 = vmax.f32 %v736_v9, 0.0  ;;  %v6986_v20 = vld [vmem:[#allocation8_spill] sm:$0xff] }
 0x112   :  { %6902 = vst [vmem:[#allocation51_spill] sm:$0xff] %v5557_v21  ;;  %v5559_v19 = vpop.permute.xlu0 %1860 }
 0x113   :  { %6903 = vst [vmem:[#allocation52_spill] sm:$0xff] %v5559_v19  ;;  %v1145_v22 = vpack.c.bf16 %v1050_v63, %v1049_v44  ;;  %v4493_v44 = vld [vmem:[%s6830_s2 + $0x50] ss:$8 sps:$4 sm:$0xff]  }
 0x114   :  { %3839 = vmatpush3.bf16.msra.mxu1 %v1150_v34 }
 0x115   :  { %3840 = vmatprep.subr.bf16.mxu1 %v1157_v27  ;;  %v5565_v24 = vpop.permute.xlu1 %1800 }
 0x116   :  { %6904 = vst [vmem:[#allocation53_spill] sm:$0xff] %v5565_v24  ;;  %v5569_v60 = vpop.permute.xlu0 %1856 }
 0x117   :  { %6905 = vst [vmem:[#allocation54_spill] sm:$0xff] %v5569_v60 }
 0x118   :  { %3841 = vmatpush3.bf16.msra.mxu1 %v1149_v15 }
 0x119   :  { %3842 = vmatprep.subr.bf16.mxu1 %v1156_v54  ;;  %v5577_v38 = vpop.permute.xlu1 %1796  ;;  %v5651_v54 = vpop.f32.mrf.mxu1 }
 0x11a   :  { %6906 = vst [vmem:[#allocation55_spill] sm:$0xff] %v5577_v38  ;;  %v5579_v58 = vpop.permute.xlu0 %1852  ;;  %6928 = vst [vmem:[#allocation73_spill] sm:$0xff] %v5651_v54  ;;  %v6985_v38 = vld [vmem:[#allocation35_spill] sm:$0xff] }
 0x11b   :  { %6907 = vst [vmem:[#allocation56_spill] sm:$0xff] %v5579_v58  ;;  %v5655_v43 = vpop.f32.mrf.mxu1 }
 0x11c   :  { %3843 = vmatpush3.bf16.msra.mxu1 %v5361_v29  ;;  %v1066_v29 = vmax.f32 %v816_v6, 0.0  ;;  %6930 = vst [vmem:[#allocation75_spill] sm:$0xff] %v5655_v43 }
 0x11d   :  { %3844 = vmatprep.subr.bf16.mxu1 %v1155_v31  ;;  %v5586_v33 = vpop.permute.xlu1 %1792  ;;  %v4427_v10 = vpop.f32.mrf.mxu1 }
 0x11e   :  { %6908 = vst [vmem:[#allocation57_spill] sm:$0xff] %v5586_v33  ;;  %v5590_v47 = vpop.permute.xlu0 %1848  ;;  %v1153_v50 = vpack.c.bf16 %v1066_v29, %v1065_v25 }
 0x11f   :  { %6909 = vst [vmem:[#allocation58_spill] sm:$0xff] %v5590_v47  ;;  %v960_v6 = vpop.f32.mrf.mxu1 }
 0x120   :  { %3845 = vmatpush3.bf16.msra.mxu1 %v1147_v42 }
 0x121   :  { %3846 = vmatprep.subr.bf16.mxu1 %v1154_v18  ;;  %v5594_v12 = vpop.permute.xlu1 %1788  ;;  %v5667_v26 = vpop.f32.mrf.mxu1 }
 0x122   :  { %6911 = vst [vmem:[#allocation6_spill] sm:$0xff] %v5594_v12  ;;  %v5596_v39 = vpop.permute.xlu0 %1844  ;;  %6933 = vst [vmem:[#allocation78_spill] sm:$0xff] %v5667_v26 }
 0x123   :  { %6912 = vst [vmem:[#allocation59_spill] sm:$0xff] %v5596_v39  ;;  %v5669_v18 = vpop.f32.mrf.mxu1 }
 0x124   :  { %3847 = vmatpush3.bf16.msra.mxu1 %v6913_v57  ;;  %6934 = vst [vmem:[#allocation79_spill] sm:$0xff] %v5669_v18  ;;  %v4494_v57 = vld [vmem:[%s6830_s2 + $0x64] ss:$8 sps:$4 sm:$0xff]  }
 0x125   :  { %3848 = vmatprep.subr.bf16.mxu1 %v1153_v50  ;;  %v5599_v45 = vpop.permute.xlu1 %1784  ;;  %v4500_v18 = vld [vmem:[%s6830_s2 + $0x84] ss:$8 sps:$4 sm:$0xff]  }
 0x126   :  { %6914 = vst [vmem:[#allocation12_spill] sm:$0xff] %v5599_v45  ;;  %v5601_v13 = vpop.permute.xlu0 %1840  ;;  %v5972_v45 = vld [vmem:[%s6829_s4 + $0x1c8] sm:$0xff] }
 0x127   :  { %6915 = vst [vmem:[#allocation60_spill] sm:$0xff] %v5601_v13  ;;  %v5965_v13 = vld [vmem:[%s6829_s4 + $0x158] sm:$0xff] }
 0x128   :  { %3849 = vmatpush3.bf16.msra.mxu1 %v1145_v22 }
 0x129   :  { %v5609_v35 = vpop.permute.xlu1 %1780 }
 0x12a   :  { %6916 = vst [vmem:[#allocation61_spill] sm:$0xff] %v5609_v35  ;;  %v5611_v53 = vpop.permute.xlu0 %1836 }
 0x12b   :  { %6917 = vst [vmem:[#allocation62_spill] sm:$0xff] %v5611_v53  ;;  %1546 = vmatmul.mubr.bf16.vlgmr.msra.gmra.mxu1 %v4476_v41 }
 0x12c   :  { %1553 = vmatprep.mubr.bf16.mxu1 %v4479_v1 }
 0x12d   :  { %v5613_v62 = vpop.permute.xlu1 %1776 }
 0x12e   :  { %6918 = vst [vmem:[#allocation63_spill] sm:$0xff] %v5613_v62  ;;  %v5615_v5 = vpop.permute.xlu0 %1832 }
 0x12f   :  { %6919 = vst [vmem:[#allocation64_spill] sm:$0xff] %v5615_v5 }
 0x131   :  { %v5623_v49 = vpop.permute.xlu1 %1772 }
 0x132   :  { %6920 = vst [vmem:[#allocation65_spill] sm:$0xff] %v5623_v49  ;;  %v5625_v4 = vpop.permute.xlu0 %1828  ;;  %v5958_v49 = vld [vmem:[%s6829_s4 + $0x1d8] sm:$0xff] }
 0x133   :  { %6921 = vst [vmem:[#allocation66_spill] sm:$0xff] %v5625_v4  ;;  %1554 = vmatmul.mubr.bf16.gmra.mxu1 %v4481_v61  ;;  %v6981_v4 = vld [vmem:[#allocation23_spill] sm:$0xff] }
 0x134   :  { %1561 = vmatprep.mubr.bf16.mxu1 %v4482_v16 }
 0x135   :  { %v5627_v46 = vpop.permute.xlu1 %1768 }
 0x136   :  { %6922 = vst [vmem:[#allocation67_spill] sm:$0xff] %v5627_v46  ;;  %v5629_v34 = vpop.permute.xlu0 %1824 }
 0x137   :  { %6923 = vst [vmem:[#allocation68_spill] sm:$0xff] %v5629_v34 }
 0x139   :  { %v5637_v27 = vpop.permute.xlu1 %1764 }
 0x13a   :  { %6924 = vst [vmem:[#allocation69_spill] sm:$0xff] %v5637_v27  ;;  %v5639_v30 = vpop.permute.xlu0 %1756  ;;  %v5951_v27 = vld [vmem:[%s6829_s4 + $0x168] sm:$0xff] }
 0x13b   :  { %6925 = vst [vmem:[#allocation70_spill] sm:$0xff] %v5639_v30  ;;  %1562 = vmatmul.mubr.bf16.gmra.mxu1 %v4484_v28  ;;  %v6969_v30 = vld [vmem:[#allocation14_spill] sm:$0xff] }
 0x13c   :  { %1569 = vmatprep.mubr.bf16.mxu1 %v4485_v7 }
 0x13d   :  { %v5641_v17 = vpop.permute.xlu1 %1760 }
 0x13e   :  { %6926 = vst [vmem:[#allocation71_spill] sm:$0xff] %v5641_v17 }
 0x13f   :  { %v5646_v15 = vpop.permute.xlu0 %463 }
 0x140   :  { %6927 = vst [vmem:[#allocation72_spill] sm:$0xff] %v5646_v15  ;;  %v6980_v15 = vld [vmem:[#allocation20_spill] sm:$0xff] }
 0x142   :  { %v5653_v36 = vpop.permute.xlu1 %468 }
 0x143   :  { %6929 = vst [vmem:[#allocation74_spill] sm:$0xff] %v5653_v36  ;;  %1570 = vmatmul.mubr.bf16.gmra.mxu1 %v4487_v56  ;;  %v384_v2 = vpop.permute.xlu0 %383 }
 0x144   :  { %1577 = vmatprep.mubr.bf16.mxu1 %v4488_v3  ;;  %v961_v51 = vadd.f32 %v960_v6, %v384_v2  ;;  %v4496_v3 = vld [vmem:[%s6830_s2 + $0x60] ss:$8 sps:$4 sm:$0xff]   ;;  %v4497_v2 = vld [vmem:[%s6830_s2 + $0x74] ss:$8 sps:$4 sm:$0xff]  }
 0x146   :  { %v1095_v9 = vmax.f32 %v961_v51, 0.0 }
 0x147   :  { %v5660_v37 = vpop.permute.xlu1 %1820  ;;  %v5662_v31 = vpop.permute.xlu0 %373 }
 0x148   :  { %6931 = vst [vmem:[#allocation76_spill] sm:$0xff] %v5660_v37  ;;  %6932 = vst [vmem:[#allocation77_spill] sm:$0xff] %v5662_v31 }
 0x149   :  { %v5671_v29 = vpop.f32.mrf.mxu1 }
 0x14b   :  { %1578 = vmatmul.mubr.bf16.gmra.mxu1 %v4490_v48  ;;  %v449_v42 = vpop.permute.xlu0 %448  ;;  %v5681_v41 = vpop.f32.mrf.mxu1 }
 0x14c   :  { %1585 = vmatprep.mubr.bf16.mxu1 %v4491_v55  ;;  %v389_v25 = vpop.permute.xlu1 %388 }
 0x14d   :  { %v966_v59 = vadd.f32 %v4427_v10, %v389_v25  ;;  %v5685_v61 = vpop.f32.mrf.mxu1 }
 0x14e   :  { %6937 = vst [vmem:[#allocation82_spill] sm:$0xff] %v5685_v61 }
 0x14f   :  { %v369_v50 = vpop.permute.xlu0 %368  ;;  %v1096_v63 = vmax.f32 %v966_v59, 0.0  ;;  %v5691_v7 = vpop.f32.mrf.mxu1 }
 0x150   :  { %v5679_v22 = vpop.permute.xlu1 %453  ;;  %6940 = vst [vmem:[#allocation85_spill] sm:$0xff] %v5691_v7  ;;  %v946_v59 = vadd.f32 %v4421_v8, %v369_v50 }
 0x151   :  { %6935 = vst [vmem:[#allocation80_spill] sm:$0xff] %v5679_v22  ;;  %v5683_v1 = vpack.c.bf16 %v1096_v63, %v1095_v9  ;;  %v4439_v56 = vpop.f32.mrf.mxu1 }
 0x152   :  { %v1092_v61 = vmax.f32 %v946_v59, 0.0 }
 0x153   :  { %6936 = vst [vmem:[#allocation81_spill] sm:$0xff] %v5683_v1  ;;  %1586 = vmatmul.mubr.bf16.gmra.mxu1 %v4493_v44  ;;  %v5687_v16 = vpop.permute.xlu0 %438  ;;  %v1000_v48 = vpop.f32.mrf.mxu1  ;;  %v4499_v44 = vld [vmem:[%s6830_s2 + $0x70] ss:$8 sps:$4 sm:$0xff]  }
 0x154   :  { %6938 = vst [vmem:[#allocation83_spill] sm:$0xff] %v5687_v16  ;;  %1593 = vmatprep.mubr.bf16.mxu1 %v4494_v57  ;;  %v5689_v28 = vpop.permute.xlu1 %458 }
 0x155   :  { %6939 = vst [vmem:[#allocation84_spill] sm:$0xff] %v5689_v28  ;;  %v5703_v6 = vpop.f32.mrf.mxu1 }
 0x156   :  { %6943 = vst [vmem:[#allocation88_spill] sm:$0xff] %v5703_v6 }
 0x157   :  { %v5701_v55 = vpop.permute.xlu0 %358  ;;  %v5705_v25 = vpop.f32.mrf.mxu1 }
 0x158   :  { %v5699_v10 = vpop.permute.xlu1 %378  ;;  %6942 = vst [vmem:[#allocation87_spill] sm:$0xff] %v5701_v55  ;;  %6944 = vst [vmem:[#allocation89_spill] sm:$0xff] %v5705_v25 }
 0x159   :  { %6941 = vst [vmem:[#allocation86_spill] sm:$0xff] %v5699_v10  ;;  %v4445_v9 = vpop.f32.mrf.mxu1 }
 0x15a   :  { %v1026_v57 = vadd.f32 %v4445_v9, %v449_v42  ;;  %v4502_v9 = vld [vmem:[%s6830_s2 + $0x80] ss:$8 sps:$4 sm:$0xff]  }
 0x15b   :  { %1594 = vmatmul.mubr.bf16.gmra.mxu1 %v4496_v3  ;;  %v429_v63 = vpop.permute.xlu0 %428  ;;  %v1020_v7 = vpop.f32.mrf.mxu1 }
 0x15c   :  { %1601 = vmatprep.mubr.bf16.mxu1 %v4497_v2  ;;  %v444_v51 = vpop.permute.xlu1 %443  ;;  %v1108_v2 = vmax.f32 %v1026_v57, 0.0 }
 0x15d   :  { %v1021_v55 = vadd.f32 %v1020_v7, %v444_v51  ;;  %v1006_v7 = vadd.f32 %v4439_v56, %v429_v63  ;;  %v4505_v51 = vld [vmem:[%s6830_s2 + $0x90] ss:$8 sps:$4 sm:$0xff]  }
 0x15f   :  { %v1107_v8 = vmax.f32 %v1021_v55, 0.0  ;;  %v5719_v42 = vpop.permute.xlu0 %348 }
 0x160   :  { %v364_v26 = vpop.permute.xlu1 %363 }
 0x161   :  { %v941_v3 = vadd.f32 %v940_v32, %v364_v26  ;;  %v5717_v6 = vpack.c.bf16 %v1108_v2, %v1107_v8  ;;  %v4503_v32 = vld [vmem:[%s6830_s2 + $0x94] ss:$8 sps:$4 sm:$0xff]  }
 0x162   :  { %v4509_v2 = vld [vmem:[%s6830_s2 + $0xb4] ss:$8 sps:$4 sm:$0xff]  }
 0x163   :  { %1602 = vmatmul.mubr.bf16.gmra.mxu1 %v4499_v44  ;;  %v1091_v1 = vmax.f32 %v941_v3, 0.0  ;;  %6947 = vst [vmem:[#allocation92_spill] sm:$0xff] %v5717_v6  ;;  %v4506_v44 = vld [vmem:[%s6830_s2 + $0xa4] ss:$8 sps:$4 sm:$0xff]  }
 0x164   :  { %1609 = vmatprep.mubr.bf16.mxu1 %v4500_v18  ;;  %v5713_v50 = vpop.permute.xlu1 %433 }
 0x165   :  { %6945 = vst [vmem:[#allocation90_spill] sm:$0xff] %v5713_v50  ;;  %v5715_v25 = vpack.c.bf16 %v1092_v61, %v1091_v1  ;;  %v5729_v1 = vpop.permute.xlu0 %418  ;;  %v1104_v61 = vmax.f32 %v1006_v7, 0.0  ;;  %v53_v50 = vld [vmem:[%s6828_s1 + $0x100] sm:$0xff] }
 0x166   :  { %6949 = vst [vmem:[#allocation94_spill] sm:$0xff] %v5729_v1  ;;  %4404 = vmatprep.mubr.msk.f32.mxu0 %vm471_vm0, %v53_v50 }
 0x167   :  { %6946 = vst [vmem:[#allocation91_spill] sm:$0xff] %v5715_v25 }
 0x168   :  { %v5727_v26 = vpop.permute.xlu1 %353 }
 0x169   :  { %6948 = vst [vmem:[#allocation93_spill] sm:$0xff] %v5727_v26  ;;  %v5741_v56 = vpop.permute.xlu0 %338 }
 0x16a   :  { %6951 = vst [vmem:[#allocation96_spill] sm:$0xff] %v5741_v56 }
 0x16b   :  { %1610 = vmatmul.mubr.bf16.gmra.mxu1 %v4502_v9 }
 0x16c   :  { %1617 = vmatprep.mubr.bf16.mxu1 %v4503_v32  ;;  %v424_v18 = vpop.permute.xlu1 %423 }
 0x16d   :  { %v1001_v55 = vadd.f32 %v1000_v48, %v424_v18  ;;  %v4508_v48 = vld [vmem:[%s6830_s2 + $0xa0] ss:$8 sps:$4 sm:$0xff]   ;;  %v409_v9 = vpop.permute.xlu0 %408 }
 0x16e   :  { %v986_v32 = vadd.f32 %v5671_v29, %v409_v9  ;;  %v4514_v29 = vld [vmem:[%s6830_s2 + $0xc0] ss:$8 sps:$4 sm:$0xff]  }
 0x16f   :  { %v1103_v59 = vmax.f32 %v1001_v55, 0.0  ;;  %v4511_v55 = vld [vmem:[%s6830_s2 + $0xb0] ss:$8 sps:$4 sm:$0xff]   ;;  %v4520_v9 = vld [vmem:[%s6830_s2 + $0xe0] ss:$8 sps:$4 sm:$0xff]  }
 0x170   :  { %v5737_v57 = vpop.permute.xlu1 %343  ;;  %v1100_v18 = vmax.f32 %v986_v32, 0.0  ;;  %v4521_v32 = vld [vmem:[%s6830_s2 + $0xf4] ss:$8 sps:$4 sm:$0xff]  }
 0x171   :  { %v5739_v3 = vpack.c.bf16 %v1104_v61, %v1103_v59  ;;  %v4512_v59 = vld [vmem:[%s6830_s2 + $0xc4] ss:$8 sps:$4 sm:$0xff]  }
 0x173   :  { %6950 = vst [vmem:[#allocation95_spill] sm:$0xff] %v5739_v3  ;;  %1618 = vmatmul.mubr.bf16.gmra.mxu1 %v4505_v51 }
 0x174   :  { %1625 = vmatprep.mubr.bf16.mxu1 %v4506_v44  ;;  %v5743_v63 = vpop.permute.xlu1 %413 }
 0x175   :  { %6952 = vst [vmem:[#allocation97_spill] sm:$0xff] %v5743_v63 }
 0x178   :  { %v5751_v8 = vpop.permute.xlu1 %333 }
 0x179   :  { %6953 = vst [vmem:[#allocation98_spill] sm:$0xff] %v5751_v8  ;;  %v6960_v8 = vld [vmem:[#allocation43_spill] sm:$0xff] }
 0x17b   :  { %1626 = vmatmul.mubr.bf16.gmra.mxu1 %v4508_v48  ;;  %v4517_v48 = vld [vmem:[%s6830_s2 + $0xd0] ss:$8 sps:$4 sm:$0xff]  }
 0x17c   :  { %1633 = vmatprep.mubr.bf16.mxu1 %v4509_v2  ;;  %v404_v7 = vpop.permute.xlu1 %403  ;;  %v4518_v2 = vld [vmem:[%s6830_s2 + $0xe4] ss:$8 sps:$4 sm:$0xff]  }
 0x17d   :  { %v981_v61 = vadd.f32 %v5681_v41, %v404_v7  ;;  %v4515_v41 = vld [vmem:[%s6830_s2 + $0xd4] ss:$8 sps:$4 sm:$0xff]   ;;  %v4523_v7 = vld [vmem:[%s6830_s2 + $0xf0] ss:$8 sps:$4 sm:$0xff]  }
 0x17f   :  { %v1099_v51 = vmax.f32 %v981_v61, 0.0 }
 0x181   :  { %v5761_v44 = vpack.c.bf16 %v1100_v18, %v1099_v51  ;;  %v5784_v18 = vpop.f32.mrf.mxu1 }
 0x182   :  { %6955 = vst [vmem:[#allocation100_spill] sm:$0xff] %v5784_v18 }
 0x183   :  { %6954 = vst [vmem:[#allocation99_spill] sm:$0xff] %v5761_v44  ;;  %1634 = vmatmul.mubr.bf16.gmra.mxu1 %v4511_v55  ;;  %v5786_v61 = vpop.f32.mrf.mxu1 }
 0x184   :  { %1641 = vmatprep.mubr.bf16.mxu1 %v4512_v59  ;;  %6956 = vst [vmem:[#allocation101_spill] sm:$0xff] %v5786_v61  ;;  %v6970_v61 = vld [vmem:[#allocation15_spill] sm:$0xff] }
 0x185   :  { %v5788_v55 = vpop.f32.mrf.mxu1 }
 0x186   :  { %6957 = vst [vmem:[#allocation102_spill] sm:$0xff] %v5788_v55 }
 0x187   :  { %v5790_v51 = vpop.f32.mrf.mxu1 }
 0x188   :  { %6958 = vst [vmem:[#allocation103_spill] sm:$0xff] %v5790_v51  ;;  %v5944_v51 = vld [vmem:[%s6829_s4 + $0x1e8] sm:$0xff] }
 0x18b   :  { %1642 = vmatmul.mubr.bf16.gmra.mxu1 %v4514_v29 }
 0x18c   :  { %1649 = vmatprep.mubr.bf16.mxu1 %v4515_v41 }
 0x193   :  { %1650 = vmatmul.mubr.bf16.gmra.mxu1 %v4517_v48 }
 0x194   :  { %1657 = vmatprep.mubr.bf16.mxu1 %v4518_v2 }
 0x19b   :  { %1658 = vmatmul.mubr.bf16.gmra.mxu1 %v4520_v9  ;;  %v6959_v9 = vld [vmem:[#allocation42_spill] sm:$0xff] }
 0x19c   :  { %1665 = vmatprep.mubr.bf16.mxu1 %v4521_v32 }
 0x1a3   :  { %1666 = vmatmul.mubr.bf16.gmra.mxu1 %v4523_v7 }
 0x1eb   :  { %v3850_v59 = vpop.f32.mrf.mxu1 }
 0x1ed   :  { %v3851_v29 = vpop.f32.mrf.mxu1 }
 0x1ee   :  { %v3852_v41 = vadd.f32 %v3851_v29, %v3850_v59  ;;  %v6961_v29 = vld [vmem:[#allocation36_spill] sm:$0xff] }
 0x1ef   :  { %v3853_v48 = vpop.f32.mrf.mxu1 }
 0x1f0   :  { %v1548_v32 = vadd.f32 %v3852_v41, %v6959_v9  ;;  %v56_v9 = vld [vmem:[%s6828_s1 + $0x118] sm:$0xff] }
 0x1f1   :  { %v3854_v2 = vpop.f32.mrf.mxu1 }
 0x1f2   :  { %v3855_v44 = vadd.f32 %v3854_v2, %v3853_v48  ;;  %v1674_v25 = vmax.f32 %v1548_v32, 0.0 }
 0x1f3   :  { %v3856_v3 = vpop.f32.mrf.mxu1 }
 0x1f4   :  { %v1551_v56 = vadd.f32 %v3855_v44, %v6960_v8  ;;  %v54_v8 = vld [vmem:[%s6828_s1 + $0x108] sm:$0xff] }
 0x1f5   :  { %v3857_v7 = vpop.f32.mrf.mxu1  ;;  %4405 = vmatmul.mubr.msk.f32.gmra.mxu0 %vm471_vm0, %v54_v8  ;;  %v58_v8 = vld [vmem:[%s6828_s1 + $0x128] sm:$0xff] }
 0x1f6   :  { %v1675_v63 = vmax.f32 %v1551_v56, 0.0  ;;  %v3858_v1 = vadd.f32 %v3857_v7, %v3856_v3  ;;  %v6962_v56 = vld [vmem:[#allocation37_spill] sm:$0xff]  ;;  %v57_v7 = vld [vmem:[%s6828_s1 + $0x120] sm:$0xff] }
 0x1f7   :  { %v3859_v6 = vpop.f32.mrf.mxu1 }
 0x1f8   :  { %v5794_v26 = vpack.c.bf16 %v1675_v63, %v1674_v25  ;;  %v1556_v41 = vadd.f32 %v3858_v1, %v6961_v29  ;;  %v55_v25 = vld [vmem:[%s6828_s1 + $0x110] sm:$0xff]  ;;  %v6963_v29 = vld [vmem:[#allocation30_spill] sm:$0xff] }
 0x1f9   :  { %v3860_v59 = vpop.f32.mrf.mxu1  ;;  %4407 = vmatprep.mubr.msk.f32.mxu0 %vm471_vm0, %v55_v25  ;;  %v59_v25 = vld [vmem:[%s6828_s1 + $0x130] sm:$0xff] }
 0x1fa   :  { %v3861_v48 = vadd.f32 %v3860_v59, %v3859_v6  ;;  %v1676_v50 = vmax.f32 %v1556_v41, 0.0  ;;  %4408 = vmatmul.mubr.msk.f32.gmra.mxu0 %vm471_vm0, %v56_v9  ;;  %v60_v9 = vld [vmem:[%s6828_s1 + $0x138] sm:$0xff] }
 0x1fb   :  { %v3862_v2 = vpop.f32.mrf.mxu1  ;;  %4410 = vmatprep.mubr.msk.f32.mxu0 %vm471_vm0, %v57_v7 }
 0x1fc   :  { %v1559_v3 = vadd.f32 %v3861_v48, %v6962_v56  ;;  %v6964_v56 = vld [vmem:[#allocation31_spill] sm:$0xff] }
 0x1fd   :  { %v3863_v63 = vpop.f32.mrf.mxu1 }
 0x1fe   :  { %v1677_v44 = vmax.f32 %v1559_v3, 0.0  ;;  %v3864_v1 = vadd.f32 %v3863_v63, %v3862_v2  ;;  %4411 = vmatmul.mubr.msk.f32.gmra.mxu0 %vm471_vm0, %v58_v8 }
 0x1ff   :  { %v3865_v6 = vpop.f32.mrf.mxu1  ;;  %4413 = vmatprep.mubr.msk.f32.mxu0 %vm471_vm0, %v59_v25 }
 0x200   :  { %v5813_v32 = vpack.c.bf16 %v1677_v44, %v1676_v50  ;;  %v1564_v41 = vadd.f32 %v3864_v1, %v6963_v29 }
 0x201   :  { %v3866_v59 = vpop.f32.mrf.mxu1 }
 0x202   :  { %v3867_v48 = vadd.f32 %v3866_v59, %v3865_v6  ;;  %v1678_v50 = vmax.f32 %v1564_v41, 0.0  ;;  %4414 = vmatmul.mubr.msk.f32.gmra.mxu0 %vm471_vm0, %v60_v9  ;;  %v61_v59 = vld [vmem:[%s6828_s1 + $0x140] sm:$0xff] }
 0x203   :  { %v3868_v2 = vpop.f32.mrf.mxu1  ;;  %4416 = vmatprep.mubr.msk.f32.mxu0 %vm471_vm0, %v61_v59  ;;  %v4526_v59 = vld [vmem:[%s6830_s2 + $0x104] ss:$8 sps:$4 sm:$0xff]  }
 0x204   :  { %v1567_v3 = vadd.f32 %v3867_v48, %v6964_v56  ;;  %v6965_v48 = vld [vmem:[#allocation24_spill] sm:$0xff]  ;;  %v62_v56 = vld [vmem:[%s6828_s1 + $0x148] sm:$0xff] }
 0x205   :  { %v3869_v63 = vpop.f32.mrf.mxu1 }
 0x206   :  { %v1679_v44 = vmax.f32 %v1567_v3, 0.0  ;;  %v3870_v1 = vadd.f32 %v3869_v63, %v3868_v2  ;;  %v6966_v3 = vld [vmem:[#allocation25_spill] sm:$0xff]  ;;  %4417 = vmatmul.mubr.msk.f32.gmra.mxu0 %vm471_vm0, %v62_v56 }
 0x207   :  { %v3871_v6 = vpop.f32.mrf.mxu1  ;;  %2075 = vmatprep.mubr.bf16.mxu0 %v4526_v59 }
 0x208   :  { %v5833_v7 = vpack.c.bf16 %v1679_v44, %v1678_v50  ;;  %v1572_v41 = vadd.f32 %v3870_v1, %v6965_v48 }
 0x209   :  { %v3872_v29 = vpop.f32.mrf.mxu1 }
 0x20a   :  { %v3873_v8 = vadd.f32 %v3872_v29, %v3871_v6  ;;  %v1680_v50 = vmax.f32 %v1572_v41, 0.0  ;;  %v6967_v29 = vld [vmem:[#allocation18_spill] sm:$0xff] }
 0x20b   :  { %v3874_v2 = vpop.f32.mrf.mxu1 }
 0x20c   :  { %v1575_v25 = vadd.f32 %v3873_v8, %v6966_v3  ;;  %v6968_v8 = vld [vmem:[#allocation19_spill] sm:$0xff] }
 0x20d   :  { %v3875_v63 = vpop.f32.mrf.mxu1 }
 0x20e   :  { %v1681_v44 = vmax.f32 %v1575_v25, 0.0  ;;  %v3876_v9 = vadd.f32 %v3875_v63, %v3874_v2 }
 0x20f   :  { %v3877_v16 = vpop.f32.mrf.mxu1 }
 0x210   :  { %v5849_v1 = vpack.c.bf16 %v1681_v44, %v1680_v50  ;;  %v1580_v48 = vadd.f32 %v3876_v9, %v6967_v29 }
 0x211   :  { %v3878_v6 = vpop.f32.mrf.mxu1 }
 0x212   :  { %v3879_v43 = vadd.f32 %v3878_v6, %v3877_v16  ;;  %v1682_v54 = vmax.f32 %v1580_v48, 0.0 }
 0x213   :  { %v3880_v31 = vpop.f32.mrf.mxu1 }
 0x214   :  { %v1583_v3 = vadd.f32 %v3879_v43, %v6968_v8  ;;  %v6971_v8 = vld [vmem:[#allocation9_spill] sm:$0xff] }
 0x215   :  { %v3881_v56 = vpop.f32.mrf.mxu1 }
 0x216   :  { %v1683_v41 = vmax.f32 %v1583_v3, 0.0  ;;  %v3882_v25 = vadd.f32 %v3881_v56, %v3880_v31  ;;  %v6972_v56 = vld [vmem:[#allocation10_spill] sm:$0xff] }
 0x217   :  { %v3883_v2 = vpop.f32.mrf.mxu1 }
 0x218   :  { %v5853_v63 = vpack.c.bf16 %v1683_v41, %v1682_v54  ;;  %v1588_v37 = vadd.f32 %v3882_v25, %v6969_v30 }
 0x219   :  { %v3884_v10 = vpop.f32.mrf.mxu1 }
 0x21a   :  { %v3885_v50 = vadd.f32 %v3884_v10, %v3883_v2  ;;  %v1684_v9 = vmax.f32 %v1588_v37, 0.0 }
 0x21b   :  { %v3886_v44 = vpop.f32.mrf.mxu1 }
 0x21c   :  { %v1591_v59 = vadd.f32 %v3885_v50, %v6970_v61  ;;  %v6973_v50 = vld [vmem:[#allocation4_spill] sm:$0xff] }
 0x21d   :  { %v3887_v22 = vpop.f32.mrf.mxu1 }
 0x21e   :  { %v1685_v16 = vmax.f32 %v1591_v59, 0.0  ;;  %v3888_v6 = vadd.f32 %v3887_v22, %v3886_v44 }
 0x21f   :  { %v3889_v29 = vpop.f32.mrf.mxu1 }
 0x220   :  { %v5857_v43 = vpack.c.bf16 %v1685_v16, %v1684_v9  ;;  %v1596_v31 = vadd.f32 %v3888_v6, %v6971_v8  ;;  %v6974_v9 = vld [vmem:[#allocation5_spill] sm:$0xff] }
 0x221   :  { %v3890_v48 = vpop.f32.mrf.mxu1 }
 0x222   :  { %v3891_v3 = vadd.f32 %v3890_v48, %v3889_v29  ;;  %v1686_v30 = vmax.f32 %v1596_v31, 0.0 }
 0x223   :  { %v3892_v54 = vpop.f32.mrf.mxu1 }
 0x224   :  { %v1599_v41 = vadd.f32 %v3891_v3, %v6972_v56  ;;  %v6975_v56 = vld [vmem:[#allocation39_spill] sm:$0xff] }
 0x225   :  { %v3893_v17 = vpop.f32.mrf.mxu1 }
 0x226   :  { %v1687_v10 = vmax.f32 %v1599_v41, 0.0  ;;  %v3894_v25 = vadd.f32 %v3893_v17, %v3892_v54 }
 0x227   :  { %v3895_v2 = vpop.f32.mrf.mxu1 }
 0x228   :  { %v5861_v61 = vpack.c.bf16 %v1687_v10, %v1686_v30  ;;  %v1604_v22 = vadd.f32 %v3894_v25, %v6973_v50  ;;  %v6976_v30 = vld [vmem:[#allocation40_spill] sm:$0xff] }
 0x229   :  { %v3896_v37 = vpop.f32.mrf.mxu1 }
 0x22a   :  { %v3897_v44 = vadd.f32 %v3896_v37, %v3895_v2  ;;  %v1688_v6 = vmax.f32 %v1604_v22, 0.0 }
 0x22b   :  { %v3898_v59 = vpop.f32.mrf.mxu1 }
 0x22c   :  { %v1607_v16 = vadd.f32 %v3897_v44, %v6974_v9  ;;  %v6977_v9 = vld [vmem:[#allocation33_spill] sm:$0xff] }
 0x22d   :  { %v3899_v18 = vpop.f32.mrf.mxu1 }
 0x22e   :  { %v1689_v29 = vmax.f32 %v1607_v16, 0.0  ;;  %v3900_v48 = vadd.f32 %v3899_v18, %v3898_v59 }
 0x22f   :  { %v3901_v8 = vpop.f32.mrf.mxu1 }
 0x230   :  { %v5865_v3 = vpack.c.bf16 %v1689_v29, %v1688_v6  ;;  %v1612_v17 = vadd.f32 %v3900_v48, %v6975_v56  ;;  %v6978_v6 = vld [vmem:[#allocation34_spill] sm:$0xff] }
 0x231   :  { %v3902_v31 = vpop.f32.mrf.mxu1 }
 0x232   :  { %v3903_v54 = vadd.f32 %v3902_v31, %v3901_v8  ;;  %v1690_v25 = vmax.f32 %v1612_v17, 0.0 }
 0x233   :  { %v3904_v41 = vpop.f32.mrf.mxu1 }
 0x234   :  { %v1615_v10 = vadd.f32 %v3903_v54, %v6976_v30  ;;  %v5886_v54 = vld [vmem:[%s6829_s4 + $0x100] sm:$0xff] }
 0x235   :  { %v3905_v28 = vpop.f32.mrf.mxu1  ;;  %313 = vperm.xlu1 %4468, %v5886_v54  }
 0x236   :  { %v1691_v2 = vmax.f32 %v1615_v10, 0.0  ;;  %v3906_v37 = vadd.f32 %v3905_v28, %v3904_v41  ;;  %v5891_v41 = vld [vmem:[%s6829_s4 + $0x108] sm:$0xff] }
 0x237   :  { %v3907_v50 = vpop.f32.mrf.mxu1  ;;  %318 = vperm.xlu0 %4469, %v5891_v41  }
 0x238   :  { %v5869_v44 = vpack.c.bf16 %v1691_v2, %v1690_v25  ;;  %v1620_v18 = vadd.f32 %v3906_v37, %v6977_v9  ;;  %v6979_v2 = vmov 1   ;;  %v5906_v37 = vld [vmem:[%s6829_s4 + $0x1f0] sm:$0xff] }
 0x239   :  { %v3908_v22 = vpop.f32.mrf.mxu1  ;;  %4470 = vset.pattern.permute.xlu1 %v6979_v2 }
 0x23a   :  { %v3909_v59 = vadd.f32 %v3908_v22, %v3907_v50  ;;  %v1692_v8 = vmax.f32 %v1620_v18, 0.0  ;;  %2494 = vperm.xlu1 %4470, %v5906_v37   ;;  %v5912_v50 = vld [vmem:[%s6829_s4 + $0x1f8] sm:$0xff]  ;;  %v5920_v18 = vld [vmem:[%s6829_s4 + $0x170] sm:$0xff] }
 0x23b   :  { %v5872_v16 = vpop.f32.mrf.mxu1  ;;  %4471 = vset.pattern.permute.xlu0 %v6979_v2 }
 0x23c   :  { %v1623_v29 = vadd.f32 %v3909_v59, %v6978_v6  ;;  %2498 = vperm.xlu0 %4471, %v5912_v50   ;;  %v5926_v59 = vld [vmem:[%s6829_s4 + $0x1e0] sm:$0xff] }
 0x23d   :  { %v5875_v48 = vpop.f32.mrf.mxu1 }
 0x23e   :  { %v1693_v31 = vmax.f32 %v1623_v29, 0.0  ;;  %2430 = vperm.xlu1 %4470, %v5920_v18  }
 0x23f   :  { %v5877_v56 = vpop.f32.mrf.mxu1 }
 0x240   :  { %v5879_v17 = vpack.c.bf16 %v1693_v31, %v1692_v8  ;;  %2486 = vperm.xlu0 %4471, %v5926_v59   ;;  %v5932_v8 = vld [vmem:[%s6829_s4 + $0x178] sm:$0xff]  ;;  %v5938_v31 = vld [vmem:[%s6829_s4 + $0x160] sm:$0xff] }
 0x241   :  { %v5881_v28 = vpop.f32.mrf.mxu1 }
 0x242   :  { %2434 = vperm.xlu1 %4470, %v5932_v8  }
 0x243   :  { %v5893_v30 = vpop.f32.mrf.mxu1 }
 0x244   :  { %2422 = vperm.xlu0 %4471, %v5938_v31  }
 0x245   :  { %v5897_v10 = vpop.f32.mrf.mxu1 }
 0x246   :  { %2490 = vperm.xlu1 %4470, %v5944_v51  }
 0x247   :  { %v5899_v25 = vpop.f32.mrf.mxu1 }
 0x248   :  { %2478 = vperm.xlu0 %4471, %v6980_v15   ;;  %v6982_v15 = vld [vmem:[#allocation26_spill] sm:$0xff] }
 0x249   :  { %v5915_v22 = vpop.f32.mrf.mxu1 }
 0x24a   :  { %2426 = vperm.xlu1 %4470, %v5951_v27  }
 0x24b   :  { %v3922_v9 = vpop.f32.mrf.mxu1 }
 0x24c   :  { %2414 = vperm.xlu0 %4471, %v6981_v4   ;;  %v6983_v4 = vld [vmem:[#allocation29_spill] sm:$0xff] }
 0x24d   :  { %v3923_v6 = vpop.f32.mrf.mxu1 }
 0x24e   :  { %2482 = vperm.xlu1 %4470, %v5958_v49  }
 0x24f   :  { %v3925_v29 = vpop.f32.mrf.mxu1 }
 0x250   :  { %2470 = vperm.xlu0 %4471, %v6982_v15   ;;  %v6984_v15 = vld [vmem:[#allocation32_spill] sm:$0xff] }
 0x251   :  { %v3926_v2 = vpop.f32.mrf.mxu1 }
 0x252   :  { %2418 = vperm.xlu1 %4470, %v5965_v13  }
 0x253   :  { %v3928_v34 = vpop.f32.mrf.mxu1 }
 0x254   :  { %2406 = vperm.xlu0 %4471, %v6983_v4   ;;  %v5979_v4 = vld [vmem:[%s6829_s4 + $0x148] sm:$0xff] }
 0x255   :  { %v3929_v55 = vpop.f32.mrf.mxu1 }
 0x256   :  { %2474 = vperm.xlu1 %4470, %v5972_v45  }
 0x257   :  { %v3931_v36 = vpop.f32.mrf.mxu1 }
 0x258   :  { %2462 = vperm.xlu0 %4471, %v6984_v15  }
 0x259   :  { %v3932_v46 = vpop.f32.mrf.mxu1 }
 0x25a   :  { %2410 = vperm.xlu1 %4470, %v5979_v4   ;;  %v3933_v24 = vadd.f32 %v3932_v46, %v3931_v36  ;;  %v3927_v46 = vadd.f32 %v3926_v2, %v3925_v29  ;;  %v6991_v36 = vld [vmem:[#allocation13_spill] sm:$0xff] }
 0x25b   :  { %v3934_v5 = vpop.f32.mrf.mxu1 }
 0x25c   :  { %2398 = vperm.xlu0 %4471, %v6985_v38   ;;  %v6990_v38 = vld [vmem:[#allocation38_spill] sm:$0xff] }
 0x25d   :  { %v3935_v53 = vpop.f32.mrf.mxu1 }
 0x25e   :  { %v3936_v60 = vadd.f32 %v3935_v53, %v3934_v5  ;;  %v6989_v53 = vld [vmem:[#allocation2_spill] sm:$0xff]  ;;  %v5990_v5 = vld [vmem:[%s6829_s4 + $0x1b8] sm:$0xff] }
 0x25f   :  { %v3937_v62 = vpop.f32.mrf.mxu1  ;;  %2466 = vperm.xlu1 %4470, %v5990_v5  }
 0x260   :  { %2454 = vperm.xlu0 %4471, %v6990_v38  }
 0x261   :  { %v3938_v35 = vpop.f32.mrf.mxu1 }
 0x262   :  { %v3939_v12 = vadd.f32 %v3938_v35, %v3937_v62  ;;  %v3930_v35 = vadd.f32 %v3929_v55, %v3928_v34  ;;  %v5999_v55 = vld [vmem:[%s6829_s4 + $0x138] sm:$0xff] }
 0x263   :  { %v3940_v39 = vpop.f32.mrf.mxu1  ;;  %2402 = vperm.xlu1 %4470, %v5999_v55  }
 0x264   :  { %v1663_v21 = vadd.f32 %v3939_v12, %v6986_v20  ;;  %v1655_v20 = vadd.f32 %v3933_v24, %v6991_v36  ;;  %v3921_v24 = vadd.f32 %v5915_v22, %v5899_v25  ;;  %v6996_v25 = vld [vmem:[#allocation44_spill] sm:$0xff]  ;;  %v3915_v22 = vadd.f32 %v5881_v28, %v5877_v56 }
 0x265   :  { %v3941_v47 = vpop.f32.mrf.mxu1  ;;  %v6999_v56 = vld [vmem:[#allocation28_spill] sm:$0xff] }
 0x266   :  { %v3942_v58 = vadd.f32 %v3941_v47, %v3940_v39  ;;  %v6988_v47 = vld [vmem:[#allocation7_spill] sm:$0xff]  ;;  %v1703_v12 = vmax.f32 %v1663_v21, 0.0  ;;  %v6994_v21 = vld [vmem:[#allocation17_spill] sm:$0xff]  ;;  %v1701_v2 = vmax.f32 %v1655_v20, 0.0  ;;  %v1631_v28 = vadd.f32 %v3915_v22, %v6999_v56 }
 0x267   :  { %v3943_v33 = vpop.f32.mrf.mxu1  ;;  %v1660_v39 = vadd.f32 %v3936_v60, %v6988_v47  ;;  %v6993_v47 = vld [vmem:[#allocation41_spill] sm:$0xff]  ;;  %v1647_v29 = vadd.f32 %v3927_v46, %v6994_v21  ;;  %v4550_v56 = vld [vmem:[%s6830_s2 + $0x180] ss:$8 sps:$4 sm:$0xff]  }
 0x268   :  { %v1668_v15 = vadd.f32 %v3942_v58, %v6987_v40  ;;  %v3924_v58 = vadd.f32 %v3923_v6, %v3922_v9  ;;  %2390 = vperm.xlu0 %4471, %v6993_v47   ;;  %v3918_v6 = vadd.f32 %v5897_v10, %v5893_v30  ;;  %v3912_v10 = vadd.f32 %v5875_v48, %v5872_v16  ;;  %v6998_v46 = vld [vmem:[#allocation21_spill] sm:$0xff]  ;;  %v7000_v16 = vld [vmem:[#allocation27_spill] sm:$0xff] }
 0x269   :  { %v3944_v19 = vpop.f32.mrf.mxu1  ;;  %v1702_v34 = vmax.f32 %v1660_v39, 0.0  ;;  %v1699_v38 = vmax.f32 %v1647_v29, 0.0  ;;  %v4545_v21 = vld [vmem:[%s6830_s2 + $0x174] ss:$8 sps:$4 sm:$0xff]   ;;  %v4547_v22 = vld [vmem:[%s6830_s2 + $0x170] ss:$8 sps:$4 sm:$0xff]  }
 0x26a   :  { %v3945_v52 = vadd.f32 %v3944_v19, %v3943_v33  ;;  %v1704_v40 = vmax.f32 %v1668_v15, 0.0  ;;  %v6992_v33 = vld [vmem:[#allocation11_spill] sm:$0xff]  ;;  %v6995_v15 = vld [vmem:[#allocation16_spill] sm:$0xff]  ;;  %v1636_v36 = vadd.f32 %v3918_v6, %v6998_v46  ;;  %v1628_v48 = vadd.f32 %v3912_v10, %v7000_v16  ;;  %v4697_v10 = vld [vmem:[%s6829_s4 + $0x180] sm:$0xff] }
 0x26b   :  { %v1652_v60 = vadd.f32 %v3930_v35, %v6992_v33  ;;  %v1753_v9 = vpack.c.bf16 %v1703_v12, %v1702_v34  ;;  %v1644_v35 = vadd.f32 %v3924_v58, %v6995_v15  ;;  %v6027_v12 = vld [vmem:[%s6829_s4 + $0x128] sm:$0xff]  ;;  %v6037_v58 = vld [vmem:[%s6829_s4 + $0x198] sm:$0xff]  ;;  %v4696_v6 = vld [vmem:[%s6829_s4 + $0x190] sm:$0xff] }
 0x26c   :  { %v1671_v62 = vadd.f32 %v3945_v52, %v6989_v53  ;;  %v6013_v53 = vld [vmem:[%s6829_s4 + $0x1a8] sm:$0xff]  ;;  %2446 = vperm.xlu0 %4471, %v6996_v25  }
 0x26d   :  { %v1700_v39 = vmax.f32 %v1652_v60, 0.0  ;;  %2458 = vperm.xlu1 %4470, %v6013_v53   ;;  %v1698_v20 = vmax.f32 %v1644_v35, 0.0  ;;  %v1694_v60 = vmax.f32 %v1628_v48, 0.0  ;;  %v324_v35 = vpop.permute.xlu1 %323  ;;  %v4556_v16 = vld [vmem:[%s6830_s2 + $0x1a0] ss:$8 sps:$4 sm:$0xff]  }
 0x26e   :  { %v1705_v19 = vmax.f32 %v1671_v62, 0.0  ;;  %v4557_v48 = vld [vmem:[%s6830_s2 + $0x1b4] ss:$8 sps:$4 sm:$0xff]  }
 0x26f   :  { %v1752_v30 = vpack.c.bf16 %v1701_v2, %v1700_v39  ;;  %v329_v2 = vpop.permute.xlu0 %328 }
 0x270   :  { %v1754_v52 = vpack.c.bf16 %v1705_v19, %v1704_v40  ;;  %2382 = vperm.xlu0 %4471, %v5508_v14   ;;  %v1696_v19 = vmax.f32 %v1636_v36, 0.0  ;;  %v1695_v14 = vmax.f32 %v1631_v28, 0.0 }
 0x271   :  { %2394 = vperm.xlu1 %4470, %v6027_v12  }
 0x272   :  { %3946 = vmatprep.subr.bf16.mxu0 %v1754_v52  ;;  %v1749_v34 = vpack.c.bf16 %v1695_v14, %v1694_v60  ;;  %v4694_v52 = vld [vmem:[%s6829_s4 + $0x1a0] sm:$0xff]  ;;  %v4565_v60 = vld [vmem:[%s6830_s2 + $0x1d0] ss:$8 sps:$4 sm:$0xff]  }
 0x273   :  { %3947 = vmatpush3.bf16.msra.mxu0 %v5865_v3  ;;  %v6997_v3 = vld [vmem:[#allocation22_spill] sm:$0xff] }
 0x274   :  { %3948 = vmatprep.subr.bf16.mxu0 %v1753_v9  ;;  %v1639_v62 = vadd.f32 %v3921_v24, %v6997_v3  ;;  %2438 = vperm.xlu0 %4471, %v5526_v23   ;;  %v6053_v23 = vld [vmem:[%s6829_s4 + $0x188] sm:$0xff] }
 0x275   :  { %2450 = vperm.xlu1 %4470, %v6037_v58   ;;  %v4544_v24 = vld [vmem:[%s6830_s2 + $0x160] ss:$8 sps:$4 sm:$0xff]  }
 0x276   :  { %v1697_v40 = vmax.f32 %v1639_v62, 0.0  ;;  %v4548_v62 = vld [vmem:[%s6830_s2 + $0x184] ss:$8 sps:$4 sm:$0xff]   ;;  %v4562_v14 = vld [vmem:[%s6830_s2 + $0x1c0] ss:$8 sps:$4 sm:$0xff]  }
 0x277   :  { %3949 = vmatpush3.bf16.msra.mxu0 %v5861_v61  ;;  %v1751_v61 = vpack.c.bf16 %v1699_v38, %v1698_v20 }
 0x278   :  { %3950 = vmatprep.subr.bf16.mxu0 %v1752_v30  ;;  %v1750_v33 = vpack.c.bf16 %v1697_v40, %v1696_v19  ;;  %2374 = vperm.xlu0 %4471, %v5886_v54   ;;  %v4551_v40 = vld [vmem:[%s6830_s2 + $0x194] ss:$8 sps:$4 sm:$0xff]   ;;  %v4559_v19 = vld [vmem:[%s6830_s2 + $0x1b0] ss:$8 sps:$4 sm:$0xff]  }
 0x27b   :  { %3951 = vmatpush3.bf16.msra.mxu0 %v5857_v43  ;;  %v6045_v43 = vld [vmem:[%s6829_s4 + $0x118] sm:$0xff] }
 0x27c   :  { %3952 = vmatprep.subr.bf16.mxu0 %v1751_v61  ;;  %2386 = vperm.xlu1 %4470, %v6045_v43  }
 0x27f   :  { %3953 = vmatpush3.bf16.msra.mxu0 %v5853_v63  ;;  %v7001_v63 = vmov 2  }
 0x280   :  { %3954 = vmatprep.subr.bf16.mxu0 %v1750_v33  ;;  %2442 = vperm.xlu1 %4470, %v6053_v23   ;;  %v4563_v33 = vld [vmem:[%s6830_s2 + $0x1d4] ss:$8 sps:$4 sm:$0xff]  }
 0x281   :  { %4472 = vset.pattern.permute.xlu0 %v7001_v63 }
 0x282   :  { %3028 = vperm.xlu0 %4472, %v5912_v50   ;;  %v4690_v50 = vld [vmem:[%s6829_s4 + $0x1c0] sm:$0xff] }
 0x283   :  { %3955 = vmatpush3.bf16.msra.mxu0 %v5849_v1  ;;  %v4524_v1 = vld [vmem:[%s6830_s2 + $0x100] ss:$8 sps:$4 sm:$0xff]  }
 0x284   :  { %3956 = vmatprep.subr.bf16.mxu0 %v1749_v34  ;;  %2378 = vperm.xlu1 %4470, %v5891_v41   ;;  %v4568_v34 = vld [vmem:[%s6830_s2 + $0x1e0] ss:$8 sps:$4 sm:$0xff]  }
 0x286   :  { %2960 = vperm.xlu0 %4472, %v5920_v18   ;;  %v4538_v18 = vld [vmem:[%s6830_s2 + $0x140] ss:$8 sps:$4 sm:$0xff]  }
 0x287   :  { %3957 = vmatpush3.bf16.msra.mxu0 %v5833_v7  ;;  %v4527_v7 = vld [vmem:[%s6830_s2 + $0x114] ss:$8 sps:$4 sm:$0xff]  }
 0x288   :  { %3958 = vmatprep.subr.bf16.mxu0 %v5879_v17  ;;  %4473 = vset.pattern.permute.xlu1 %v7001_v63  ;;  %v4535_v17 = vld [vmem:[%s6830_s2 + $0x130] ss:$8 sps:$4 sm:$0xff]  }
 0x289   :  { %2964 = vperm.xlu1 %4473, %v5932_v8   ;;  %v4692_v8 = vld [vmem:[%s6829_s4 + $0x1b0] sm:$0xff] }
 0x28a   :  { %2956 = vperm.xlu0 %4472, %v5951_v27   ;;  %v4530_v27 = vld [vmem:[%s6830_s2 + $0x124] ss:$8 sps:$4 sm:$0xff]   ;;  %v4571_v63 = vld [vmem:[%s6830_s2 + $0x1f0] ss:$8 sps:$4 sm:$0xff]  }
 0x28b   :  { %3959 = vmatpush3.bf16.msra.mxu0 %v5813_v32  ;;  %v4529_v32 = vld [vmem:[%s6830_s2 + $0x110] ss:$8 sps:$4 sm:$0xff]  }
 0x28c   :  { %3960 = vmatprep.subr.bf16.mxu0 %v5869_v44  ;;  %v4688_v44 = vld [vmem:[%s6829_s4 + $0x1d0] sm:$0xff] }
 0x28d   :  { %3024 = vperm.xlu1 %4473, %v5906_v37   ;;  %v4536_v37 = vld [vmem:[%s6830_s2 + $0x144] ss:$8 sps:$4 sm:$0xff]  }
 0x28e   :  { %2952 = vperm.xlu0 %4472, %v5938_v31   ;;  %v4693_v31 = vld [vmem:[%s6829_s4 + $0x120] sm:$0xff] }
 0x28f   :  { %3961 = vmatpush3.bf16.msra.mxu0 %v5794_v26  ;;  %v4687_v26 = vld [vmem:[%s6829_s4 + $0x150] sm:$0xff] }
 0x291   :  { %3020 = vperm.xlu1 %4473, %v5944_v51   ;;  %v4532_v51 = vld [vmem:[%s6830_s2 + $0x120] ss:$8 sps:$4 sm:$0xff]  }
 0x292   :  { %2076 = vmatmul.mubr.bf16.vlgmr.msra.gmra.mxu0 %v4524_v1  ;;  %2948 = vperm.xlu0 %4472, %v5965_v13   ;;  %v4533_v13 = vld [vmem:[%s6830_s2 + $0x134] ss:$8 sps:$4 sm:$0xff]  }
 0x293   :  { %2083 = vmatprep.mubr.bf16.mxu0 %v4527_v7 }
 0x295   :  { %3016 = vperm.xlu1 %4473, %v5926_v59   ;;  %v4539_v59 = vld [vmem:[%s6830_s2 + $0x154] ss:$8 sps:$4 sm:$0xff]  }
 0x296   :  { %2944 = vperm.xlu0 %4472, %v4687_v26  }
 0x299   :  { %3012 = vperm.xlu1 %4473, %v5958_v49   ;;  %v4689_v49 = vld [vmem:[%s6829_s4 + $0x140] sm:$0xff] }
 0x29a   :  { %2084 = vmatmul.mubr.bf16.gmra.mxu0 %v4529_v32  ;;  %2940 = vperm.xlu0 %4472, %v5979_v4   ;;  %v4541_v4 = vld [vmem:[%s6830_s2 + $0x150] ss:$8 sps:$4 sm:$0xff]  }
 0x29b   :  { %2091 = vmatprep.mubr.bf16.mxu0 %v4530_v27 }
 0x29d   :  { %3008 = vperm.xlu1 %4473, %v4688_v44  }
 0x29e   :  { %2936 = vperm.xlu0 %4472, %v4689_v49  }
 0x2a1   :  { %3004 = vperm.xlu1 %4473, %v5972_v45   ;;  %v4691_v45 = vld [vmem:[%s6829_s4 + $0x130] sm:$0xff] }
 0x2a2   :  { %2092 = vmatmul.mubr.bf16.gmra.mxu0 %v4532_v51  ;;  %2932 = vperm.xlu0 %4472, %v5999_v55   ;;  %v4695_v55 = vld [vmem:[%s6829_s4 + $0x110] sm:$0xff] }
 0x2a3   :  { %2099 = vmatprep.mubr.bf16.mxu0 %v4533_v13 }
 0x2a5   :  { %3000 = vperm.xlu1 %4473, %v4690_v50  }
 0x2a6   :  { %2928 = vperm.xlu0 %4472, %v4691_v45  }
 0x2a9   :  { %2996 = vperm.xlu1 %4473, %v5990_v5   ;;  %v4542_v5 = vld [vmem:[%s6830_s2 + $0x164] ss:$8 sps:$4 sm:$0xff]  }
 0x2aa   :  { %2100 = vmatmul.mubr.bf16.gmra.mxu0 %v4535_v17  ;;  %2924 = vperm.xlu0 %4472, %v6027_v12  }
 0x2ab   :  { %2107 = vmatprep.mubr.bf16.mxu0 %v4536_v37 }
 0x2ad   :  { %2992 = vperm.xlu1 %4473, %v4692_v8  }
 0x2ae   :  { %2920 = vperm.xlu0 %4472, %v4693_v31  }
 0x2b1   :  { %2988 = vperm.xlu1 %4473, %v6013_v53  }
 0x2b2   :  { %2108 = vmatmul.mubr.bf16.gmra.mxu0 %v4538_v18  ;;  %2916 = vperm.xlu0 %4472, %v6045_v43   ;;  %v4566_v43 = vld [vmem:[%s6830_s2 + $0x1e4] ss:$8 sps:$4 sm:$0xff]  }
 0x2b3   :  { %2115 = vmatprep.mubr.bf16.mxu0 %v4539_v59 }
 0x2b5   :  { %2984 = vperm.xlu1 %4473, %v4694_v52   ;;  %v6144_v47 = vpop.f32.mrf.mxu0 }
 0x2b6   :  { %2912 = vperm.xlu0 %4472, %v4695_v55   ;;  %7002 = vst [vmem:[#allocation42_spill] sm:$0xff] %v6144_v47 }
 0x2b7   :  { %v6154_v29 = vpop.f32.mrf.mxu0 }
 0x2b8   :  { %7003 = vst [vmem:[#allocation43_spill] sm:$0xff] %v6154_v29 }
 0x2b9   :  { %2980 = vperm.xlu1 %4473, %v6037_v58   ;;  %v4560_v58 = vld [vmem:[%s6830_s2 + $0x1c4] ss:$8 sps:$4 sm:$0xff]  }
 0x2ba   :  { %2116 = vmatmul.mubr.bf16.gmra.mxu0 %v4541_v4  ;;  %2908 = vperm.xlu0 %4472, %v5891_v41   ;;  %v4409_v9 = vpop.f32.mrf.mxu0 }
 0x2bb   :  { %2123 = vmatprep.mubr.bf16.mxu0 %v4542_v5  ;;  %v906_v15 = vadd.f32 %v4409_v9, %v329_v2 }
 0x2bc   :  { %v900_v41 = vpop.f32.mrf.mxu0 }
 0x2bd   :  { %2976 = vperm.xlu1 %4473, %v4696_v6   ;;  %v1084_v39 = vmax.f32 %v906_v15, 0.0  ;;  %v901_v53 = vadd.f32 %v900_v41, %v324_v35  ;;  %v6259_v15 = vld [vmem:[%s6831_s3] ss:$2 sm:$0x3] }
 0x2be   :  { %2904 = vperm.xlu0 %4472, %v5886_v54   ;;  %v6160_v25 = vpop.f32.mrf.mxu0  ;;  %7012 = vst [vmem:[#allocation14_spill] sm:$0xff] %v6259_v15 }
 0x2bf   :  { %7004 = vst [vmem:[#allocation36_spill] sm:$0xff] %v6160_v25  ;;  %v1083_v3 = vmax.f32 %v901_v53, 0.0 }
 0x2c0   :  { %v6169_v38 = vpop.f32.mrf.mxu0 }
 0x2c1   :  { %2972 = vperm.xlu1 %4473, %v6053_v23   ;;  %7005 = vst [vmem:[#allocation37_spill] sm:$0xff] %v6169_v38  ;;  %v6171_v54 = vpack.c.bf16 %v1084_v39, %v1083_v3  ;;  %v4569_v23 = vld [vmem:[%s6830_s2 + $0x1f4] ss:$8 sps:$4 sm:$0xff]  }
 0x2c2   :  { %2124 = vmatmul.mubr.bf16.gmra.mxu0 %v4544_v24  ;;  %v4415_v30 = vpop.f32.mrf.mxu0  ;;  %v2244_v24 = vlaneseq }
 0x2c3   :  { %2131 = vmatprep.mubr.bf16.mxu0 %v4545_v21  ;;  %7006 = vst [vmem:[#allocation30_spill] sm:$0xff] %v6171_v54  ;;  %v926_v46 = vadd.f32 %v4415_v30, %v5719_v42  ;;  %v4553_v42 = vld [vmem:[%s6830_s2 + $0x190] ss:$8 sps:$4 sm:$0xff]  }
 0x2c4   :  { %v920_v36 = vpop.f32.mrf.mxu0  ;;  %v6253_v2 = vshrl.u32 %v2244_v24, 7 }
 0x2c5   :  { %2968 = vperm.xlu1 %4473, %v4697_v10   ;;  %v1088_v20 = vmax.f32 %v926_v46, 0.0  ;;  %v921_v12 = vadd.f32 %v920_v36, %v5737_v57  ;;  %v4554_v57 = vld [vmem:[%s6830_s2 + $0x1a4] ss:$8 sps:$4 sm:$0xff]  }
 0x2c6   :  { %v6225_v1 = vpop.f32.mrf.mxu0  ;;  %7011 = vst [vmem:[#allocation19_spill] sm:$0xff] %v6253_v2  ;;  %v6846_v6 = vsub.s32 1, %v6253_v2 }
 0x2c7   :  { %v1087_v28 = vmax.f32 %v921_v12, 0.0  ;;  %7008 = vst [vmem:[#allocation24_spill] sm:$0xff] %v6225_v1 }
 0x2c8   :  { %v6227_v7 = vpop.f32.mrf.mxu0  ;;  %v2251_v41 = vrot.slane %v6259_v15, %v6846_v6  ;;  %v7014_v6 = vld [vmem:[#allocation46_spill] sm:$0xff] }
 0x2c9   :  { %v6184_v61 = vpack.c.bf16 %v1088_v20, %v1087_v28  ;;  %7009 = vst [vmem:[#allocation25_spill] sm:$0xff] %v6227_v7  ;;  %v7016_v7 = vld [vmem:[#allocation47_spill] sm:$0xff] }
 0x2ca   :  { %2132 = vmatmul.mubr.bf16.gmra.mxu0 %v4547_v22  ;;  %2318 = vmatprep.mubr.f32.mxu1 %v2251_v41 }
 0x2cb   :  { %2139 = vmatprep.mubr.bf16.mxu0 %v4548_v62  ;;  %7007 = vst [vmem:[#allocation31_spill] sm:$0xff] %v6184_v61  ;;  %v7015_v61 = vld [vmem:[#allocation45_spill] sm:$0xff] }
 0x2d2   :  { %2140 = vmatmul.mubr.bf16.gmra.mxu0 %v4550_v56 }
 0x2d3   :  { %2147 = vmatprep.mubr.bf16.mxu0 %v4551_v40 }
 0x2da   :  { %2148 = vmatmul.mubr.bf16.gmra.mxu0 %v4553_v42 }
 0x2db   :  { %2155 = vmatprep.mubr.bf16.mxu0 %v4554_v57 }
 0x2e2   :  { %2156 = vmatmul.mubr.bf16.gmra.mxu0 %v4556_v16 }
 0x2e3   :  { %2163 = vmatprep.mubr.bf16.mxu0 %v4557_v48 }
 0x2ea   :  { %2164 = vmatmul.mubr.bf16.gmra.mxu0 %v4559_v19 }
 0x2eb   :  { %2171 = vmatprep.mubr.bf16.mxu0 %v4560_v58 }
 0x2f2   :  { %2172 = vmatmul.mubr.bf16.gmra.mxu0 %v4562_v14 }
 0x2f3   :  { %2179 = vmatprep.mubr.bf16.mxu0 %v4563_v33 }
 0x2fa   :  { %2180 = vmatmul.mubr.bf16.gmra.mxu0 %v4565_v60 }
 0x2fb   :  { %2187 = vmatprep.mubr.bf16.mxu0 %v4566_v43 }
 0x302   :  { %2188 = vmatmul.mubr.bf16.gmra.mxu0 %v4568_v34 }
 0x303   :  { %2195 = vmatprep.mubr.bf16.mxu0 %v4569_v23 }
 0x30a   :  { %2196 = vmatmul.mubr.bf16.gmra.mxu0 %v4571_v63 }
 0x352   :  { %v3962_v32 = vpop.f32.mrf.mxu0 }
 0x354   :  { %v3963_v27 = vpop.f32.mrf.mxu0 }
 0x355   :  { %v6229_v26 = vadd.f32 %v3963_v27, %v3962_v32 }
 0x356   :  { %v6231_v51 = vpop.f32.mrf.mxu0 }
 0x357   :  { %7010 = vst [vmem:[#allocation18_spill] sm:$0xff] %v6229_v26  ;;  %v7017_v26 = vld [vmem:[#allocation49_spill] sm:$0xff] }
 0x358   :  { %v6233_v13 = vpop.f32.mrf.mxu0 }
 0x35a   :  { %v3968_v44 = vpop.f32.mrf.mxu0 }
 0x35c   :  { %v3969_v49 = vpop.f32.mrf.mxu0 }
 0x35d   :  { %v6235_v17 = vadd.f32 %v3969_v49, %v3968_v44 }
 0x35e   :  { %v6237_v37 = vpop.f32.mrf.mxu0 }
 0x360   :  { %v6239_v50 = vpop.f32.mrf.mxu0 }
 0x362   :  { %v3974_v45 = vpop.f32.mrf.mxu0 }
 0x364   :  { %v3975_v18 = vpop.f32.mrf.mxu0 }
 0x365   :  { %v6241_v59 = vadd.f32 %v3975_v18, %v3974_v45 }
 0x366   :  { %v6243_v8 = vpop.f32.mrf.mxu0 }
 0x368   :  { %v6245_v31 = vpop.f32.mrf.mxu0 }
 0x36a   :  { %v3980_v4 = vpop.f32.mrf.mxu0 }
 0x36c   :  { %v3981_v5 = vpop.f32.mrf.mxu0 }
 0x36d   :  { %v6247_v52 = vadd.f32 %v3981_v5, %v3980_v4 }
 0x36e   :  { %v6249_v55 = vpop.f32.mrf.mxu0 }
 0x370   :  { %v6251_v21 = vpop.f32.mrf.mxu0 }
 0x372   :  { %v3986_v9 = vpop.f32.mrf.mxu0 }
 0x374   :  { %v3987_v35 = vpop.f32.mrf.mxu0 }
 0x375   :  { %v6264_v39 = vadd.f32 %v3987_v35, %v3986_v9 }
 0x376   :  { %v3989_v53 = vpop.f32.mrf.mxu0 }
 0x378   :  { %v3990_v22 = vpop.f32.mrf.mxu0 }
 0x379   :  { %v6266_v3 = vadd.f32 %v3990_v22, %v3989_v53 }
 0x37a   :  { %v3992_v62 = vpop.f32.mrf.mxu0 }
 0x37c   :  { %v3993_v30 = vpop.f32.mrf.mxu0 }
 0x37d   :  { %v6268_v10 = vadd.f32 %v3993_v30, %v3992_v62 }
 0x37e   :  { %v3995_v46 = vpop.f32.mrf.mxu0 }
 0x380   :  { %v3996_v36 = vpop.f32.mrf.mxu0 }
 0x381   :  { %v6270_v20 = vadd.f32 %v3996_v36, %v3995_v46 }
 0x382   :  { %v3998_v12 = vpop.f32.mrf.mxu0 }
 0x384   :  { %v3999_v56 = vpop.f32.mrf.mxu0 }
 0x385   :  { %v6272_v28 = vadd.f32 %v3999_v56, %v3998_v12 }
 0x386   :  { %v4001_v40 = vpop.f32.mrf.mxu0 }
 0x388   :  { %v4002_v42 = vpop.f32.mrf.mxu0 }
 0x389   :  { %v4003_v57 = vadd.f32 %v4002_v42, %v4001_v40  ;;  %v4701_v40 = vmov 3  }
 0x38a   :  { %v4004_v16 = vpop.f32.mrf.mxu0  ;;  %4474 = vset.pattern.permute.xlu1 %v4701_v40  ;;  %4475 = vset.pattern.permute.xlu0 %v4701_v40 }
 0x38b   :  { %v2129_v2 = vadd.f32 %v4003_v57, %v7017_v26  ;;  %v7022_v57 = vld [vmem:[#allocation52_spill] sm:$0xff] }
 0x38c   :  { %v4005_v48 = vpop.f32.mrf.mxu0 }
 0x38d   :  { %v4006_v19 = vadd.f32 %v4005_v48, %v4004_v16  ;;  %v2217_v26 = vmax.f32 %v2129_v2, 0.0  ;;  %v7025_v2 = vld [vmem:[#allocation57_spill] sm:$0xff] }
 0x38e   :  { %v4007_v58 = vpop.f32.mrf.mxu0 }
 0x390   :  { %v4008_v14 = vpop.f32.mrf.mxu0 }
 0x391   :  { %v4009_v33 = vadd.f32 %v4008_v14, %v4007_v58  ;;  %v2237_v58 = vld [vmem:[%s6829_s4] sm:$0x1] }
 0x392   :  { %v4010_v60 = vpop.f32.mrf.mxu0  ;;  %2240 = vperm.xlu1 %4474, %v2237_v58   ;;  %v2134_v58 = vadd.f32 %v4006_v19, %v5535_v0 }
 0x393   :  { %v2137_v54 = vadd.f32 %v4009_v33, %v7014_v6  ;;  %v7019_v6 = vld [vmem:[#allocation51_spill] sm:$0xff] }
 0x394   :  { %v4011_v43 = vpop.f32.mrf.mxu0  ;;  %v2126_v33 = vadd.f32 %v6272_v28, %v7019_v6  ;;  %v7034_v6 = vld [vmem:[#allocation62_spill] sm:$0xff] }
 0x395   :  { %v6274_v34 = vadd.f32 %v4011_v43, %v4010_v60 }
 0x396   :  { %v4013_v23 = vpop.f32.mrf.mxu0 }
 0x397   :  { %7013 = vst [vmem:[#allocation15_spill] sm:$0xff] %v6274_v34  ;;  %v2219_v34 = vmax.f32 %v2137_v54, 0.0 }
 0x398   :  { %v4014_v63 = vpop.f32.mrf.mxu0 }
 0x399   :  { %v6276_v32 = vadd.f32 %v4014_v63, %v4013_v23 }
 0x39a   :  { %v4016_v27 = vpop.f32.mrf.mxu0 }
 0x39c   :  { %v4017_v44 = vpop.f32.mrf.mxu0 }
 0x39d   :  { %v6278_v49 = vadd.f32 %v4017_v44, %v4016_v27 }
 0x39e   :  { %v4019_v45 = vpop.f32.mrf.mxu0 }
 0x3a0   :  { %v4020_v18 = vpop.f32.mrf.mxu0 }
 0x3a1   :  { %v6280_v4 = vadd.f32 %v4020_v18, %v4019_v45 }
 0x3a2   :  { %v4022_v5 = vpop.f32.mrf.mxu0 }
 0x3a4   :  { %v4023_v24 = vpop.f32.mrf.mxu0 }
 0x3a5   :  { %v6282_v9 = vadd.f32 %v4023_v24, %v4022_v5 }
 0x3a6   :  { %v6284_v35 = vpop.f32.mrf.mxu0 }
 0x3a8   :  { %v6286_v41 = vpop.f32.mrf.mxu0 }
 0x3aa   :  { %v6288_v53 = vpop.f32.mrf.mxu0 }
 0x3ac   :  { %v6290_v22 = vpop.f32.mrf.mxu0 }
 0x3ae   :  { %v4031_v62 = vpop.f32.mrf.mxu0 }
 0x3b0   :  { %v4032_v30 = vpop.f32.mrf.mxu0 }
 0x3b2   :  { %v4034_v46 = vpop.f32.mrf.mxu0 }
 0x3b4   :  { %v4035_v36 = vpop.f32.mrf.mxu0 }
 0x3b5   :  { %v4036_v54 = vadd.f32 %v4035_v36, %v4034_v46  ;;  %v2113_v46 = vadd.f32 %v6266_v3, %v7025_v2  ;;  %v7047_v2 = vld [vmem:[#allocation71_spill] sm:$0xff] }
 0x3b6   :  { %v4037_v12 = vpop.f32.mrf.mxu0 }
 0x3b8   :  { %v4038_v56 = vpop.f32.mrf.mxu0 }
 0x3ba   :  { %v4040_v42 = vpop.f32.mrf.mxu0 }
 0x3bc   :  { %v4041_v16 = vpop.f32.mrf.mxu0 }
 0x3be   :  { %v4043_v48 = vpop.f32.mrf.mxu0 }
 0x3c0   :  { %v4044_v14 = vpop.f32.mrf.mxu0 }
 0x3c1   :  { %v4045_v25 = vadd.f32 %v4044_v14, %v4043_v48 }
 0x3c2   :  { %v4046_v60 = vpop.f32.mrf.mxu0 }
 0x3c4   :  { %v4047_v43 = vpop.f32.mrf.mxu0 }
 0x3c5   :  { %v4048_v29 = vadd.f32 %v4047_v43, %v4046_v60  ;;  %v7020_v60 = vld [vmem:[#allocation50_spill] sm:$0xff] }
 0x3c6   :  { %v4049_v23 = vpop.f32.mrf.mxu0  ;;  %v2185_v0 = vadd.f32 %v4045_v25, %v7020_v60 }
 0x3c8   :  { %v4050_v63 = vpop.f32.mrf.mxu0 }
 0x3c9   :  { %v4051_v24 = vadd.f32 %v4050_v63, %v4049_v23 }
 0x3ca   :  { %v4052_v27 = vpop.f32.mrf.mxu0 }
 0x3cb   :  { %v2193_v1 = vadd.f32 %v4051_v24, %v7016_v7  ;;  %v7021_v7 = vld [vmem:[#allocation53_spill] sm:$0xff] }
 0x3cc   :  { %v4053_v44 = vpop.f32.mrf.mxu0 }
 0x3cd   :  { %v4054_v18 = vadd.f32 %v4053_v44, %v4052_v27  ;;  %v4042_v27 = vadd.f32 %v4041_v16, %v4040_v42  ;;  %v7018_v44 = vld [vmem:[#allocation48_spill] sm:$0xff]  ;;  %v2233_v19 = vmax.f32 %v2193_v1, 0.0  ;;  %v2216_v42 = vmax.f32 %v2126_v33, 0.0 }
 0x3ce   :  { %v4055_v45 = vpop.f32.mrf.mxu0  ;;  %v2190_v23 = vadd.f32 %v4048_v29, %v7018_v44  ;;  %v2231_v1 = vmax.f32 %v2185_v0, 0.0  ;;  %v7026_v16 = vld [vmem:[#allocation56_spill] sm:$0xff]  ;;  %v2158_v33 = vadd.f32 %v6282_v9, %v7034_v6  ;;  %v7038_v9 = vld [vmem:[#allocation66_spill] sm:$0xff] }
 0x3cf   :  { %v2198_v47 = vadd.f32 %v4054_v18, %v5519_v11  ;;  %v2218_v11 = vmax.f32 %v2134_v58, 0.0  ;;  %v2182_v29 = vadd.f32 %v4042_v27, %v7022_v57  ;;  %v2213_v18 = vmax.f32 %v2113_v46, 0.0  ;;  %v7036_v0 = vld [vmem:[#allocation64_spill] sm:$0xff] }
 0x3d0   :  { %v4056_v5 = vpop.f32.mrf.mxu0  ;;  %v2224_v57 = vmax.f32 %v2158_v33, 0.0 }
 0x3d1   :  { %v4057_v40 = vadd.f32 %v4056_v5, %v4055_v45  ;;  %v2234_v63 = vmax.f32 %v2198_v47, 0.0  ;;  %v2232_v47 = vmax.f32 %v2190_v23, 0.0  ;;  %v2230_v48 = vmax.f32 %v2182_v29, 0.0  ;;  %v7030_v5 = vld [vmem:[#allocation59_spill] sm:$0xff] }
 0x3d2   :  { %v3979_v45 = vadd.f32 %v6245_v31, %v6243_v8  ;;  %v3973_v8 = vadd.f32 %v6239_v50, %v6237_v37  ;;  %v7033_v31 = vld [vmem:[#allocation63_spill] sm:$0xff]  ;;  %v3967_v37 = vadd.f32 %v6233_v13, %v6231_v51  ;;  %v7044_v13 = vld [vmem:[#allocation68_spill] sm:$0xff] }
 0x3d3   :  { %v2201_v38 = vadd.f32 %v4057_v40, %v7015_v61  ;;  %v4039_v61 = vadd.f32 %v4038_v56, %v4037_v12  ;;  %v7024_v12 = vld [vmem:[#allocation54_spill] sm:$0xff]  ;;  %v4030_v56 = vadd.f32 %v6290_v22, %v6288_v53  ;;  %v7029_v53 = vld [vmem:[#allocation12_spill] sm:$0xff]  ;;  %v7037_v50 = vld [vmem:[#allocation67_spill] sm:$0xff] }
 0x3d4   :  { %v2097_v23 = vadd.f32 %v3979_v45, %v7033_v31  ;;  %v2081_v46 = vadd.f32 %v3967_v37, %v7047_v2  ;;  %v7075_v2 = vld [vmem:[#allocation96_spill] sm:$0xff] }
 0x3d5   :  { %v2235_v15 = vmax.f32 %v2201_v38, 0.0  ;;  %v2121_v38 = vadd.f32 %v6270_v20, %v7021_v7  ;;  %v2177_v25 = vadd.f32 %v4039_v61, %v7024_v12  ;;  %v3985_v20 = vadd.f32 %v6251_v21, %v6249_v55  ;;  %v7028_v21 = vld [vmem:[#allocation58_spill] sm:$0xff]  ;;  %v7035_v61 = vld [vmem:[#allocation65_spill] sm:$0xff] }
 0x3d6   :  { %v4027_v55 = vadd.f32 %v6286_v41, %v6284_v35  ;;  %v2166_v24 = vadd.f32 %v4030_v56, %v7030_v5  ;;  %v7032_v35 = vld [vmem:[#allocation60_spill] sm:$0xff]  ;;  %v2145_v12 = vadd.f32 %v6276_v32, %v7044_v13  ;;  %v7049_v56 = vld [vmem:[#allocation101_spill] sm:$0xff]  ;;  %v7053_v32 = vld [vmem:[#allocation70_spill] sm:$0xff] }
 0x3d7   :  { %4058 = vmatprep.subr.mxu1 %v2235_v15  ;;  %v7023_v15 = vld [vmem:[#allocation55_spill] sm:$0xff]  ;;  %v2215_v36 = vmax.f32 %v2121_v38, 0.0  ;;  %v2229_v3 = vmax.f32 %v2177_v25, 0.0  ;;  %v2105_v22 = vadd.f32 %v3985_v20, %v7029_v53  ;;  %v2089_v38 = vadd.f32 %v3973_v8, %v7037_v50  ;;  %v7056_v5 = vld [vmem:[#allocation73_spill] sm:$0xff]  ;;  %v7059_v8 = vld [vmem:[#allocation14_spill] sm:$0xff] }
 0x3d8   :  { %4059 = vmatpush3.msra.mxu1 %v2219_v34  ;;  %v2118_v28 = vadd.f32 %v6268_v10, %v7023_v15  ;;  %v4033_v34 = vadd.f32 %v4032_v30, %v4031_v62  ;;  %v2174_v10 = vadd.f32 %v4036_v54, %v7026_v16  ;;  %v7027_v62 = vld [vmem:[#allocation6_spill] sm:$0xff]  ;;  %v2161_v41 = vadd.f32 %v4027_v55, %v7032_v35  ;;  %v7064_v50 = vld [vmem:[#allocation81_spill] sm:$0xff] }
 0x3d9   :  { %4060 = vmatprep.subr.mxu1 %v2234_v63  ;;  %v2110_v30 = vadd.f32 %v6264_v39, %v7027_v62  ;;  %v7031_v39 = vld [vmem:[#allocation61_spill] sm:$0xff]  ;;  %v2211_v63 = vmax.f32 %v2105_v22, 0.0  ;;  %v2150_v54 = vadd.f32 %v6278_v49, %v7038_v9  ;;  %v7041_v15 = vld [vmem:[#allocation102_spill] sm:$0xff]  ;;  %v7046_v49 = vld [vmem:[#allocation100_spill] sm:$0xff]  ;;  %v2221_v22 = vmax.f32 %v2145_v12, 0.0 }
 0x3da   :  { %4061 = vmatpush3.msra.mxu1 %v2218_v11  ;;  %v2214_v14 = vmax.f32 %v2118_v28, 0.0  ;;  %v2169_v43 = vadd.f32 %v4033_v34, %v7028_v21  ;;  %v2228_v40 = vmax.f32 %v2174_v10, 0.0  ;;  %v2102_v58 = vadd.f32 %v6247_v52, %v7031_v39  ;;  %v7043_v34 = vld [vmem:[#allocation103_spill] sm:$0xff]  ;;  %v7050_v10 = vld [vmem:[#allocation76_spill] sm:$0xff]  ;;  %v7054_v21 = vld [vmem:[#allocation18_spill] sm:$0xff] }
 0x3db   :  { %4062 = vmatprep.subr.mxu1 %v2233_v19  ;;  %v2212_v27 = vmax.f32 %v2110_v30, 0.0  ;;  %v2226_v11 = vmax.f32 %v2166_v24, 0.0  ;;  %v2094_v52 = vadd.f32 %v6241_v59, %v7035_v61  ;;  %v2153_v19 = vadd.f32 %v6280_v4, %v7036_v0  ;;  %v7039_v59 = vld [vmem:[#allocation69_spill] sm:$0xff]  ;;  %v7040_v4 = vld [vmem:[#allocation74_spill] sm:$0xff]  ;;  %v7058_v39 = vld [vmem:[#allocation75_spill] sm:$0xff] }
 0x3dc   :  { %4063 = vmatpush3.msra.mxu1 %v2217_v26  ;;  %v2227_v44 = vmax.f32 %v2169_v43, 0.0  ;;  %v2210_v60 = vmax.f32 %v2102_v58, 0.0  ;;  %v2225_v7 = vmax.f32 %v2161_v41, 0.0  ;;  %v2209_v26 = vmax.f32 %v2097_v23, 0.0  ;;  %v7060_v61 = vld [vmem:[#allocation83_spill] sm:$0xff]  ;;  %v7062_v0 = vld [vmem:[#allocation90_spill] sm:$0xff] }
 0x3dd   :  { %4064 = vmatprep.subr.mxu1 %v2232_v47  ;;  %v2086_v29 = vadd.f32 %v6235_v17, %v7039_v59  ;;  %v2208_v47 = vmax.f32 %v2094_v52, 0.0  ;;  %v1046_v28 = vadd.f32 %v7041_v15, %v7040_v4  ;;  %v2223_v25 = vmax.f32 %v2153_v19, 0.0  ;;  %v7048_v17 = vld [vmem:[#allocation80_spill] sm:$0xff]  ;;  %v7063_v19 = vld [vmem:[#allocation89_spill] sm:$0xff] }
 0x3de   :  { %4065 = vmatpush3.msra.mxu1 %v2216_v42  ;;  %v7042_v42 = vld [vmem:[#allocation72_spill] sm:$0xff]  ;;  %v1031_v16 = vadd.f32 %v7049_v56, %v7048_v17  ;;  %v2222_v30 = vmax.f32 %v2150_v54, 0.0  ;;  %v2078_v43 = vadd.f32 %v7054_v21, %v7053_v32  ;;  %v7068_v59 = vld [vmem:[#allocation25_spill] sm:$0xff]  ;;  %v7077_v17 = vld [vmem:[#allocation98_spill] sm:$0xff] }
 0x3df   :  { %4066 = vmatprep.subr.mxu1 %v2231_v1  ;;  %v1041_v51 = vadd.f32 %v7043_v34, %v7042_v42  ;;  %v7045_v1 = vld [vmem:[#allocation84_spill] sm:$0xff]  ;;  %v1112_v45 = vmax.f32 %v1046_v28, 0.0  ;;  %v7070_v34 = vld [vmem:[#allocation94_spill] sm:$0xff]  ;;  %v7072_v12 = vld [vmem:[#allocation97_spill] sm:$0xff] }
 0x3e0   :  { %4067 = vmatpush3.msra.mxu1 %v2215_v36  ;;  %v1036_v20 = vadd.f32 %v7046_v49, %v7045_v1  ;;  %v2207_v36 = vmax.f32 %v2089_v38, 0.0  ;;  %v1109_v41 = vmax.f32 %v1031_v16, 0.0  ;;  %v2204_v23 = vmax.f32 %v2078_v43, 0.0  ;;  %v7061_v52 = vld [vmem:[#allocation88_spill] sm:$0xff]  ;;  %v7078_v56 = vld [vmem:[#allocation37_spill] sm:$0xff]  ;;  %v7079_v21 = vld [vmem:[#allocation95_spill] sm:$0xff] }
 0x3e1   :  { %4068 = vmatprep.subr.mxu1 %v2230_v48  ;;  %v7051_v48 = vld [vmem:[#allocation15_spill] sm:$0xff]  ;;  %v1111_v53 = vmax.f32 %v1041_v51, 0.0  ;;  %v7066_v9 = vld [vmem:[#allocation24_spill] sm:$0xff]  ;;  %v7071_v51 = vld [vmem:[#allocation82_spill] sm:$0xff]  ;;  %v911_v16 = vadd.f32 %v7078_v56, %v7077_v17 }
 0x3e2   :  { %4069 = vmatpush3.msra.mxu1 %v2214_v14  ;;  %v2142_v62 = vadd.f32 %v7051_v48, %v7050_v10  ;;  %v7052_v14 = vld [vmem:[#allocation19_spill] sm:$0xff]  ;;  %v1110_v35 = vmax.f32 %v1036_v20, 0.0  ;;  %v7069_v15 = vld [vmem:[#allocation92_spill] sm:$0xff]  ;;  %v996_v13 = vadd.f32 %v7071_v51, %v7070_v34  ;;  %v394_v48 = vpop.permute.xlu1 %393 }
 0x3e3   :  { %4070 = vmatprep.subr.mxu1 %v2229_v3  ;;  %v6850_v55 = vsub.s32 0, %v7052_v14  ;;  %v2206_v3 = vmax.f32 %v2086_v29, 0.0  ;;  %v2372_v6 = vpack.c.bf16 %v1112_v45, %v1111_v53  ;;  %v7074_v20 = vld [vmem:[#allocation91_spill] sm:$0xff]  ;;  %v7080_v45 = vld [vmem:[#allocation78_spill] sm:$0xff]  ;;  %v4619_v17 = vld [vmem:[%s6830_s2 + $0x2f4] ss:$8 sps:$4 sm:$0xff]  }
 0x3e4   :  { %4071 = vmatpush3.msra.mxu1 %v2213_v18  ;;  %v7055_v18 = vld [vmem:[#allocation86_spill] sm:$0xff]  ;;  %v2371_v37 = vpack.c.bf16 %v1110_v35, %v1109_v41  ;;  %v7084_v35 = vld [vmem:[#allocation43_spill] sm:$0xff] }
 0x3e5   :  { %4072 = vmatprep.subr.mxu1 %v2228_v40  ;;  %v956_v24 = vadd.f32 %v7056_v5, %v7055_v18  ;;  %v7057_v40 = vld [vmem:[#allocation77_spill] sm:$0xff]  ;;  %v2247_v31 = vrot.slane %v7059_v8, %v6850_v55  ;;  %v4604_v34 = vld [vmem:[%s6830_s2 + $0x2a4] ss:$8 sps:$4 sm:$0xff]   ;;  %v4602_v51 = vld [vmem:[%s6830_s2 + $0x2a0] ss:$8 sps:$4 sm:$0xff]  }
 0x3e6   :  { %4073 = vmatpush3.msra.mxu1 %v2212_v27  ;;  %v951_v58 = vadd.f32 %v7058_v39, %v7057_v40  ;;  %v2205_v27 = vmax.f32 %v2081_v46, 0.0  ;;  %v7076_v46 = vld [vmem:[#allocation36_spill] sm:$0xff]  ;;  %v314_v5 = vpop.permute.xlu1 %313  ;;  %v7082_v39 = vld [vmem:[#allocation31_spill] sm:$0xff] }
 0x3e7   :  { %4074 = vmatprep.subr.mxu1 %v2227_v44  ;;  %v2220_v44 = vmax.f32 %v2142_v62, 0.0  ;;  %v1094_v33 = vmax.f32 %v956_v24, 0.0  ;;  %v399_v62 = vpop.permute.xlu0 %398  ;;  %v891_v41 = vadd.f32 %v7084_v35, %v314_v5 }
 0x3e8   :  { %4075 = vmatpush3.msra.mxu1 %v2211_v63  ;;  %v4574_v63 = vld [vmem:[%s6830_s2 + $0x204] ss:$8 sps:$4 sm:$0xff]   ;;  %v976_v53 = vadd.f32 %v7080_v45, %v399_v62 }
 0x3e9   :  { %4076 = vmatprep.subr.mxu1 %v2226_v11  ;;  %v1093_v11 = vmax.f32 %v951_v58, 0.0  ;;  %v7083_v58 = vld [vmem:[#allocation42_spill] sm:$0xff] }
 0x3ea   :  { %4077 = vmatpush3.msra.mxu1 %v2210_v60  ;;  %v1016_v60 = vadd.f32 %v7061_v52, %v7060_v61  ;;  %v1098_v8 = vmax.f32 %v976_v53, 0.0  ;;  %v4572_v52 = vld [vmem:[%s6830_s2 + $0x200] ss:$8 sps:$4 sm:$0xff]  }
 0x3eb   :  { %4078 = vmatprep.subr.mxu1 %v2225_v7  ;;  %v1011_v7 = vadd.f32 %v7063_v19, %v7062_v0  ;;  %v2363_v38 = vpack.c.bf16 %v1094_v33, %v1093_v11  ;;  %v319_v24 = vpop.permute.xlu0 %318  ;;  %v7086_v11 = vld [vmem:[#allocation30_spill] sm:$0xff]  ;;  %v4577_v0 = vld [vmem:[%s6830_s2 + $0x210] ss:$8 sps:$4 sm:$0xff]  }
 0x3ec   :  { %4079 = vmatpush3.msra.mxu1 %v2209_v26  ;;  %v7065_v26 = vld [vmem:[#allocation87_spill] sm:$0xff] }
 0x3ed   :  { %4080 = vmatprep.subr.mxu1 %v2224_v57  ;;  %v936_v54 = vadd.f32 %v7066_v9, %v7065_v26  ;;  %v7067_v57 = vld [vmem:[#allocation93_spill] sm:$0xff]  ;;  %v1105_v4 = vmax.f32 %v1011_v7, 0.0  ;;  %v4578_v19 = vld [vmem:[%s6830_s2 + $0x224] ss:$8 sps:$4 sm:$0xff]   ;;  %v4580_v7 = vld [vmem:[%s6830_s2 + $0x220] ss:$8 sps:$4 sm:$0xff]  }
 0x3ee   :  { %4081 = vmatpush3.msra.mxu1 %v2208_v47  ;;  %v931_v29 = vadd.f32 %v7068_v59, %v7067_v57  ;;  %v1106_v47 = vmax.f32 %v1016_v60, 0.0  ;;  %v4575_v60 = vld [vmem:[%s6830_s2 + $0x214] ss:$8 sps:$4 sm:$0xff]   ;;  %v4586_v26 = vld [vmem:[%s6830_s2 + $0x240] ss:$8 sps:$4 sm:$0xff]  }
 0x3ef   :  { %4082 = vmatprep.subr.mxu1 %v2223_v25  ;;  %v1090_v28 = vmax.f32 %v936_v54, 0.0  ;;  %v7073_v25 = vld [vmem:[#allocation85_spill] sm:$0xff]  ;;  %v4592_v57 = vld [vmem:[%s6830_s2 + $0x264] ss:$8 sps:$4 sm:$0xff]   ;;  %v4590_v59 = vld [vmem:[%s6830_s2 + $0x260] ss:$8 sps:$4 sm:$0xff]  }
 0x3f0   :  { %4083 = vmatpush3.msra.mxu1 %v2207_v36  ;;  %v1089_v42 = vmax.f32 %v931_v29, 0.0  ;;  %v991_v1 = vadd.f32 %v7073_v25, %v7072_v12  ;;  %v2369_v49 = vpack.c.bf16 %v1106_v47, %v1105_v4  ;;  %v916_v36 = vadd.f32 %v7076_v46, %v7075_v2  ;;  %v4587_v9 = vld [vmem:[%s6830_s2 + $0x254] ss:$8 sps:$4 sm:$0xff]   ;;  %v4589_v54 = vld [vmem:[%s6830_s2 + $0x250] ss:$8 sps:$4 sm:$0xff]   ;;  %v6483_v46 = vpop.permute.xlu1 %2494 }
 0x3f1   :  { %4084 = vmatprep.subr.mxu1 %v2222_v30  ;;  %v1102_v30 = vmax.f32 %v996_v13, 0.0  ;;  %v4595_v29 = vld [vmem:[%s6830_s2 + $0x274] ss:$8 sps:$4 sm:$0xff]   ;;  %v4593_v47 = vld [vmem:[%s6830_s2 + $0x270] ss:$8 sps:$4 sm:$0xff]  }
 0x3f2   :  { %4085 = vmatpush3.msra.mxu1 %v2206_v3  ;;  %v2361_v10 = vpack.c.bf16 %v1090_v28, %v1089_v42  ;;  %v1101_v32 = vmax.f32 %v991_v1, 0.0  ;;  %v1086_v43 = vmax.f32 %v916_v36, 0.0  ;;  %v1085_v3 = vmax.f32 %v911_v16, 0.0  ;;  %v4598_v4 = vld [vmem:[%s6830_s2 + $0x284] ss:$8 sps:$4 sm:$0xff]   ;;  %v6493_v16 = vpop.permute.xlu0 %2498 }
 0x3f3   :  { %4086 = vmatprep.subr.mxu1 %v2221_v22  ;;  %v7081_v22 = vld [vmem:[#allocation79_spill] sm:$0xff]  ;;  %v4601_v28 = vld [vmem:[%s6830_s2 + $0x294] ss:$8 sps:$4 sm:$0xff]   ;;  %v4599_v42 = vld [vmem:[%s6830_s2 + $0x290] ss:$8 sps:$4 sm:$0xff]  }
 0x3f4   :  { %4087 = vmatpush3.msra.mxu1 %v2205_v27  ;;  %v971_v18 = vadd.f32 %v7081_v22, %v394_v48  ;;  %v2367_v40 = vpack.c.bf16 %v1102_v30, %v1101_v32  ;;  %v896_v27 = vadd.f32 %v7083_v58, %v319_v24  ;;  %v4607_v13 = vld [vmem:[%s6830_s2 + $0x2b4] ss:$8 sps:$4 sm:$0xff]   ;;  %v4605_v12 = vld [vmem:[%s6830_s2 + $0x2b0] ss:$8 sps:$4 sm:$0xff]   ;;  %v4610_v25 = vld [vmem:[%s6830_s2 + $0x2c4] ss:$8 sps:$4 sm:$0xff]   ;;  %v6491_v56 = vpop.permute.xlu1 %2430 }
 0x3f5   :  { %4088 = vmatprep.subr.mxu1 %v2220_v44  ;;  %v2359_v44 = vpack.c.bf16 %v1086_v43, %v1085_v3  ;;  %v4608_v1 = vld [vmem:[%s6830_s2 + $0x2c0] ss:$8 sps:$4 sm:$0xff]   ;;  %v4616_v2 = vld [vmem:[%s6830_s2 + $0x2e4] ss:$8 sps:$4 sm:$0xff]   ;;  %v4617_v48 = vld [vmem:[%s6830_s2 + $0x2f0] ss:$8 sps:$4 sm:$0xff]  }
 0x3f6   :  { %4089 = vmatpush3.msra.mxu1 %v2204_v23  ;;  %v7085_v23 = vld [vmem:[#allocation99_spill] sm:$0xff]  ;;  %v6500_v62 = vpop.permute.xlu0 %2486 }
 0x3f7   :  { %2319 = vmatmul.mubr.f32.vlgmr.msra.gmra.mxu1 %v2247_v31  ;;  %4093 = vmatprep.subr.bf16.mxu1 %v2372_v6  ;;  %v1097_v31 = vmax.f32 %v971_v18, 0.0  ;;  %v1081_v6 = vmax.f32 %v891_v41, 0.0  ;;  %v4614_v36 = vld [vmem:[%s6830_s2 + $0x2e0] ss:$8 sps:$4 sm:$0xff]  }
 0x3f8   :  { %4094 = vmatpush3.bf16.msra.mxu1 %v7064_v50  ;;  %2693 = vmatprep.mubr.bf16.mxu1 %v4574_v63  ;;  %v1082_v63 = vmax.f32 %v896_v27, 0.0  ;;  %v4583_v50 = vld [vmem:[%s6830_s2 + $0x230] ss:$8 sps:$4 sm:$0xff]  }
 0x3f9   :  { %4095 = vmatprep.subr.bf16.mxu1 %v2371_v37  ;;  %v2365_v33 = vpack.c.bf16 %v1098_v8, %v1097_v31  ;;  %v4581_v37 = vld [vmem:[%s6830_s2 + $0x234] ss:$8 sps:$4 sm:$0xff]  }
 0x3fa   :  { %v2357_v61 = vpack.c.bf16 %v1082_v63, %v1081_v6  ;;  %v6504_v32 = vpop.permute.xlu0 %2422 }
 0x3fc   :  { %4096 = vmatpush3.bf16.msra.mxu1 %v2363_v38  ;;  %v4584_v38 = vld [vmem:[%s6830_s2 + $0x244] ss:$8 sps:$4 sm:$0xff]  }
 0x3fd   :  { %4097 = vmatprep.subr.bf16.mxu1 %v7069_v15  ;;  %v4596_v15 = vld [vmem:[%s6830_s2 + $0x280] ss:$8 sps:$4 sm:$0xff]  }
 0x3fe   :  { %v6508_v43 = vpop.permute.xlu0 %2478 }
 0x400   :  { %4098 = vmatpush3.bf16.msra.mxu1 %v7074_v20  ;;  %v4611_v20 = vld [vmem:[%s6830_s2 + $0x2d0] ss:$8 sps:$4 sm:$0xff]  }
 0x401   :  { %4099 = vmatprep.subr.bf16.mxu1 %v2369_v49  ;;  %v4613_v49 = vld [vmem:[%s6830_s2 + $0x2d4] ss:$8 sps:$4 sm:$0xff]  }
 0x402   :  { %v6512_v45 = vpop.permute.xlu0 %2414 }
 0x404   :  { %4100 = vmatpush3.bf16.msra.mxu1 %v2361_v10  ;;  %v6495_v10 = vpop.permute.xlu1 %2434 }
 0x405   :  { %4101 = vmatprep.subr.bf16.mxu1 %v7079_v21 }
 0x406   :  { %v6516_v22 = vpop.permute.xlu0 %2470 }
 0x408   :  { %4102 = vmatpush3.bf16.msra.mxu1 %v7082_v39  ;;  %v6502_v30 = vpop.permute.xlu1 %2490 }
 0x409   :  { %4103 = vmatprep.subr.bf16.mxu1 %v2367_v40 }
 0x40a   :  { %v6520_v5 = vpop.permute.xlu0 %2406 }
 0x40c   :  { %4104 = vmatpush3.bf16.msra.mxu1 %v2359_v44  ;;  %v6506_v21 = vpop.permute.xlu1 %2426 }
 0x40d   :  { %4105 = vmatprep.subr.bf16.mxu1 %v7085_v23 }
 0x40e   :  { %v6524_v40 = vpop.permute.xlu0 %2462 }
 0x410   :  { %4106 = vmatpush3.bf16.msra.mxu1 %v7086_v11  ;;  %v6510_v3 = vpop.permute.xlu1 %2482 }
 0x411   :  { %4107 = vmatprep.subr.bf16.mxu1 %v2365_v33 }
 0x412   :  { %v2399_v27 = vpop.permute.xlu0 %2398 }
 0x414   :  { %4108 = vmatpush3.bf16.msra.mxu1 %v2357_v61  ;;  %v6514_v53 = vpop.permute.xlu1 %2418 }
 0x416   :  { %v6530_v8 = vpop.permute.xlu0 %2454 }
 0x417   :  { %2694 = vmatmul.mubr.bf16.vlgmr.msra.gmra.mxu1 %v4572_v52 }
 0x418   :  { %2701 = vmatprep.mubr.bf16.mxu1 %v4575_v60  ;;  %v6518_v18 = vpop.permute.xlu1 %2474 }
 0x41a   :  { %v2391_v23 = vpop.permute.xlu0 %2390 }
 0x41c   :  { %v6522_v24 = vpop.permute.xlu1 %2410 }
 0x41e   :  { %v6534_v6 = vpop.permute.xlu0 %2446 }
 0x41f   :  { %2702 = vmatmul.mubr.bf16.gmra.mxu1 %v4577_v0 }
 0x420   :  { %2709 = vmatprep.mubr.bf16.mxu1 %v4578_v19  ;;  %v6526_v39 = vpop.permute.xlu1 %2466 }
 0x422   :  { %v2383_v11 = vpop.permute.xlu0 %2382 }
 0x424   :  { %v2403_v44 = vpop.permute.xlu1 %2402 }
 0x426   :  { %v6538_v52 = vpop.permute.xlu0 %2438 }
 0x427   :  { %2710 = vmatmul.mubr.bf16.gmra.mxu1 %v4580_v7 }
 0x428   :  { %2717 = vmatprep.mubr.bf16.mxu1 %v4581_v37  ;;  %v6532_v31 = vpop.permute.xlu1 %2458 }
 0x42a   :  { %v2375_v37 = vpop.permute.xlu0 %2374 }
 0x42c   :  { %v2395_v63 = vpop.permute.xlu1 %2394 }
 0x42f   :  { %2718 = vmatmul.mubr.bf16.gmra.mxu1 %v4583_v50 }
 0x430   :  { %2725 = vmatprep.mubr.bf16.mxu1 %v4584_v38  ;;  %v6536_v33 = vpop.permute.xlu1 %2450 }
 0x434   :  { %v2387_v61 = vpop.permute.xlu1 %2386 }
 0x437   :  { %2726 = vmatmul.mubr.bf16.gmra.mxu1 %v4586_v26 }
 0x438   :  { %2733 = vmatprep.mubr.bf16.mxu1 %v4587_v9  ;;  %v6540_v0 = vpop.permute.xlu1 %2442 }
 0x43f   :  { %2734 = vmatmul.mubr.bf16.gmra.mxu1 %v4589_v54  ;;  %v2379_v54 = vpop.permute.xlu1 %2378 }
 0x440   :  { %2741 = vmatprep.mubr.bf16.mxu1 %v4592_v57 }
 0x447   :  { %2742 = vmatmul.mubr.bf16.gmra.mxu1 %v4590_v59 }
 0x448   :  { %2749 = vmatprep.mubr.bf16.mxu1 %v4595_v29 }
 0x44f   :  { %2750 = vmatmul.mubr.bf16.gmra.mxu1 %v4593_v47 }
 0x450   :  { %2757 = vmatprep.mubr.bf16.mxu1 %v4598_v4 }
 0x457   :  { %2758 = vmatmul.mubr.bf16.gmra.mxu1 %v4596_v15 }
 0x458   :  { %2765 = vmatprep.mubr.bf16.mxu1 %v4601_v28 }
 0x45f   :  { %2766 = vmatmul.mubr.bf16.gmra.mxu1 %v4599_v42 }
 0x460   :  { %2773 = vmatprep.mubr.bf16.mxu1 %v4604_v34 }
 0x467   :  { %2774 = vmatmul.mubr.bf16.gmra.mxu1 %v4602_v51 }
 0x468   :  { %2781 = vmatprep.mubr.bf16.mxu1 %v4607_v13 }
 0x46f   :  { %2782 = vmatmul.mubr.bf16.gmra.mxu1 %v4605_v12 }
 0x470   :  { %2789 = vmatprep.mubr.bf16.mxu1 %v4610_v25 }
 0x477   :  { %2790 = vmatmul.mubr.bf16.gmra.mxu1 %v4608_v1 }
 0x478   :  { %2797 = vmatprep.mubr.bf16.mxu1 %v4613_v49 }
 0x47f   :  { %2798 = vmatmul.mubr.bf16.gmra.mxu1 %v4611_v20 }
 0x480   :  { %2805 = vmatprep.mubr.bf16.mxu1 %v4616_v2 }
 0x487   :  { %2806 = vmatmul.mubr.bf16.gmra.mxu1 %v4614_v36 }
 0x488   :  { %2813 = vmatprep.mubr.bf16.mxu1 %v4619_v17 }
 0x48f   :  { %2814 = vmatmul.mubr.bf16.gmra.mxu1 %v4617_v48 }
 0x4b7   :  { %v4090_v58 = vpop.f32.mrf.mxu1 }
 0x4b9   :  { %v4091_v35 = vpop.f32.mrf.mxu1 }
 0x4ba   :  { %v6528_v41 = vadd.f32 %v4091_v35, %v4090_v58 }
 0x4bc   :  { %7087 = vst [vmem:[#allocation9_spill] sm:$0xff] %v6528_v41 }
 0x4d7   :  { %v4109_v60 = vpop.f32.mrf.mxu1 }
 0x4d9   :  { %v4110_v19 = vpop.f32.mrf.mxu1 }
 0x4da   :  { %v4111_v7 = vadd.f32 %v4110_v19, %v4109_v60 }
 0x4db   :  { %v4112_v50 = vpop.f32.mrf.mxu1 }
 0x4dc   :  { %v2696_v26 = vadd.f32 %v4111_v7, %v2375_v37 }
 0x4dd   :  { %v4113_v38 = vpop.f32.mrf.mxu1 }
 0x4de   :  { %v4114_v9 = vadd.f32 %v4113_v38, %v4112_v50  ;;  %v2822_v47 = vmax.f32 %v2696_v26, 0.0 }
 0x4df   :  { %v4115_v57 = vpop.f32.mrf.mxu1 }
 0x4e0   :  { %v2699_v59 = vadd.f32 %v4114_v9, %v2379_v54 }
 0x4e1   :  { %v4116_v29 = vpop.f32.mrf.mxu1 }
 0x4e2   :  { %v2823_v4 = vmax.f32 %v2699_v59, 0.0  ;;  %v4117_v15 = vadd.f32 %v4116_v29, %v4115_v57 }
 0x4e3   :  { %v4118_v28 = vpop.f32.mrf.mxu1 }
 0x4e4   :  { %v6542_v42 = vpack.c.bf16 %v2823_v4, %v2822_v47  ;;  %v2704_v51 = vadd.f32 %v4117_v15, %v2383_v11 }
 0x4e5   :  { %v4119_v34 = vpop.f32.mrf.mxu1 }
 0x4e6   :  { %v4120_v13 = vadd.f32 %v4119_v34, %v4118_v28  ;;  %v2824_v49 = vmax.f32 %v2704_v51, 0.0 }
 0x4e7   :  { %v4121_v12 = vpop.f32.mrf.mxu1 }
 0x4e8   :  { %v2707_v25 = vadd.f32 %v4120_v13, %v2387_v61 }
 0x4e9   :  { %v4122_v1 = vpop.f32.mrf.mxu1 }
 0x4ea   :  { %v2825_v20 = vmax.f32 %v2707_v25, 0.0  ;;  %v4123_v2 = vadd.f32 %v4122_v1, %v4121_v12 }
 0x4eb   :  { %v4124_v36 = vpop.f32.mrf.mxu1 }
 0x4ec   :  { %v6544_v17 = vpack.c.bf16 %v2825_v20, %v2824_v49  ;;  %v2712_v58 = vadd.f32 %v4123_v2, %v2391_v23 }
 0x4ed   :  { %v4125_v48 = vpop.f32.mrf.mxu1 }
 0x4ee   :  { %v4126_v35 = vadd.f32 %v4125_v48, %v4124_v36  ;;  %v2826_v37 = vmax.f32 %v2712_v58, 0.0 }
 0x4ef   :  { %v4127_v60 = vpop.f32.mrf.mxu1 }
 0x4f0   :  { %v2715_v19 = vadd.f32 %v4126_v35, %v2395_v63  ;;  %v4622_v63 = vld [vmem:[%s6830_s2 + $0x304] ss:$8 sps:$4 sm:$0xff]  }
 0x4f1   :  { %v4128_v7 = vpop.f32.mrf.mxu1  ;;  %3223 = vmatprep.mubr.bf16.mxu0 %v4622_v63 }
 0x4f2   :  { %v2827_v50 = vmax.f32 %v2715_v19, 0.0  ;;  %v4129_v38 = vadd.f32 %v4128_v7, %v4127_v60 }
 0x4f3   :  { %v4130_v11 = vpop.f32.mrf.mxu1 }
 0x4f4   :  { %v6546_v26 = vpack.c.bf16 %v2827_v50, %v2826_v37  ;;  %v2720_v9 = vadd.f32 %v4129_v38, %v2399_v27 }
 0x4f5   :  { %v4131_v61 = vpop.f32.mrf.mxu1 }
 0x4f6   :  { %v4132_v54 = vadd.f32 %v4131_v61, %v4130_v11  ;;  %v2828_v47 = vmax.f32 %v2720_v9, 0.0 }
 0x4f7   :  { %v4133_v57 = vpop.f32.mrf.mxu1 }
 0x4f8   :  { %v2723_v59 = vadd.f32 %v4132_v54, %v2403_v44 }
 0x4f9   :  { %v4134_v29 = vpop.f32.mrf.mxu1 }
 0x4fa   :  { %v2829_v4 = vmax.f32 %v2723_v59, 0.0  ;;  %v4135_v15 = vadd.f32 %v4134_v29, %v4133_v57 }
 0x4fb   :  { %v4136_v23 = vpop.f32.mrf.mxu1 }
 0x4fc   :  { %v6551_v28 = vpack.c.bf16 %v2829_v4, %v2828_v47  ;;  %v2728_v51 = vadd.f32 %v4135_v15, %v6520_v5 }
 0x4fd   :  { %v4137_v34 = vpop.f32.mrf.mxu1 }
 0x4fe   :  { %v4138_v13 = vadd.f32 %v4137_v34, %v4136_v23  ;;  %v2830_v25 = vmax.f32 %v2728_v51, 0.0 }
 0x4ff   :  { %v4139_v27 = vpop.f32.mrf.mxu1 }
 0x500   :  { %v2731_v12 = vadd.f32 %v4138_v13, %v6522_v24 }
 0x501   :  { %v4140_v44 = vpop.f32.mrf.mxu1 }
 0x502   :  { %v2831_v1 = vmax.f32 %v2731_v12, 0.0  ;;  %v4141_v49 = vadd.f32 %v4140_v44, %v4139_v27 }
 0x503   :  { %v4142_v20 = vpop.f32.mrf.mxu1 }
 0x504   :  { %v6555_v2 = vpack.c.bf16 %v2831_v1, %v2830_v25  ;;  %v2736_v48 = vadd.f32 %v4141_v49, %v6512_v45 }
 0x505   :  { %v4143_v36 = vpop.f32.mrf.mxu1 }
 0x506   :  { %v4144_v58 = vadd.f32 %v4143_v36, %v4142_v20  ;;  %v2832_v5 = vmax.f32 %v2736_v48, 0.0 }
 0x507   :  { %v4145_v35 = vpop.f32.mrf.mxu1 }
 0x508   :  { %v2739_v60 = vadd.f32 %v4144_v58, %v6514_v53 }
 0x509   :  { %v4146_v19 = vpop.f32.mrf.mxu1 }
 0x50a   :  { %v2833_v7 = vmax.f32 %v2739_v60, 0.0  ;;  %v4147_v37 = vadd.f32 %v4146_v19, %v4145_v35 }
 0x50b   :  { %v4148_v50 = vpop.f32.mrf.mxu1 }
 0x50c   :  { %v6559_v24 = vpack.c.bf16 %v2833_v7, %v2832_v5  ;;  %v2744_v11 = vadd.f32 %v4147_v37, %v6504_v32 }
 0x50d   :  { %v4149_v38 = vpop.f32.mrf.mxu1 }
 0x50e   :  { %v4150_v61 = vadd.f32 %v4149_v38, %v4148_v50  ;;  %v2834_v45 = vmax.f32 %v2744_v11, 0.0 }
 0x50f   :  { %v4151_v9 = vpop.f32.mrf.mxu1 }
 0x510   :  { %v2747_v54 = vadd.f32 %v4150_v61, %v6506_v21 }
 0x511   :  { %v4152_v57 = vpop.f32.mrf.mxu1 }
 0x512   :  { %v2835_v59 = vmax.f32 %v2747_v54, 0.0  ;;  %v4153_v29 = vadd.f32 %v4152_v57, %v4151_v9 }
 0x513   :  { %v4154_v47 = vpop.f32.mrf.mxu1 }
 0x514   :  { %v6563_v53 = vpack.c.bf16 %v2835_v59, %v2834_v45  ;;  %v2752_v15 = vadd.f32 %v4153_v29, %v6491_v56 }
 0x515   :  { %v4155_v4 = vpop.f32.mrf.mxu1 }
 0x516   :  { %v4156_v23 = vadd.f32 %v4155_v4, %v4154_v47  ;;  %v2836_v32 = vmax.f32 %v2752_v15, 0.0 }
 0x517   :  { %v4157_v63 = vpop.f32.mrf.mxu1 }
 0x518   :  { %v2755_v34 = vadd.f32 %v4156_v23, %v6495_v10 }
 0x519   :  { %v4158_v51 = vpop.f32.mrf.mxu1 }
 0x51a   :  { %v2837_v13 = vmax.f32 %v2755_v34, 0.0  ;;  %v4159_v27 = vadd.f32 %v4158_v51, %v4157_v63 }
 0x51b   :  { %v4160_v12 = vpop.f32.mrf.mxu1 }
 0x51c   :  { %v6567_v21 = vpack.c.bf16 %v2837_v13, %v2836_v32  ;;  %v2760_v25 = vadd.f32 %v4159_v27, %v6538_v52 }
 0x51d   :  { %v4161_v44 = vpop.f32.mrf.mxu1 }
 0x51e   :  { %v4162_v1 = vadd.f32 %v4161_v44, %v4160_v12  ;;  %v2838_v56 = vmax.f32 %v2760_v25, 0.0 }
 0x51f   :  { %v4163_v49 = vpop.f32.mrf.mxu1 }
 0x520   :  { %v2763_v20 = vadd.f32 %v4162_v1, %v6540_v0 }
 0x521   :  { %v4164_v36 = vpop.f32.mrf.mxu1 }
 0x522   :  { %v2839_v48 = vmax.f32 %v2763_v20, 0.0  ;;  %v4165_v58 = vadd.f32 %v4164_v36, %v4163_v49 }
 0x523   :  { %v4166_v35 = vpop.f32.mrf.mxu1 }
 0x524   :  { %v6571_v10 = vpack.c.bf16 %v2839_v48, %v2838_v56  ;;  %v2768_v19 = vadd.f32 %v4165_v58, %v6534_v6 }
 0x525   :  { %v4167_v60 = vpop.f32.mrf.mxu1 }
 0x526   :  { %v4168_v5 = vadd.f32 %v4167_v60, %v4166_v35  ;;  %v2840_v52 = vmax.f32 %v2768_v19, 0.0 }
 0x527   :  { %v4169_v7 = vpop.f32.mrf.mxu1 }
 0x528   :  { %v2771_v37 = vadd.f32 %v4168_v5, %v6536_v33 }
 0x529   :  { %v4170_v50 = vpop.f32.mrf.mxu1 }
 0x52a   :  { %v2841_v38 = vmax.f32 %v2771_v37, 0.0 }
 0x52b   :  { %v4172_v11 = vpop.f32.mrf.mxu1 }
 0x52c   :  { %v6575_v61 = vpack.c.bf16 %v2841_v38, %v2840_v52 }
 0x52d   :  { %v4173_v0 = vpop.f32.mrf.mxu1 }
 0x52f   :  { %v4175_v9 = vpop.f32.mrf.mxu1 }
 0x531   :  { %v4176_v54 = vpop.f32.mrf.mxu1 }
 0x533   :  { %v4178_v57 = vpop.f32.mrf.mxu1 }
 0x535   :  { %v4179_v45 = vpop.f32.mrf.mxu1 }
 0x537   :  { %v4181_v59 = vpop.f32.mrf.mxu1 }
 0x539   :  { %v4182_v29 = vpop.f32.mrf.mxu1 }
 0x53b   :  { %v4184_v47 = vpop.f32.mrf.mxu1 }
 0x53d   :  { %v4185_v4 = vpop.f32.mrf.mxu1 }
 0x53e   :  { %v4186_v19 = vadd.f32 %v4185_v4, %v4184_v47  ;;  %v4174_v47 = vadd.f32 %v4173_v0, %v4172_v11 }
 0x53f   :  { %v4187_v6 = vpop.f32.mrf.mxu1 }
 0x540   :  { %v2779_v4 = vadd.f32 %v4174_v47, %v6532_v31  ;;  %v4623_v31 = vld [vmem:[%s6830_s2 + $0x310] ss:$8 sps:$4 sm:$0xff]  }
 0x541   :  { %v4188_v15 = vpop.f32.mrf.mxu1 }
 0x542   :  { %v4189_v58 = vadd.f32 %v4188_v15, %v4187_v6  ;;  %v4643_v15 = vld [vmem:[%s6830_s2 + $0x374] ss:$8 sps:$4 sm:$0xff]  }
 0x543   :  { %v4190_v23 = vpop.f32.mrf.mxu1 }
 0x545   :  { %v4191_v63 = vpop.f32.mrf.mxu1 }
 0x546   :  { %v4192_v20 = vadd.f32 %v4191_v63, %v4190_v23 }
 0x547   :  { %v4193_v33 = vpop.f32.mrf.mxu1 }
 0x548   :  { %v2803_v5 = vadd.f32 %v4192_v20, %v6510_v3  ;;  %v4653_v20 = vld [vmem:[%s6830_s2 + $0x3b0] ss:$8 sps:$4 sm:$0xff]  }
 0x549   :  { %v4194_v34 = vpop.f32.mrf.mxu1 }
 0x54a   :  { %v4195_v1 = vadd.f32 %v4194_v34, %v4193_v33  ;;  %v2800_v33 = vadd.f32 %v4189_v58, %v6508_v43  ;;  %v2849_v34 = vmax.f32 %v2803_v5, 0.0  ;;  %v4659_v58 = vld [vmem:[%s6830_s2 + $0x3d0] ss:$8 sps:$4 sm:$0xff]  }
 0x54b   :  { %v4196_v51 = vpop.f32.mrf.mxu1  ;;  %v4665_v5 = vld [vmem:[%s6830_s2 + $0x3f0] ss:$8 sps:$4 sm:$0xff]  }
 0x54c   :  { %v2808_v35 = vadd.f32 %v4195_v1, %v6500_v62  ;;  %v2848_v3 = vmax.f32 %v2800_v33, 0.0  ;;  %v4650_v1 = vld [vmem:[%s6830_s2 + $0x3a0] ss:$8 sps:$4 sm:$0xff]  }
 0x54d   :  { %v4197_v32 = vpop.f32.mrf.mxu1 }
 0x54e   :  { %v4198_v12 = vadd.f32 %v4197_v32, %v4196_v51  ;;  %v4183_v51 = vadd.f32 %v4182_v29, %v4181_v59  ;;  %v2850_v23 = vmax.f32 %v2808_v35, 0.0  ;;  %v2900_v43 = vpack.c.bf16 %v2849_v34, %v2848_v3  ;;  %v4641_v32 = vld [vmem:[%s6830_s2 + $0x370] ss:$8 sps:$4 sm:$0xff]   ;;  %v4664_v35 = vld [vmem:[%s6830_s2 + $0x3e4] ss:$8 sps:$4 sm:$0xff]  }
 0x54f   :  { %v4199_v13 = vpop.f32.mrf.mxu1 }
 0x550   :  { %v2811_v36 = vadd.f32 %v4198_v12, %v6502_v30  ;;  %v4180_v30 = vadd.f32 %v4179_v45, %v4178_v57  ;;  %v2792_v62 = vadd.f32 %v4183_v51, %v6516_v22  ;;  %v4171_v57 = vadd.f32 %v4170_v50, %v4169_v7  ;;  %v4635_v50 = vld [vmem:[%s6830_s2 + $0x350] ss:$8 sps:$4 sm:$0xff]   ;;  %v4649_v12 = vld [vmem:[%s6830_s2 + $0x394] ss:$8 sps:$4 sm:$0xff]  }
 0x551   :  { %v4200_v27 = vpop.f32.mrf.mxu1 }
 0x552   :  { %v4201_v44 = vadd.f32 %v4200_v27, %v4199_v13  ;;  %v2851_v37 = vmax.f32 %v2811_v36, 0.0  ;;  %v2787_v59 = vadd.f32 %v4180_v30, %v6526_v39  ;;  %v2846_v45 = vmax.f32 %v2792_v62, 0.0  ;;  %v4646_v13 = vld [vmem:[%s6830_s2 + $0x384] ss:$8 sps:$4 sm:$0xff]   ;;  %v4644_v27 = vld [vmem:[%s6830_s2 + $0x380] ss:$8 sps:$4 sm:$0xff]  }
 0x553   :  { %v4202_v25 = vpop.f32.mrf.mxu1  ;;  %v2776_v22 = vadd.f32 %v4171_v57, %v6530_v8  ;;  %v2843_v39 = vmax.f32 %v2779_v4, 0.0  ;;  %v4625_v8 = vld [vmem:[%s6830_s2 + $0x314] ss:$8 sps:$4 sm:$0xff]   ;;  %v4658_v36 = vld [vmem:[%s6830_s2 + $0x3c4] ss:$8 sps:$4 sm:$0xff]  }
 0x554   :  { %v2816_v56 = vadd.f32 %v4201_v44, %v6483_v46  ;;  %v2795_v46 = vadd.f32 %v4186_v19, %v6518_v18  ;;  %v2901_v6 = vpack.c.bf16 %v2851_v37, %v2850_v23  ;;  %v4647_v44 = vld [vmem:[%s6830_s2 + $0x390] ss:$8 sps:$4 sm:$0xff]   ;;  %v4667_v19 = vld [vmem:[%s6830_s2 + $0x3f4] ss:$8 sps:$4 sm:$0xff]  }
 0x555   :  { %v4203_v49 = vpop.f32.mrf.mxu1 }
 0x556   :  { %v4204_v48 = vadd.f32 %v4203_v49, %v4202_v25  ;;  %v2852_v52 = vmax.f32 %v2816_v56, 0.0  ;;  %v2847_v29 = vmax.f32 %v2795_v46, 0.0  ;;  %v4652_v25 = vld [vmem:[%s6830_s2 + $0x3a4] ss:$8 sps:$4 sm:$0xff]   ;;  %v4655_v49 = vld [vmem:[%s6830_s2 + $0x3b4] ss:$8 sps:$4 sm:$0xff]  }
 0x557   :  { %v4656_v56 = vld [vmem:[%s6830_s2 + $0x3c0] ss:$8 sps:$4 sm:$0xff]  }
 0x558   :  { %v2819_v60 = vadd.f32 %v4204_v48, %v6493_v16  ;;  %v4177_v16 = vadd.f32 %v4176_v54, %v4175_v9  ;;  %v2899_v9 = vpack.c.bf16 %v2847_v29, %v2846_v45  ;;  %v4638_v54 = vld [vmem:[%s6830_s2 + $0x360] ss:$8 sps:$4 sm:$0xff]   ;;  %v4661_v48 = vld [vmem:[%s6830_s2 + $0x3d4] ss:$8 sps:$4 sm:$0xff]  }
 0x55a   :  { %v2853_v38 = vmax.f32 %v2819_v60, 0.0  ;;  %v2784_v18 = vadd.f32 %v4177_v16, %v6524_v40  ;;  %v4620_v40 = vld [vmem:[%s6830_s2 + $0x300] ss:$8 sps:$4 sm:$0xff]  }
 0x55b   :  { %v4662_v60 = vld [vmem:[%s6830_s2 + $0x3e0] ss:$8 sps:$4 sm:$0xff]  }
 0x55c   :  { %v2902_v63 = vpack.c.bf16 %v2853_v38, %v2852_v52  ;;  %v2844_v11 = vmax.f32 %v2784_v18, 0.0 }
 0x55e   :  { %4205 = vmatprep.subr.bf16.mxu0 %v2902_v63 }
 0x55f   :  { %4206 = vmatpush3.bf16.msra.mxu0 %v6567_v21  ;;  %v2845_v21 = vmax.f32 %v2787_v59, 0.0 }
 0x560   :  { %4207 = vmatprep.subr.bf16.mxu0 %v2901_v6 }
 0x561   :  { %v2898_v0 = vpack.c.bf16 %v2845_v21, %v2844_v11  ;;  %v6711_v11 = vld [vmem:[%s6831_s3 + $0x1] ss:$2 sm:$0x3] }
 0x562   :  { %7095 = vst [vmem:[#allocation20_spill] sm:$0xff] %v6711_v11 }
 0x563   :  { %4208 = vmatpush3.bf16.msra.mxu0 %v6563_v53  ;;  %v2842_v53 = vmax.f32 %v2776_v22, 0.0 }
 0x564   :  { %4209 = vmatprep.subr.bf16.mxu0 %v2900_v43 }
 0x565   :  { %v2897_v7 = vpack.c.bf16 %v2843_v39, %v2842_v53 }
 0x567   :  { %4210 = vmatpush3.bf16.msra.mxu0 %v6559_v24  ;;  %v4632_v24 = vld [vmem:[%s6830_s2 + $0x340] ss:$8 sps:$4 sm:$0xff]  }
 0x568   :  { %4211 = vmatprep.subr.bf16.mxu0 %v2899_v9 }
 0x56b   :  { %4212 = vmatpush3.bf16.msra.mxu0 %v6555_v2  ;;  %v4634_v2 = vld [vmem:[%s6830_s2 + $0x344] ss:$8 sps:$4 sm:$0xff]  }
 0x56c   :  { %4213 = vmatprep.subr.bf16.mxu0 %v2898_v0  ;;  %v7096_v0 = vsub.s32 1, %v7052_v14 }
 0x56e   :  { %v3400_v53 = vrot.slane %v6711_v11, %v7096_v0 }
 0x56f   :  { %4214 = vmatpush3.bf16.msra.mxu0 %v6551_v28  ;;  %v4629_v28 = vld [vmem:[%s6830_s2 + $0x330] ss:$8 sps:$4 sm:$0xff]  }
 0x570   :  { %4215 = vmatprep.subr.bf16.mxu0 %v2897_v7  ;;  %3467 = vmatprep.mubr.f32.mxu1 %v3400_v53 }
 0x573   :  { %4216 = vmatpush3.bf16.msra.mxu0 %v6546_v26  ;;  %v4631_v26 = vld [vmem:[%s6830_s2 + $0x334] ss:$8 sps:$4 sm:$0xff]  }
 0x574   :  { %4217 = vmatprep.subr.bf16.mxu0 %v6575_v61  ;;  %v4640_v61 = vld [vmem:[%s6830_s2 + $0x364] ss:$8 sps:$4 sm:$0xff]  }
 0x577   :  { %4218 = vmatpush3.bf16.msra.mxu0 %v6544_v17  ;;  %v4628_v17 = vld [vmem:[%s6830_s2 + $0x324] ss:$8 sps:$4 sm:$0xff]  }
 0x578   :  { %4219 = vmatprep.subr.bf16.mxu0 %v6571_v10  ;;  %v4637_v10 = vld [vmem:[%s6830_s2 + $0x354] ss:$8 sps:$4 sm:$0xff]  }
 0x57b   :  { %4220 = vmatpush3.bf16.msra.mxu0 %v6542_v42  ;;  %v4626_v42 = vld [vmem:[%s6830_s2 + $0x320] ss:$8 sps:$4 sm:$0xff]  }
 0x57e   :  { %3224 = vmatmul.mubr.bf16.vlgmr.msra.gmra.mxu0 %v4620_v40 }
 0x57f   :  { %3231 = vmatprep.mubr.bf16.mxu0 %v4625_v8  ;;  %v3386_v8 = vld [vmem:[%s6829_s4 + $0x1] sm:$0x1] }
 0x580   :  { %3389 = vperm.xlu0 %4475, %v3386_v8  }
 0x586   :  { %3232 = vmatmul.mubr.bf16.gmra.mxu0 %v4623_v31 }
 0x587   :  { %3239 = vmatprep.mubr.bf16.mxu0 %v4628_v17 }
 0x58e   :  { %3240 = vmatmul.mubr.bf16.gmra.mxu0 %v4626_v42 }
 0x58f   :  { %3247 = vmatprep.mubr.bf16.mxu0 %v4631_v26 }
 0x596   :  { %3248 = vmatmul.mubr.bf16.gmra.mxu0 %v4629_v28 }
 0x597   :  { %3255 = vmatprep.mubr.bf16.mxu0 %v4634_v2 }
 0x59e   :  { %3256 = vmatmul.mubr.bf16.gmra.mxu0 %v4632_v24 }
 0x59f   :  { %3263 = vmatprep.mubr.bf16.mxu0 %v4637_v10 }
 0x5a6   :  { %3264 = vmatmul.mubr.bf16.gmra.mxu0 %v4635_v50 }
 0x5a7   :  { %3271 = vmatprep.mubr.bf16.mxu0 %v4640_v61 }
 0x5ae   :  { %3272 = vmatmul.mubr.bf16.gmra.mxu0 %v4638_v54 }
 0x5af   :  { %3279 = vmatprep.mubr.bf16.mxu0 %v4643_v15 }
 0x5b6   :  { %3280 = vmatmul.mubr.bf16.gmra.mxu0 %v4641_v32 }
 0x5b7   :  { %3287 = vmatprep.mubr.bf16.mxu0 %v4646_v13 }
 0x5be   :  { %3288 = vmatmul.mubr.bf16.gmra.mxu0 %v4644_v27 }
 0x5bf   :  { %3295 = vmatprep.mubr.bf16.mxu0 %v4649_v12 }
 0x5c6   :  { %3296 = vmatmul.mubr.bf16.gmra.mxu0 %v4647_v44 }
 0x5c7   :  { %3303 = vmatprep.mubr.bf16.mxu0 %v4652_v25 }
 0x5ce   :  { %3304 = vmatmul.mubr.bf16.gmra.mxu0 %v4650_v1 }
 0x5cf   :  { %3311 = vmatprep.mubr.bf16.mxu0 %v4655_v49 }
 0x5d6   :  { %3312 = vmatmul.mubr.bf16.gmra.mxu0 %v4653_v20 }
 0x5d7   :  { %3319 = vmatprep.mubr.bf16.mxu0 %v4658_v36  ;;  %v6735_v36 = vpop.permute.xlu0 %3028 }
 0x5de   :  { %3320 = vmatmul.mubr.bf16.gmra.mxu0 %v4656_v56  ;;  %v2965_v56 = vpop.permute.xlu1 %2964 }
 0x5df   :  { %3327 = vmatprep.mubr.bf16.mxu0 %v4661_v48 }
 0x5e6   :  { %3328 = vmatmul.mubr.bf16.gmra.mxu0 %v4659_v58 }
 0x5e7   :  { %3335 = vmatprep.mubr.bf16.mxu0 %v4664_v35 }
 0x5ee   :  { %3336 = vmatmul.mubr.bf16.gmra.mxu0 %v4662_v60 }
 0x5ef   :  { %3343 = vmatprep.mubr.bf16.mxu0 %v4667_v19  ;;  %v2961_v19 = vpop.permute.xlu0 %2960 }
 0x5f6   :  { %3344 = vmatmul.mubr.bf16.gmra.mxu0 %v4665_v5 }
 0x63e   :  { %v4221_v37 = vpop.f32.mrf.mxu0 }
 0x640   :  { %v4222_v52 = vpop.f32.mrf.mxu0 }
 0x641   :  { %v6692_v38 = vadd.f32 %v4222_v52, %v4221_v37  ;;  %v3025_v37 = vpop.permute.xlu1 %3024 }
 0x642   :  { %v4224_v51 = vpop.f32.mrf.mxu0 }
 0x643   :  { %7088 = vst [vmem:[#allocation10_spill] sm:$0xff] %v6692_v38 }
 0x644   :  { %v4225_v33 = vpop.f32.mrf.mxu0 }
 0x645   :  { %v6694_v23 = vadd.f32 %v4225_v33, %v4224_v51 }
 0x646   :  { %v4227_v63 = vpop.f32.mrf.mxu0 }
 0x647   :  { %7089 = vst [vmem:[#allocation4_spill] sm:$0xff] %v6694_v23 }
 0x648   :  { %v4228_v30 = vpop.f32.mrf.mxu0 }
 0x649   :  { %v6696_v46 = vadd.f32 %v4228_v30, %v4227_v63  ;;  %v2957_v30 = vpop.permute.xlu0 %2956 }
 0x64a   :  { %v4230_v34 = vpop.f32.mrf.mxu0 }
 0x64b   :  { %7090 = vst [vmem:[#allocation5_spill] sm:$0xff] %v6696_v46 }
 0x64c   :  { %v4231_v6 = vpop.f32.mrf.mxu0 }
 0x64d   :  { %v6698_v16 = vadd.f32 %v4231_v6, %v4230_v34  ;;  %v3021_v34 = vpop.permute.xlu1 %3020 }
 0x64e   :  { %v4233_v62 = vpop.f32.mrf.mxu0 }
 0x64f   :  { %7091 = vst [vmem:[#allocation39_spill] sm:$0xff] %v6698_v16 }
 0x650   :  { %v4234_v3 = vpop.f32.mrf.mxu0 }
 0x651   :  { %v6700_v47 = vadd.f32 %v4234_v3, %v4233_v62 }
 0x652   :  { %v4236_v59 = vpop.f32.mrf.mxu0 }
 0x653   :  { %7092 = vst [vmem:[#allocation40_spill] sm:$0xff] %v6700_v47 }
 0x654   :  { %v4237_v29 = vpop.f32.mrf.mxu0 }
 0x655   :  { %v6702_v43 = vadd.f32 %v4237_v29, %v4236_v59  ;;  %v2953_v29 = vpop.permute.xlu0 %2952 }
 0x656   :  { %v4239_v57 = vpop.f32.mrf.mxu0 }
 0x657   :  { %7093 = vst [vmem:[#allocation33_spill] sm:$0xff] %v6702_v43 }
 0x658   :  { %v4240_v18 = vpop.f32.mrf.mxu0 }
 0x659   :  { %v6704_v45 = vadd.f32 %v4240_v18, %v4239_v57  ;;  %v3017_v18 = vpop.permute.xlu1 %3016 }
 0x65a   :  { %v4242_v4 = vpop.f32.mrf.mxu0 }
 0x65b   :  { %7094 = vst [vmem:[#allocation34_spill] sm:$0xff] %v6704_v45 }
 0x65c   :  { %v4243_v21 = vpop.f32.mrf.mxu0 }
 0x65d   :  { %v6706_v9 = vadd.f32 %v4243_v21, %v4242_v4  ;;  %v3013_v0 = vpop.permute.xlu1 %3012 }
 0x65e   :  { %v4245_v22 = vpop.f32.mrf.mxu0 }
 0x660   :  { %v4246_v39 = vpop.f32.mrf.mxu0 }
 0x661   :  { %v6716_v7 = vadd.f32 %v4246_v39, %v4245_v22  ;;  %v2949_v39 = vpop.permute.xlu0 %2948 }
 0x662   :  { %v4248_v40 = vpop.f32.mrf.mxu0 }
 0x664   :  { %v4249_v31 = vpop.f32.mrf.mxu0 }
 0x665   :  { %v6721_v17 = vadd.f32 %v4249_v31, %v4248_v40  ;;  %v6759_v31 = vpop.permute.xlu0 %2944 }
 0x666   :  { %v4251_v42 = vpop.f32.mrf.mxu0 }
 0x668   :  { %v4252_v26 = vpop.f32.mrf.mxu0 }
 0x669   :  { %v6723_v28 = vadd.f32 %v4252_v26, %v4251_v42  ;;  %v3009_v42 = vpop.permute.xlu1 %3008 }
 0x66a   :  { %v4254_v2 = vpop.f32.mrf.mxu0 }
 0x66c   :  { %v4255_v24 = vpop.f32.mrf.mxu0 }
 0x66d   :  { %v6725_v10 = vadd.f32 %v4255_v24, %v4254_v2 }
 0x66e   :  { %v4257_v50 = vpop.f32.mrf.mxu0 }
 0x670   :  { %v4258_v61 = vpop.f32.mrf.mxu0 }
 0x671   :  { %v6727_v54 = vadd.f32 %v4258_v61, %v4257_v50  ;;  %v6761_v50 = vpop.permute.xlu0 %2940  ;;  %v3005_v61 = vpop.permute.xlu1 %3004 }
 0x672   :  { %v4260_v15 = vpop.f32.mrf.mxu0 }
 0x674   :  { %v4261_v32 = vpop.f32.mrf.mxu0 }
 0x675   :  { %v6729_v13 = vadd.f32 %v4261_v32, %v4260_v15 }
 0x676   :  { %v4263_v27 = vpop.f32.mrf.mxu0 }
 0x678   :  { %v4264_v12 = vpop.f32.mrf.mxu0 }
 0x679   :  { %v6731_v44 = vadd.f32 %v4264_v12, %v4263_v27  ;;  %v6763_v12 = vpop.permute.xlu0 %2936 }
 0x67a   :  { %v4266_v25 = vpop.f32.mrf.mxu0 }
 0x67b   :  { %v3282_v47 = vadd.f32 %v6731_v44, %v2961_v19 }
 0x67c   :  { %v4267_v1 = vpop.f32.mrf.mxu0 }
 0x67d   :  { %v6733_v49 = vadd.f32 %v4267_v1, %v4266_v25  ;;  %v6765_v25 = vpop.permute.xlu1 %3000 }
 0x67e   :  { %v4269_v20 = vpop.f32.mrf.mxu0 }
 0x67f   :  { %v3285_v46 = vadd.f32 %v6733_v49, %v2965_v56  ;;  %v3274_v49 = vadd.f32 %v6727_v54, %v2953_v29 }
 0x680   :  { %v4270_v48 = vpop.f32.mrf.mxu0 }
 0x681   :  { %v6737_v58 = vadd.f32 %v4270_v48, %v4269_v20  ;;  %v3364_v54 = vmax.f32 %v3274_v49, 0.0 }
 0x682   :  { %v4272_v35 = vpop.f32.mrf.mxu0 }
 0x683   :  { %7097 = vst [vmem:[#allocation23_spill] sm:$0xff] %v6737_v58 }
 0x684   :  { %v4273_v60 = vpop.f32.mrf.mxu0 }
 0x685   :  { %v6739_v5 = vadd.f32 %v4273_v60, %v4272_v35  ;;  %v6767_v35 = vpop.permute.xlu0 %2932  ;;  %v6769_v60 = vpop.permute.xlu1 %2996 }
 0x686   :  { %v4275_v52 = vpop.f32.mrf.mxu0 }
 0x687   :  { %7098 = vst [vmem:[#allocation26_spill] sm:$0xff] %v6739_v5 }
 0x688   :  { %v4276_v51 = vpop.f32.mrf.mxu0 }
 0x689   :  { %v6741_v33 = vadd.f32 %v4276_v51, %v4275_v52 }
 0x68a   :  { %v4278_v63 = vpop.f32.mrf.mxu0 }
 0x68b   :  { %7099 = vst [vmem:[#allocation29_spill] sm:$0xff] %v6741_v33 }
 0x68c   :  { %v4279_v6 = vpop.f32.mrf.mxu0 }
 0x68d   :  { %v6743_v62 = vadd.f32 %v4279_v6, %v4278_v63  ;;  %v6771_v6 = vpop.permute.xlu0 %2928 }
 0x68e   :  { %v4281_v3 = vpop.f32.mrf.mxu0  ;;  %7102 = vst [vmem:[#allocation8_spill] sm:$0xff] %v6771_v6 }
 0x68f   :  { %7100 = vst [vmem:[#allocation32_spill] sm:$0xff] %v6743_v62 }
 0x690   :  { %v4282_v59 = vpop.f32.mrf.mxu0 }
 0x691   :  { %v6745_v57 = vadd.f32 %v4282_v59, %v4281_v3  ;;  %v6773_v3 = vpop.permute.xlu1 %2992  ;;  %v6775_v11 = vpop.permute.xlu0 %2924 }
 0x692   :  { %v6747_v4 = vpop.f32.mrf.mxu0  ;;  %7103 = vst [vmem:[#allocation3_spill] sm:$0xff] %v6775_v11 }
 0x693   :  { %7101 = vst [vmem:[#allocation35_spill] sm:$0xff] %v6745_v57 }
 0x694   :  { %v6749_v21 = vpop.f32.mrf.mxu0 }
 0x695   :  { %v6777_v38 = vpop.permute.xlu1 %2988  ;;  %v6782_v57 = vpop.permute.xlu0 %2920 }
 0x696   :  { %v6751_v22 = vpop.f32.mrf.mxu0  ;;  %7104 = vst [vmem:[#allocation7_spill] sm:$0xff] %v6777_v38 }
 0x698   :  { %v6753_v53 = vpop.f32.mrf.mxu0 }
 0x699   :  { %v2985_v11 = vpop.permute.xlu1 %2984  ;;  %v2917_v19 = vpop.permute.xlu0 %2916 }
 0x69a   :  { %v6755_v40 = vpop.f32.mrf.mxu0 }
 0x69c   :  { %v6757_v8 = vpop.f32.mrf.mxu0 }
 0x69d   :  { %v2913_v29 = vpop.permute.xlu0 %2912 }
 0x69e   :  { %v4293_v26 = vpop.f32.mrf.mxu0 }
 0x6a0   :  { %v4294_v2 = vpop.f32.mrf.mxu0 }
 0x6a2   :  { %v4296_v24 = vpop.f32.mrf.mxu0 }
 0x6a4   :  { %v4297_v15 = vpop.f32.mrf.mxu0 }
 0x6a6   :  { %v4299_v32 = vpop.f32.mrf.mxu0 }
 0x6a8   :  { %v4300_v27 = vpop.f32.mrf.mxu0 }
 0x6a9   :  { %v4301_v38 = vadd.f32 %v4300_v27, %v4299_v32  ;;  %v7110_v32 = vld [vmem:[#allocation35_spill] sm:$0xff] }
 0x6aa   :  { %v4302_v1 = vpop.f32.mrf.mxu0  ;;  %v3306_v27 = vadd.f32 %v7110_v32, %v2985_v11  ;;  %v7115_v11 = vld [vmem:[#allocation5_spill] sm:$0xff] }
 0x6ac   :  { %v4303_v20 = vpop.f32.mrf.mxu0 }
 0x6ad   :  { %v4304_v43 = vadd.f32 %v4303_v20, %v4302_v1  ;;  %v7111_v1 = vld [vmem:[#allocation40_spill] sm:$0xff] }
 0x6ae   :  { %v4305_v48 = vpop.f32.mrf.mxu0  ;;  %v3242_v20 = vadd.f32 %v7111_v1, %v6782_v57  ;;  %v7116_v57 = vld [vmem:[#allocation26_spill] sm:$0xff] }
 0x6af   :  { %v3333_v56 = vadd.f32 %v4304_v43, %v3013_v0 }
 0x6b0   :  { %v4306_v52 = vpop.f32.mrf.mxu0  ;;  %v3356_v49 = vmax.f32 %v3242_v20, 0.0 }
 0x6b1   :  { %v4307_v33 = vadd.f32 %v4306_v52, %v4305_v48 }
 0x6b2   :  { %v4308_v51 = vpop.f32.mrf.mxu0 }
 0x6b4   :  { %v4309_v63 = vpop.f32.mrf.mxu0 }
 0x6b5   :  { %v4310_v23 = vadd.f32 %v4309_v63, %v4308_v51  ;;  %v3338_v51 = vadd.f32 %v4307_v33, %v3017_v18  ;;  %v4286_v18 = vadd.f32 %v6749_v21, %v6747_v4  ;;  %v7107_v4 = vld [vmem:[#allocation7_spill] sm:$0xff] }
 0x6b6   :  { %v4311_v59 = vpop.f32.mrf.mxu0  ;;  %v7113_v63 = vld [vmem:[#allocation39_spill] sm:$0xff] }
 0x6b7   :  { %v3341_v45 = vadd.f32 %v4310_v23, %v3021_v34  ;;  %v3309_v21 = vadd.f32 %v4286_v18, %v7107_v4 }
 0x6b8   :  { %v4312_v55 = vpop.f32.mrf.mxu0 }
 0x6b9   :  { %v4313_v14 = vadd.f32 %v4312_v55, %v4311_v59  ;;  %v3277_v55 = vadd.f32 %v6729_v13, %v2957_v30  ;;  %v3367_v59 = vmax.f32 %v3285_v46, 0.0  ;;  %v3381_v44 = vmax.f32 %v3341_v45, 0.0 }
 0x6ba   :  { %v4314_v41 = vpop.f32.mrf.mxu0  ;;  %v3330_v13 = vadd.f32 %v4301_v38, %v3009_v42  ;;  %v3380_v46 = vmax.f32 %v3338_v51, 0.0  ;;  %v3379_v45 = vmax.f32 %v3333_v56, 0.0  ;;  %v4289_v38 = vadd.f32 %v6753_v53, %v6751_v22 }
 0x6bb   :  { %v3346_v16 = vadd.f32 %v4313_v14, %v3025_v37  ;;  %v3366_v14 = vmax.f32 %v3282_v47, 0.0  ;;  %v3365_v23 = vmax.f32 %v3277_v55, 0.0  ;;  %v2981_v37 = vpop.permute.xlu1 %2980  ;;  %v4292_v47 = vadd.f32 %v6757_v8, %v6755_v40  ;;  %v7114_v55 = vld [vmem:[#allocation29_spill] sm:$0xff] }
 0x6bc   :  { %v4315_v58 = vpop.f32.mrf.mxu0  ;;  %v3378_v34 = vmax.f32 %v3330_v13, 0.0  ;;  %v3253_v22 = vadd.f32 %v6706_v9, %v6767_v35  ;;  %v3314_v40 = vadd.f32 %v4289_v38, %v6773_v3  ;;  %v2909_v9 = vpop.permute.xlu0 %2908  ;;  %v7112_v35 = vld [vmem:[#allocation32_spill] sm:$0xff]  ;;  %v3373_v52 = vmax.f32 %v3309_v21, 0.0 }
 0x6bd   :  { %v4316_v5 = vadd.f32 %v4315_v58, %v4314_v41  ;;  %v3382_v41 = vmax.f32 %v3346_v16, 0.0  ;;  %v3269_v58 = vadd.f32 %v6725_v10, %v2949_v39  ;;  %v3266_v16 = vadd.f32 %v6723_v28, %v6759_v31  ;;  %v7106_v31 = vld [vmem:[#allocation34_spill] sm:$0xff]  ;;  %v7122_v38 = vld [vmem:[#allocation20_spill] sm:$0xff] }
 0x6be   :  { %v3261_v10 = vadd.f32 %v6721_v17, %v6761_v50  ;;  %v3258_v28 = vadd.f32 %v6716_v7, %v6763_v12  ;;  %v3317_v17 = vadd.f32 %v4292_v47, %v6769_v60  ;;  %v7105_v7 = vld [vmem:[#allocation8_spill] sm:$0xff]  ;;  %v7109_v50 = vld [vmem:[#allocation33_spill] sm:$0xff]  ;;  %v3374_v12 = vmax.f32 %v3314_v40, 0.0 }
 0x6bf   :  { %v3349_v62 = vadd.f32 %v4316_v5, %v6735_v36  ;;  %v4298_v36 = vadd.f32 %v4297_v15, %v4296_v24  ;;  %v4295_v5 = vadd.f32 %v4294_v2, %v4293_v26  ;;  %v3363_v33 = vmax.f32 %v3269_v58, 0.0  ;;  %v2977_v0 = vpop.permute.xlu1 %2976  ;;  %v7108_v24 = vld [vmem:[#allocation3_spill] sm:$0xff]  ;;  %v7117_v58 = vld [vmem:[#allocation4_spill] sm:$0xff] }
 0x6c0   :  { %v3361_v53 = vmax.f32 %v3261_v10, 0.0  ;;  %v3250_v42 = vadd.f32 %v7106_v31, %v7105_v7  ;;  %v3360_v26 = vmax.f32 %v3258_v28, 0.0  ;;  %v3375_v2 = vmax.f32 %v3317_v17, 0.0  ;;  %v7120_v10 = vld [vmem:[#allocation19_spill] sm:$0xff] }
 0x6c1   :  { %v3383_v6 = vmax.f32 %v3349_v62, 0.0  ;;  %v3325_v43 = vadd.f32 %v4298_v36, %v3005_v61  ;;  %v3322_v30 = vadd.f32 %v4295_v5, %v6765_v25  ;;  %v3362_v62 = vmax.f32 %v3266_v16, 0.0 }
 0x6c2   :  { %v3245_v61 = vadd.f32 %v7109_v50, %v7108_v24  ;;  %v3359_v15 = vmax.f32 %v3253_v22, 0.0  ;;  %v3358_v48 = vmax.f32 %v3250_v42, 0.0  ;;  %v3301_v60 = vadd.f32 %v7112_v35, %v2981_v37  ;;  %v7119_v37 = vld [vmem:[#allocation10_spill] sm:$0xff] }
 0x6c3   :  { %4317 = vmatprep.subr.mxu1 %v3383_v6  ;;  %v3377_v39 = vmax.f32 %v3325_v43, 0.0  ;;  %v3376_v8 = vmax.f32 %v3322_v30, 0.0  ;;  %v2973_v25 = vpop.permute.xlu1 %2972  ;;  %v3237_v6 = vadd.f32 %v7113_v63, %v2917_v19  ;;  %v3372_v51 = vmax.f32 %v3306_v27, 0.0  ;;  %v7118_v19 = vld [vmem:[#allocation23_spill] sm:$0xff] }
 0x6c4   :  { %4318 = vmatpush3.msra.mxu1 %v3367_v59  ;;  %v3357_v3 = vmax.f32 %v3245_v61, 0.0  ;;  %v3298_v59 = vadd.f32 %v7114_v55, %v2977_v0  ;;  %v3293_v36 = vadd.f32 %v7116_v57, %v2973_v25  ;;  %v3371_v56 = vmax.f32 %v3301_v60, 0.0 }
 0x6c5   :  { %4319 = vmatprep.subr.mxu1 %v3382_v41  ;;  %v3234_v41 = vadd.f32 %v7115_v11, %v2913_v29  ;;  %v3355_v5 = vmax.f32 %v3237_v6, 0.0 }
 0x6c6   :  { %4320 = vmatpush3.msra.mxu1 %v3366_v14  ;;  %v2905_v14 = vpop.permute.xlu0 %2904  ;;  %v3369_v47 = vmax.f32 %v3293_v36, 0.0 }
 0x6c7   :  { %4321 = vmatprep.subr.mxu1 %v3381_v44  ;;  %v2969_v44 = vpop.permute.xlu1 %2968  ;;  %v3226_v16 = vadd.f32 %v7119_v37, %v2905_v14 }
 0x6c8   :  { %4322 = vmatpush3.msra.mxu1 %v3365_v23  ;;  %v3229_v23 = vadd.f32 %v7117_v58, %v2909_v9  ;;  %v3290_v13 = vadd.f32 %v7118_v19, %v2969_v44 }
 0x6c9   :  { %4323 = vmatprep.subr.mxu1 %v3380_v46  ;;  %v3370_v46 = vmax.f32 %v3298_v59, 0.0 }
 0x6ca   :  { %4324 = vmatpush3.msra.mxu1 %v3364_v54  ;;  %v3354_v54 = vmax.f32 %v3234_v41, 0.0  ;;  %v3353_v43 = vmax.f32 %v3229_v23, 0.0  ;;  %v3390_v18 = vpop.permute.xlu0 %3389 }
 0x6cb   :  { %4325 = vmatprep.subr.mxu1 %v3379_v45  ;;  %v3368_v45 = vmax.f32 %v3290_v13, 0.0 }
 0x6cc   :  { %4326 = vmatpush3.msra.mxu1 %v3363_v33  ;;  %v7121_v33 = vsub.s32 0, %v7120_v10 }
 0x6cd   :  { %4327 = vmatprep.subr.mxu1 %v3378_v34  ;;  %v3352_v34 = vmax.f32 %v3226_v16, 0.0 }
 0x6ce   :  { %4328 = vmatpush3.msra.mxu1 %v3362_v62  ;;  %v3396_v30 = vrot.slane %v7122_v38, %v7121_v33  ;;  %v2241_v62 = vpop.permute.xlu1 %2240 }
 0x6cf   :  { %4329 = vmatprep.subr.mxu1 %v3377_v39  ;;  %v7123_v39 = vld [vmem:[#allocation9_spill] sm:$0xff] }
 0x6d0   :  { %4330 = vmatpush3.msra.mxu1 %v3361_v53  ;;  %v2321_v0 = vadd.f32 %v7123_v39, %v2241_v62 }
 0x6d1   :  { %4331 = vmatprep.subr.mxu1 %v3376_v8 }
 0x6d2   :  { %4332 = vmatpush3.msra.mxu1 %v3360_v26 }
 0x6d3   :  { %4333 = vmatprep.subr.mxu1 %v3375_v2 }
 0x6d4   :  { %4334 = vmatpush3.msra.mxu1 %v3359_v15 }
 0x6d5   :  { %4335 = vmatprep.subr.mxu1 %v3374_v12 }
 0x6d6   :  { %4336 = vmatpush3.msra.mxu1 %v3358_v48 }
 0x6d7   :  { %4337 = vmatprep.subr.mxu1 %v3373_v52 }
 0x6d8   :  { %4338 = vmatpush3.msra.mxu1 %v3357_v3 }
 0x6d9   :  { %4339 = vmatprep.subr.mxu1 %v3372_v51 }
 0x6da   :  { %4340 = vmatpush3.msra.mxu1 %v3356_v49 }
 0x6db   :  { %4341 = vmatprep.subr.mxu1 %v3371_v56 }
 0x6dc   :  { %4342 = vmatpush3.msra.mxu1 %v3355_v5 }
 0x6dd   :  { %4343 = vmatprep.subr.mxu1 %v3370_v46 }
 0x6de   :  { %4344 = vmatpush3.msra.mxu1 %v3354_v54 }
 0x6df   :  { %4345 = vmatprep.subr.mxu1 %v3369_v47 }
 0x6e0   :  { %4346 = vmatpush3.msra.mxu1 %v3353_v43 }
 0x6e1   :  { %4347 = vmatprep.subr.mxu1 %v3368_v45 }
 0x6e2   :  { %4348 = vmatpush3.msra.mxu1 %v3352_v34 }
 0x6e3   :  { %3468 = vmatmul.mubr.f32.vlgmr.msra.gmra.mxu1 %v3396_v30 }
 0x7a3   :  { %v4349_v28 = vpop.f32.mrf.mxu1 }
 0x7a5   :  { %v4350_v29 = vpop.f32.mrf.mxu1 }
 0x7a6   :  { %v4351_v17 = vadd.f32 %v4350_v29, %v4349_v28 }
 0x7a8   :  { %v3470_v22 = vadd.f32 %v4351_v17, %v3390_v18 }
 0x7aa   :  { %v3473_v53 = vmin.f32 %v2321_v0, %v3470_v22 }
 0x7ac   :  { %3474 = vst [vmem:[%s6832_s5] sm:$0x1] %v3473_v53 }

</bundles_post_ra>
